<compile_context>
chip_gen: v7x
topology: tpu7x:2x2x1
jax: 0.10.0
libtpu: 0.0.40
codegen_flags: <defaults>
</compile_context>

<pallas_src>
import math

import jax
import jax.numpy as jnp
from jax import lax
from jax.experimental import pallas as pl
from jax.experimental.pallas import tpu as pltpu


def _band_rows(hh, ww, tb, target_rows=256):
    """Largest divisor hb of hh with tb*hb*ww <= target_rows (min 1).  The per-band f32
    accumulator is (tb*hb*ww, Cout) and must stay in the 64x4KiB vreg file."""
    cap = max(1, target_rows // max(1, tb * ww))
    hb = 1
    for d in range(1, hh + 1):
        if hh % d == 0 and d <= cap:
            hb = d
    return hb


def cnn_kernel(xp_ref, w1_ref, b1_ref, w2_ref, b2_ref, wf_ref, bf_ref, o_ref,
               s1_ref, t1_ref, p2_ref, s2_ref, t2_ref):
    tb, hp, wp, _ = xp_ref.shape
    H, W = hp - 2, wp - 2
    H2, W2 = H // 2, W // 2
    c1 = w1_ref.shape[-1]

    def conv3x3_relu(src_ref, w_ref, b_ref, dst_ref):
        # src_ref: (tb, hh+2, ww+2, cin) zero-padded; w_ref: (3, 3, cin, cout) bf16;
        # dst_ref: (tb, hh, ww, cout).  Row-banded so the f32 accumulator stays in vregs.
        _, hh, ww, cout = dst_ref.shape
        cin = src_ref.shape[-1]
        hb = _band_rows(hh, ww, tb)
        m = tb * hb * ww
        for band in range(hh // hb):            # static & short (<= 8) by construction
            r = band * hb
            acc = jnp.zeros((m, cout), jnp.float32)
            for dy in range(3):                 # 3x3 conv as 9 shifted MXU matmuls
                for dx in range(3):
                    patch = src_ref[:, r + dy:r + dy + hb, dx:dx + ww, :]
                    patch = patch.reshape(m, cin).astype(jnp.bfloat16)
                    acc = acc + jnp.dot(patch, w_ref[dy, dx],
                                        preferred_element_type=jnp.float32)
            acc = jnp.maximum(acc + b_ref[...], 0.0)        # bias + relu in f32 (VPU)
            dst_ref[:, r:r + hb, :, :] = (
                acc.reshape(tb, hb, ww, cout).astype(dst_ref.dtype))

    def maxpool2x2(src_ref, tmp_ref):
        # (tb, hh, ww, cc) -> (tb, hh//2, ww//2, cc)
        _, hh, ww, cc = src_ref.shape
        h2, w2 = hh // 2, ww // 2
        v = src_ref[...].reshape(tb, h2, 2, ww, cc)          # row split: leading dims only
        tmp_ref[...] = jnp.maximum(v[:, :, 0], v[:, :, 1]).astype(tmp_ref.dtype)
        return jnp.maximum(tmp_ref[:, :, pl.ds(0, w2, 2), :],   # pool along W via
                           tmp_ref[:, :, pl.ds(1, w2, 2), :])   # stride-2 sublane reads

    # conv1 + relu (bf16 activations out), maxpool 2x2
    conv3x3_relu(xp_ref, w1_ref, b1_ref, s1_ref)
    pool1 = maxpool2x2(s1_ref, t1_ref)                       # (tb, H2, W2, c1) f32

    # Re-zero only the 1-pixel border of the conv2 pad buffer (4 thin strips per step:
    # cheap and megacore-safe), then overwrite the interior.
    zr = jnp.zeros((tb, 1, W2 + 2, c1), p2_ref.dtype)
    zc = jnp.zeros((tb, H2 + 2, 1, c1), p2_ref.dtype)
    p2_ref[:, 0:1, :, :] = zr
    p2_ref[:, H2 + 1:H2 + 2, :, :] = zr
    p2_ref[:, :, 0:1, :] = zc
    p2_ref[:, :, W2 + 1:W2 + 2, :] = zc
    p2_ref[:, 1:H2 + 1, 1:W2 + 1, :] = pool1.astype(p2_ref.dtype)

    # conv2 + relu, maxpool 2x2
    conv3x3_relu(p2_ref, w2_ref, b2_ref, s2_ref)
    pool2 = maxpool2x2(s2_ref, t2_ref)                       # (tb, H4, W4, c2) f32

    # AdaptiveAvgPool2d((1,1)) + fc: the 1/(H4*W4) scale is folded into wf in the wrapper,
    # so only a spatial sum remains; fc stays f32 (tiny matmul, keeps accuracy tight).
    g = jnp.sum(jnp.sum(pool2, axis=1), axis=1)              # (tb, c2)
    logits = jnp.dot(g, wf_ref[...], preferred_element_type=jnp.float32) + bf_ref[...]
    o_ref[:, 0, :] = logits.astype(o_ref.dtype)


def _padded_bytes(shape, dtype):
    """VMEM footprint estimate: last dim padded to 128 lanes, 2nd-last to the sublane tile."""
    itemsize = jnp.dtype(dtype).itemsize
    sub = {4: 8, 2: 16, 1: 32}[itemsize]
    dims = list(shape)
    dims[-1] = -(-dims[-1] // 128) * 128
    dims[-2] = -(-dims[-2] // sub) * sub
    return math.prod(dims) * itemsize


def _pick_block_batch(n, cin, H, W, c1, c2, cpad, budget_bytes):
    H2, W2, H4 = H // 2, W // 2, H // 4

    def fits(tb):
        vmem = 2 * _padded_bytes((tb, H + 2, W + 2, cin), jnp.bfloat16)    # input (dbl buf)
        vmem += 2 * _padded_bytes((tb, 1, cpad), jnp.float32)              # output (dbl buf)
        vmem += _padded_bytes((tb, H, W, c1), jnp.bfloat16)                # s1
        vmem += _padded_bytes((tb, H2, W, c1), jnp.float32)                # t1
        vmem += _padded_bytes((tb, H2 + 2, W2 + 2, c1), jnp.float32)       # p2
        vmem += _padded_bytes((tb, H2, W2, c2), jnp.float32)               # s2
        vmem += _padded_bytes((tb, H4, W2, c2), jnp.float32)               # t2
        if vmem > budget_bytes:
            return False
        # keep the statically-unrolled row-band loops short
        return (H // _band_rows(H, W, tb) <= 8) and (H2 // _band_rows(H2, W2, tb) <= 8)

    good = [d for d in range(1, n + 1) if n % d == 0 and fits(d)] or [1]
    tb = max(good)
    if n // tb < 2:                    # keep >= 2 grid steps: pipelining + both v7x TCs
        smaller = [d for d in good if n // d >= 2]
        if smaller:
            tb = max(smaller)
    return tb


def cnn_forward(x, w1, b1, w2, b2, wf, bf, *, block_batch=None):
    """x: (N, Cin, H, W) float32 -> logits (N, num_classes) float32."""
    n, cin, H, W = x.shape
    c1, c2 = w1.shape[-1], w2.shape[-1]
    num_classes = wf.shape[-1]
    assert H % 4 == 0 and W % 4 == 0, "spatial dims must be divisible by 4"
    H2, W2, H4, W4 = H // 2, W // 2, H // 4, W // 4
    cpad = -(-num_classes // 128) * 128

    if block_batch is None:
        # ~24 MiB of activations per tile: safe on every generation (v7x has 64 MiB/TC);
        # v5e/v6e (128 MiB physical) can raise the budget + vmem_limit for huge batches.
        block_batch = _pick_block_batch(n, cin, H, W, c1, c2, cpad, 24 * 1024 * 1024)
    tb = block_batch
    assert n % tb == 0, "batch must be divisible by block_batch"

    # Layout plumbing in XLA (outside the kernel): NCHW->NHWC, spatial zero pad, bf16 cast
    # of the MXU operands (input + conv weights), biases as (1, C) rows, avg-pool scale
    # folded into the fc weight, fc weight/bias padded to a lane-dense width.
    xp = jnp.pad(jnp.transpose(x, (0, 2, 3, 1)),
                 ((0, 0), (1, 1), (1, 1), (0, 0))).astype(jnp.bfloat16)
    w1_b = w1.astype(jnp.bfloat16)
    w2_b = w2.astype(jnp.bfloat16)
    b1_2d = b1.reshape(1, c1).astype(jnp.float32)
    b2_2d = b2.reshape(1, c2).astype(jnp.float32)
    wf_s = (wf * (1.0 / float(H4 * W4))).astype(jnp.float32)
    wf_p = jnp.zeros((c2, cpad), jnp.float32).at[:, :num_classes].set(wf_s)
    bf_p = jnp.zeros((1, cpad), jnp.float32).at[0, :num_classes].set(bf)

    out = pl.pallas_call(
        cnn_kernel,
        grid=(n // tb,),
        out_shape=jax.ShapeDtypeStruct((n, 1, cpad), jnp.float32),
        in_specs=[
            pl.BlockSpec((tb, H + 2, W + 2, cin), lambda i: (i, 0, 0, 0)),  # batch-tiled
            pl.BlockSpec((3, 3, cin, c1), lambda i: (0, 0, 0, 0)),          # VMEM-resident
            pl.BlockSpec((1, c1), lambda i: (0, 0)),
            pl.BlockSpec((3, 3, c1, c2), lambda i: (0, 0, 0, 0)),
            pl.BlockSpec((1, c2), lambda i: (0, 0)),
            pl.BlockSpec((c2, cpad), lambda i: (0, 0)),
            pl.BlockSpec((1, cpad), lambda i: (0, 0)),
        ],
        out_specs=pl.BlockSpec((tb, 1, cpad), lambda i: (i, 0, 0)),
        scratch_shapes=[
            pltpu.VMEM((tb, H, W, c1), jnp.bfloat16),            # conv1 output (bf16)
            pltpu.VMEM((tb, H2, W, c1), jnp.float32),            # pool1 row-pooled temp
            pltpu.VMEM((tb, H2 + 2, W2 + 2, c1), jnp.float32),   # zero-padded pool1
            pltpu.VMEM((tb, H2, W2, c2), jnp.float32),           # conv2 output
            pltpu.VMEM((tb, H4, W2, c2), jnp.float32),           # pool2 row-pooled temp
        ],
        compiler_params=pltpu.CompilerParams(
            dimension_semantics=("parallel",),        # megacore / 2-TC sharding on v7x
            vmem_limit_bytes=40 * 1024 * 1024),
    )(xp, w1_b, b1_2d, w2_b, b2_2d, wf_p, bf_p)
    return out.reshape(n, cpad)[:, :num_classes]


def init_params(key, channel_num, num_classes):
    """Deterministic init mimicking torch defaults (U[-1/sqrt(fan_in), 1/sqrt(fan_in)]).
    Conv weights stored HWIO (3, 3, Cin, Cout); fc stored (in, out)."""
    k = jax.random.split(key, 6)
    bc1 = 1.0 / math.sqrt(channel_num * 9)
    bc2 = 1.0 / math.sqrt(32 * 9)
    bfc = 1.0 / math.sqrt(64)
    w1 = jax.random.uniform(k[0], (3, 3, channel_num, 32), jnp.float32, -bc1, bc1)
    b1 = jax.random.uniform(k[1], (32,), jnp.float32, -bc1, bc1)
    w2 = jax.random.uniform(k[2], (3, 3, 32, 64), jnp.float32, -bc2, bc2)
    b2 = jax.random.uniform(k[3], (64,), jnp.float32, -bc2, bc2)
    wf = jax.random.uniform(k[4], (64, num_classes), jnp.float32, -bfc, bfc)
    bf = jax.random.uniform(k[5], (num_classes,), jnp.float32, -bfc, bfc)
    return w1, b1, w2, b2, wf, bf


def cnn_ref(x, w1, b1, w2, b2, wf, bf):
    """Pure-JAX (f32) reference of the PyTorch CNN forward."""
    h = jnp.transpose(x, (0, 2, 3, 1))

    def conv(v, w, b):
        return lax.conv_general_dilated(
            v, w, (1, 1), "SAME", dimension_numbers=("NHWC", "HWIO", "NHWC"),
            precision=lax.Precision.HIGHEST) + b

    h = jax.nn.relu(conv(h, w1, b1))
    h = lax.reduce_window(h, -jnp.inf, lax.max, (1, 2, 2, 1), (1, 2, 2, 1), "VALID")
    h = jax.nn.relu(conv(h, w2, b2))
    h = lax.reduce_window(h, -jnp.inf, lax.max, (1, 2, 2, 1), (1, 2, 2, 1), "VALID")
    feat = jnp.mean(h, axis=(1, 2))
    return jnp.dot(feat, wf, precision=lax.Precision.HIGHEST) + bf


if __name__ == "__main__":
    batch, channels, H, W, num_classes = 2, 4, 16, 16, 10
    key = jax.random.PRNGKey(0)
    kx, kp = jax.random.split(key)
    x = jax.random.normal(kx, (batch, channels, H, W), jnp.float32)
    params = init_params(kp, channels, num_classes)

    out = cnn_forward(x, *params)      # auto block_batch -> tb=1, grid of 2 batch tiles
    jax.block_until_ready(out)

    ref = cnn_ref(x, *params)
    assert out.shape == (batch, num_classes)
    # bf16 MXU operands + bf16 conv1 activations -> loosened tolerance vs the f32 reference
    assert jnp.allclose(out, ref, atol=3e-2, rtol=3e-2), "mismatch vs JAX reference"
    print("KERNEL_OK")
</pallas_src>

<mosaic_0001>
module attributes {stable_mosaic.version = 11 : i64} {
  func.func @cnn_kernel(%arg0: i32, %arg1: memref<1x18x18x4xbf16, #tpu.memory_space<vmem>>, %arg2: memref<3x3x4x32xbf16, #tpu.memory_space<vmem>>, %arg3: memref<1x32xf32, #tpu.memory_space<vmem>>, %arg4: memref<3x3x32x64xbf16, #tpu.memory_space<vmem>>, %arg5: memref<1x64xf32, #tpu.memory_space<vmem>>, %arg6: memref<64x128xf32, #tpu.memory_space<vmem>>, %arg7: memref<1x128xf32, #tpu.memory_space<vmem>>, %arg8: memref<1x1x128xf32, #tpu.memory_space<vmem>>, %arg9: memref<1x16x16x32xbf16, #tpu.memory_space<vmem>>, %arg10: memref<1x8x16x32xf32, #tpu.memory_space<vmem>>, %arg11: memref<1x10x10x32xf32, #tpu.memory_space<vmem>>, %arg12: memref<1x8x8x64xf32, #tpu.memory_space<vmem>>, %arg13: memref<1x4x8x64xf32, #tpu.memory_space<vmem>>) attributes {dimension_semantics = [#tpu.dimension_semantics<parallel>], iteration_bounds = array<i64: 2>, scalar_prefetch = 0 : i64, scratch_operands = 5 : i64, tpu.core_type = #tpu.core_type<tc>, window_params = [{transform_indices = @transform_0, window_bounds = array<i64: 1, 18, 18, 4>}, {pipeline_mode = #tpu.pipeline_mode<synchronous>, transform_indices = @transform_1, window_bounds = array<i64: 3, 3, 4, 32>}, {pipeline_mode = #tpu.pipeline_mode<synchronous>, transform_indices = @transform_2, window_bounds = array<i64: 1, 32>}, {pipeline_mode = #tpu.pipeline_mode<synchronous>, transform_indices = @transform_3, window_bounds = array<i64: 3, 3, 32, 64>}, {pipeline_mode = #tpu.pipeline_mode<synchronous>, transform_indices = @transform_4, window_bounds = array<i64: 1, 64>}, {pipeline_mode = #tpu.pipeline_mode<synchronous>, transform_indices = @transform_5, window_bounds = array<i64: 64, 128>}, {pipeline_mode = #tpu.pipeline_mode<synchronous>, transform_indices = @transform_6, window_bounds = array<i64: 1, 128>}, {transform_indices = @transform_7, window_bounds = array<i64: 1, 1, 128>}]} {
    %cst = arith.constant 0.000000e+00 : f32
    %0 = vector.broadcast %cst : f32 to vector<256x32xf32>
    %c0 = arith.constant 0 : index
    %c0_0 = arith.constant 0 : index
    %c0_1 = arith.constant 0 : index
    %c0_2 = arith.constant 0 : index
    %1 = vector.load %arg1[%c0, %c0_0, %c0_1, %c0_2] : memref<1x18x18x4xbf16, #tpu.memory_space<vmem>>, vector<1x16x16x4xbf16>
    %2 = vector.shape_cast %1 : vector<1x16x16x4xbf16> to vector<256x4xbf16>
    %c0_3 = arith.constant 0 : index
    %c0_4 = arith.constant 0 : index
    %c0_5 = arith.constant 0 : index
    %c0_6 = arith.constant 0 : index
    %3 = vector.load %arg2[%c0_3, %c0_4, %c0_5, %c0_6] : memref<3x3x4x32xbf16, #tpu.memory_space<vmem>>, vector<1x1x4x32xbf16>
    %4 = vector.shape_cast %3 : vector<1x1x4x32xbf16> to vector<4x32xbf16>
    %cst_7 = arith.constant dense<0.000000e+00> : vector<256x32xf32>
    %5 = tpu.matmul %2, %4, %cst_7 {dimension_numbers = #tpu.dot_dimension_numbers<[1], [0], [0], [1], [0, 0, 1, 1], [], []>} : vector<256x4xbf16>, vector<4x32xbf16>, vector<256x32xf32> -> vector<256x32xf32>
    %6 = arith.addf %0, %5 : vector<256x32xf32>
    %c0_8 = arith.constant 0 : index
    %c0_9 = arith.constant 0 : index
    %c1 = arith.constant 1 : index
    %c0_10 = arith.constant 0 : index
    %7 = vector.load %arg1[%c0_8, %c0_9, %c1, %c0_10] : memref<1x18x18x4xbf16, #tpu.memory_space<vmem>>, vector<1x16x16x4xbf16>
    %8 = vector.shape_cast %7 : vector<1x16x16x4xbf16> to vector<256x4xbf16>
    %c0_11 = arith.constant 0 : index
    %c1_12 = arith.constant 1 : index
    %c0_13 = arith.constant 0 : index
    %c0_14 = arith.constant 0 : index
    %9 = vector.load %arg2[%c0_11, %c1_12, %c0_13, %c0_14] : memref<3x3x4x32xbf16, #tpu.memory_space<vmem>>, vector<1x1x4x32xbf16>
    %10 = vector.shape_cast %9 : vector<1x1x4x32xbf16> to vector<4x32xbf16>
    %cst_15 = arith.constant dense<0.000000e+00> : vector<256x32xf32>
    %11 = tpu.matmul %8, %10, %cst_15 {dimension_numbers = #tpu.dot_dimension_numbers<[1], [0], [0], [1], [0, 0, 1, 1], [], []>} : vector<256x4xbf16>, vector<4x32xbf16>, vector<256x32xf32> -> vector<256x32xf32>
    %12 = arith.addf %6, %11 : vector<256x32xf32>
    %c0_16 = arith.constant 0 : index
    %c0_17 = arith.constant 0 : index
    %c2 = arith.constant 2 : index
    %c0_18 = arith.constant 0 : index
    %13 = vector.load %arg1[%c0_16, %c0_17, %c2, %c0_18] : memref<1x18x18x4xbf16, #tpu.memory_space<vmem>>, vector<1x16x16x4xbf16>
    %14 = vector.shape_cast %13 : vector<1x16x16x4xbf16> to vector<256x4xbf16>
    %c0_19 = arith.constant 0 : index
    %c2_20 = arith.constant 2 : index
    %c0_21 = arith.constant 0 : index
    %c0_22 = arith.constant 0 : index
    %15 = vector.load %arg2[%c0_19, %c2_20, %c0_21, %c0_22] : memref<3x3x4x32xbf16, #tpu.memory_space<vmem>>, vector<1x1x4x32xbf16>
    %16 = vector.shape_cast %15 : vector<1x1x4x32xbf16> to vector<4x32xbf16>
    %cst_23 = arith.constant dense<0.000000e+00> : vector<256x32xf32>
    %17 = tpu.matmul %14, %16, %cst_23 {dimension_numbers = #tpu.dot_dimension_numbers<[1], [0], [0], [1], [0, 0, 1, 1], [], []>} : vector<256x4xbf16>, vector<4x32xbf16>, vector<256x32xf32> -> vector<256x32xf32>
    %18 = arith.addf %12, %17 : vector<256x32xf32>
    %c0_24 = arith.constant 0 : index
    %c1_25 = arith.constant 1 : index
    %c0_26 = arith.constant 0 : index
    %c0_27 = arith.constant 0 : index
    %19 = vector.load %arg1[%c0_24, %c1_25, %c0_26, %c0_27] : memref<1x18x18x4xbf16, #tpu.memory_space<vmem>>, vector<1x16x16x4xbf16>
    %20 = vector.shape_cast %19 : vector<1x16x16x4xbf16> to vector<256x4xbf16>
    %c1_28 = arith.constant 1 : index
    %c0_29 = arith.constant 0 : index
    %c0_30 = arith.constant 0 : index
    %c0_31 = arith.constant 0 : index
    %21 = vector.load %arg2[%c1_28, %c0_29, %c0_30, %c0_31] : memref<3x3x4x32xbf16, #tpu.memory_space<vmem>>, vector<1x1x4x32xbf16>
    %22 = vector.shape_cast %21 : vector<1x1x4x32xbf16> to vector<4x32xbf16>
    %cst_32 = arith.constant dense<0.000000e+00> : vector<256x32xf32>
    %23 = tpu.matmul %20, %22, %cst_32 {dimension_numbers = #tpu.dot_dimension_numbers<[1], [0], [0], [1], [0, 0, 1, 1], [], []>} : vector<256x4xbf16>, vector<4x32xbf16>, vector<256x32xf32> -> vector<256x32xf32>
    %24 = arith.addf %18, %23 : vector<256x32xf32>
    %c0_33 = arith.constant 0 : index
    %c1_34 = arith.constant 1 : index
    %c1_35 = arith.constant 1 : index
    %c0_36 = arith.constant 0 : index
    %25 = vector.load %arg1[%c0_33, %c1_34, %c1_35, %c0_36] : memref<1x18x18x4xbf16, #tpu.memory_space<vmem>>, vector<1x16x16x4xbf16>
    %26 = vector.shape_cast %25 : vector<1x16x16x4xbf16> to vector<256x4xbf16>
    %c1_37 = arith.constant 1 : index
    %c1_38 = arith.constant 1 : index
    %c0_39 = arith.constant 0 : index
    %c0_40 = arith.constant 0 : index
    %27 = vector.load %arg2[%c1_37, %c1_38, %c0_39, %c0_40] : memref<3x3x4x32xbf16, #tpu.memory_space<vmem>>, vector<1x1x4x32xbf16>
    %28 = vector.shape_cast %27 : vector<1x1x4x32xbf16> to vector<4x32xbf16>
    %cst_41 = arith.constant dense<0.000000e+00> : vector<256x32xf32>
    %29 = tpu.matmul %26, %28, %cst_41 {dimension_numbers = #tpu.dot_dimension_numbers<[1], [0], [0], [1], [0, 0, 1, 1], [], []>} : vector<256x4xbf16>, vector<4x32xbf16>, vector<256x32xf32> -> vector<256x32xf32>
    %30 = arith.addf %24, %29 : vector<256x32xf32>
    %c0_42 = arith.constant 0 : index
    %c1_43 = arith.constant 1 : index
    %c2_44 = arith.constant 2 : index
    %c0_45 = arith.constant 0 : index
    %31 = vector.load %arg1[%c0_42, %c1_43, %c2_44, %c0_45] : memref<1x18x18x4xbf16, #tpu.memory_space<vmem>>, vector<1x16x16x4xbf16>
    %32 = vector.shape_cast %31 : vector<1x16x16x4xbf16> to vector<256x4xbf16>
    %c1_46 = arith.constant 1 : index
    %c2_47 = arith.constant 2 : index
    %c0_48 = arith.constant 0 : index
    %c0_49 = arith.constant 0 : index
    %33 = vector.load %arg2[%c1_46, %c2_47, %c0_48, %c0_49] : memref<3x3x4x32xbf16, #tpu.memory_space<vmem>>, vector<1x1x4x32xbf16>
    %34 = vector.shape_cast %33 : vector<1x1x4x32xbf16> to vector<4x32xbf16>
    %cst_50 = arith.constant dense<0.000000e+00> : vector<256x32xf32>
    %35 = tpu.matmul %32, %34, %cst_50 {dimension_numbers = #tpu.dot_dimension_numbers<[1], [0], [0], [1], [0, 0, 1, 1], [], []>} : vector<256x4xbf16>, vector<4x32xbf16>, vector<256x32xf32> -> vector<256x32xf32>
    %36 = arith.addf %30, %35 : vector<256x32xf32>
    %c0_51 = arith.constant 0 : index
    %c2_52 = arith.constant 2 : index
    %c0_53 = arith.constant 0 : index
    %c0_54 = arith.constant 0 : index
    %37 = vector.load %arg1[%c0_51, %c2_52, %c0_53, %c0_54] : memref<1x18x18x4xbf16, #tpu.memory_space<vmem>>, vector<1x16x16x4xbf16>
    %38 = vector.shape_cast %37 : vector<1x16x16x4xbf16> to vector<256x4xbf16>
    %c2_55 = arith.constant 2 : index
    %c0_56 = arith.constant 0 : index
    %c0_57 = arith.constant 0 : index
    %c0_58 = arith.constant 0 : index
    %39 = vector.load %arg2[%c2_55, %c0_56, %c0_57, %c0_58] : memref<3x3x4x32xbf16, #tpu.memory_space<vmem>>, vector<1x1x4x32xbf16>
    %40 = vector.shape_cast %39 : vector<1x1x4x32xbf16> to vector<4x32xbf16>
    %cst_59 = arith.constant dense<0.000000e+00> : vector<256x32xf32>
    %41 = tpu.matmul %38, %40, %cst_59 {dimension_numbers = #tpu.dot_dimension_numbers<[1], [0], [0], [1], [0, 0, 1, 1], [], []>} : vector<256x4xbf16>, vector<4x32xbf16>, vector<256x32xf32> -> vector<256x32xf32>
    %42 = arith.addf %36, %41 : vector<256x32xf32>
    %c0_60 = arith.constant 0 : index
    %c2_61 = arith.constant 2 : index
    %c1_62 = arith.constant 1 : index
    %c0_63 = arith.constant 0 : index
    %43 = vector.load %arg1[%c0_60, %c2_61, %c1_62, %c0_63] : memref<1x18x18x4xbf16, #tpu.memory_space<vmem>>, vector<1x16x16x4xbf16>
    %44 = vector.shape_cast %43 : vector<1x16x16x4xbf16> to vector<256x4xbf16>
    %c2_64 = arith.constant 2 : index
    %c1_65 = arith.constant 1 : index
    %c0_66 = arith.constant 0 : index
    %c0_67 = arith.constant 0 : index
    %45 = vector.load %arg2[%c2_64, %c1_65, %c0_66, %c0_67] : memref<3x3x4x32xbf16, #tpu.memory_space<vmem>>, vector<1x1x4x32xbf16>
    %46 = vector.shape_cast %45 : vector<1x1x4x32xbf16> to vector<4x32xbf16>
    %cst_68 = arith.constant dense<0.000000e+00> : vector<256x32xf32>
    %47 = tpu.matmul %44, %46, %cst_68 {dimension_numbers = #tpu.dot_dimension_numbers<[1], [0], [0], [1], [0, 0, 1, 1], [], []>} : vector<256x4xbf16>, vector<4x32xbf16>, vector<256x32xf32> -> vector<256x32xf32>
    %48 = arith.addf %42, %47 : vector<256x32xf32>
    %c0_69 = arith.constant 0 : index
    %c2_70 = arith.constant 2 : index
    %c2_71 = arith.constant 2 : index
    %c0_72 = arith.constant 0 : index
    %49 = vector.load %arg1[%c0_69, %c2_70, %c2_71, %c0_72] : memref<1x18x18x4xbf16, #tpu.memory_space<vmem>>, vector<1x16x16x4xbf16>
    %50 = vector.shape_cast %49 : vector<1x16x16x4xbf16> to vector<256x4xbf16>
    %c2_73 = arith.constant 2 : index
    %c2_74 = arith.constant 2 : index
    %c0_75 = arith.constant 0 : index
    %c0_76 = arith.constant 0 : index
    %51 = vector.load %arg2[%c2_73, %c2_74, %c0_75, %c0_76] : memref<3x3x4x32xbf16, #tpu.memory_space<vmem>>, vector<1x1x4x32xbf16>
    %52 = vector.shape_cast %51 : vector<1x1x4x32xbf16> to vector<4x32xbf16>
    %cst_77 = arith.constant dense<0.000000e+00> : vector<256x32xf32>
    %53 = tpu.matmul %50, %52, %cst_77 {dimension_numbers = #tpu.dot_dimension_numbers<[1], [0], [0], [1], [0, 0, 1, 1], [], []>} : vector<256x4xbf16>, vector<4x32xbf16>, vector<256x32xf32> -> vector<256x32xf32>
    %54 = arith.addf %48, %53 : vector<256x32xf32>
    %c0_78 = arith.constant 0 : index
    %c0_79 = arith.constant 0 : index
    %55 = vector.load %arg3[%c0_78, %c0_79] : memref<1x32xf32, #tpu.memory_space<vmem>>, vector<1x32xf32>
    %56 = vector.broadcast %55 : vector<1x32xf32> to vector<256x32xf32>
    %57 = arith.addf %54, %56 : vector<256x32xf32>
    %cst_80 = arith.constant 0.000000e+00 : f32
    %58 = vector.broadcast %cst_80 : f32 to vector<256x32xf32>
    %59 = arith.maximumf %57, %58 : vector<256x32xf32>
    %60 = vector.shape_cast %59 : vector<256x32xf32> to vector<1x16x16x32xf32>
    %61 = arith.truncf %60 : vector<1x16x16x32xf32> to vector<1x16x16x32xbf16>
    %c0_81 = arith.constant 0 : index
    %c0_82 = arith.constant 0 : index
    %c0_83 = arith.constant 0 : index
    %c0_84 = arith.constant 0 : index
    %62 = vector.load %arg9[%c0_81, %c0_82, %c0_83, %c0_84] : memref<1x16x16x32xbf16, #tpu.memory_space<vmem>>, vector<1x16x16x32xbf16>
    tpu.vector_store %arg9[%c0_81, %c0_82, %c0_83, %c0_84], %61 {strides = array<i32>} : memref<1x16x16x32xbf16, #tpu.memory_space<vmem>>, vector<1x16x16x32xbf16>,
    %c0_85 = arith.constant 0 : index
    %c0_86 = arith.constant 0 : index
    %c0_87 = arith.constant 0 : index
    %c0_88 = arith.constant 0 : index
    %63 = vector.load %arg9[%c0_85, %c0_86, %c0_87, %c0_88] : memref<1x16x16x32xbf16, #tpu.memory_space<vmem>>, vector<1x16x16x32xbf16>
    %64 = vector.shape_cast %63 : vector<1x16x16x32xbf16> to vector<1x8x2x16x32xbf16>
    %65 = vector.extract_strided_slice %64 {offsets = [0, 0, 0, 0, 0], sizes = [1, 8, 1, 16, 32], strides = [1, 1, 1, 1, 1]} : vector<1x8x2x16x32xbf16> to vector<1x8x1x16x32xbf16>
    %66 = vector.shape_cast %65 : vector<1x8x1x16x32xbf16> to vector<1x8x16x32xbf16>
    %67 = vector.extract_strided_slice %64 {offsets = [0, 0, 1, 0, 0], sizes = [1, 8, 1, 16, 32], strides = [1, 1, 1, 1, 1]} : vector<1x8x2x16x32xbf16> to vector<1x8x1x16x32xbf16>
    %68 = vector.shape_cast %67 : vector<1x8x1x16x32xbf16> to vector<1x8x16x32xbf16>
    %69 = arith.maximumf %66, %68 : vector<1x8x16x32xbf16>
    %70 = arith.extf %69 : vector<1x8x16x32xbf16> to vector<1x8x16x32xf32>
    %c0_89 = arith.constant 0 : index
    %c0_90 = arith.constant 0 : index
    %c0_91 = arith.constant 0 : index
    %c0_92 = arith.constant 0 : index
    %71 = vector.load %arg10[%c0_89, %c0_90, %c0_91, %c0_92] : memref<1x8x16x32xf32, #tpu.memory_space<vmem>>, vector<1x8x16x32xf32>
    tpu.vector_store %arg10[%c0_89, %c0_90, %c0_91, %c0_92], %70 {strides = array<i32>} : memref<1x8x16x32xf32, #tpu.memory_space<vmem>>, vector<1x8x16x32xf32>,
    %c0_93 = arith.constant 0 : index
    %c0_94 = arith.constant 0 : index
    %c0_95 = arith.constant 0 : index
    %c0_96 = arith.constant 0 : index
    %72 = tpu.strided_load %arg10[%c0_93, %c0_94, %c0_95, %c0_96] {strides = array<i32: 1, 1, 2, 1>} : memref<1x8x16x32xf32, #tpu.memory_space<vmem>>, vector<1x8x8x32xf32>
    %c0_97 = arith.constant 0 : index
    %c0_98 = arith.constant 0 : index
    %c1_99 = arith.constant 1 : index
    %c0_100 = arith.constant 0 : index
    %73 = tpu.strided_load %arg10[%c0_97, %c0_98, %c1_99, %c0_100] {strides = array<i32: 1, 1, 2, 1>} : memref<1x8x16x32xf32, #tpu.memory_space<vmem>>, vector<1x8x8x32xf32>
    %74 = arith.maximumf %72, %73 : vector<1x8x8x32xf32>
    %cst_101 = arith.constant 0.000000e+00 : f32
    %75 = vector.broadcast %cst_101 : f32 to vector<1x1x10x32xf32>
    %cst_102 = arith.constant 0.000000e+00 : f32
    %76 = vector.broadcast %cst_102 : f32 to vector<1x10x1x32xf32>
    %c0_103 = arith.constant 0 : index
    %c0_104 = arith.constant 0 : index
    %c0_105 = arith.constant 0 : index
    %c0_106 = arith.constant 0 : index
    %77 = vector.load %arg11[%c0_103, %c0_104, %c0_105, %c0_106] : memref<1x10x10x32xf32, #tpu.memory_space<vmem>>, vector<1x1x10x32xf32>
    tpu.vector_store %arg11[%c0_103, %c0_104, %c0_105, %c0_106], %75 {strides = array<i32>} : memref<1x10x10x32xf32, #tpu.memory_space<vmem>>, vector<1x1x10x32xf32>,
    %c0_107 = arith.constant 0 : index
    %c9 = arith.constant 9 : index
    %c0_108 = arith.constant 0 : index
    %c0_109 = arith.constant 0 : index
    %78 = vector.load %arg11[%c0_107, %c9, %c0_108, %c0_109] : memref<1x10x10x32xf32, #tpu.memory_space<vmem>>, vector<1x1x10x32xf32>
    tpu.vector_store %arg11[%c0_107, %c9, %c0_108, %c0_109], %75 {strides = array<i32>} : memref<1x10x10x32xf32, #tpu.memory_space<vmem>>, vector<1x1x10x32xf32>,
    %c0_110 = arith.constant 0 : index
    %c0_111 = arith.constant 0 : index
    %c0_112 = arith.constant 0 : index
    %c0_113 = arith.constant 0 : index
    %79 = vector.load %arg11[%c0_110, %c0_111, %c0_112, %c0_113] : memref<1x10x10x32xf32, #tpu.memory_space<vmem>>, vector<1x10x1x32xf32>
    tpu.vector_store %arg11[%c0_110, %c0_111, %c0_112, %c0_113], %76 {strides = array<i32>} : memref<1x10x10x32xf32, #tpu.memory_space<vmem>>, vector<1x10x1x32xf32>,
    %c0_114 = arith.constant 0 : index
    %c0_115 = arith.constant 0 : index
    %c9_116 = arith.constant 9 : index
    %c0_117 = arith.constant 0 : index
    %80 = vector.load %arg11[%c0_114, %c0_115, %c9_116, %c0_117] : memref<1x10x10x32xf32, #tpu.memory_space<vmem>>, vector<1x10x1x32xf32>
    tpu.vector_store %arg11[%c0_114, %c0_115, %c9_116, %c0_117], %76 {strides = array<i32>} : memref<1x10x10x32xf32, #tpu.memory_space<vmem>>, vector<1x10x1x32xf32>,
    %c0_118 = arith.constant 0 : index
    %c1_119 = arith.constant 1 : index
    %c1_120 = arith.constant 1 : index
    %c0_121 = arith.constant 0 : index
    %81 = vector.load %arg11[%c0_118, %c1_119, %c1_120, %c0_121] : memref<1x10x10x32xf32, #tpu.memory_space<vmem>>, vector<1x8x8x32xf32>
    tpu.vector_store %arg11[%c0_118, %c1_119, %c1_120, %c0_121], %74 {strides = array<i32>} : memref<1x10x10x32xf32, #tpu.memory_space<vmem>>, vector<1x8x8x32xf32>,
    %cst_122 = arith.constant 0.000000e+00 : f32
    %82 = vector.broadcast %cst_122 : f32 to vector<64x64xf32>
    %c0_123 = arith.constant 0 : index
    %c0_124 = arith.constant 0 : index
    %c0_125 = arith.constant 0 : index
    %c0_126 = arith.constant 0 : index
    %83 = vector.load %arg11[%c0_123, %c0_124, %c0_125, %c0_126] : memref<1x10x10x32xf32, #tpu.memory_space<vmem>>, vector<1x8x8x32xf32>
    %84 = vector.shape_cast %83 : vector<1x8x8x32xf32> to vector<64x32xf32>
    %85 = arith.truncf %84 : vector<64x32xf32> to vector<64x32xbf16>
    %c0_127 = arith.constant 0 : index
    %c0_128 = arith.constant 0 : index
    %c0_129 = arith.constant 0 : index
    %c0_130 = arith.constant 0 : index
    %86 = vector.load %arg4[%c0_127, %c0_128, %c0_129, %c0_130] : memref<3x3x32x64xbf16, #tpu.memory_space<vmem>>, vector<1x1x32x64xbf16>
    %87 = vector.shape_cast %86 : vector<1x1x32x64xbf16> to vector<32x64xbf16>
    %cst_131 = arith.constant dense<0.000000e+00> : vector<64x64xf32>
    %88 = tpu.matmul %85, %87, %cst_131 {dimension_numbers = #tpu.dot_dimension_numbers<[1], [0], [0], [1], [0, 0, 1, 1], [], []>} : vector<64x32xbf16>, vector<32x64xbf16>, vector<64x64xf32> -> vector<64x64xf32>
    %89 = arith.addf %82, %88 : vector<64x64xf32>
    %c0_132 = arith.constant 0 : index
    %c0_133 = arith.constant 0 : index
    %c1_134 = arith.constant 1 : index
    %c0_135 = arith.constant 0 : index
    %90 = vector.load %arg11[%c0_132, %c0_133, %c1_134, %c0_135] : memref<1x10x10x32xf32, #tpu.memory_space<vmem>>, vector<1x8x8x32xf32>
    %91 = vector.shape_cast %90 : vector<1x8x8x32xf32> to vector<64x32xf32>
    %92 = arith.truncf %91 : vector<64x32xf32> to vector<64x32xbf16>
    %c0_136 = arith.constant 0 : index
    %c1_137 = arith.constant 1 : index
    %c0_138 = arith.constant 0 : index
    %c0_139 = arith.constant 0 : index
    %93 = vector.load %arg4[%c0_136, %c1_137, %c0_138, %c0_139] : memref<3x3x32x64xbf16, #tpu.memory_space<vmem>>, vector<1x1x32x64xbf16>
    %94 = vector.shape_cast %93 : vector<1x1x32x64xbf16> to vector<32x64xbf16>
    %cst_140 = arith.constant dense<0.000000e+00> : vector<64x64xf32>
    %95 = tpu.matmul %92, %94, %cst_140 {dimension_numbers = #tpu.dot_dimension_numbers<[1], [0], [0], [1], [0, 0, 1, 1], [], []>} : vector<64x32xbf16>, vector<32x64xbf16>, vector<64x64xf32> -> vector<64x64xf32>
    %96 = arith.addf %89, %95 : vector<64x64xf32>
    %c0_141 = arith.constant 0 : index
    %c0_142 = arith.constant 0 : index
    %c2_143 = arith.constant 2 : index
    %c0_144 = arith.constant 0 : index
    %97 = vector.load %arg11[%c0_141, %c0_142, %c2_143, %c0_144] : memref<1x10x10x32xf32, #tpu.memory_space<vmem>>, vector<1x8x8x32xf32>
    %98 = vector.shape_cast %97 : vector<1x8x8x32xf32> to vector<64x32xf32>
    %99 = arith.truncf %98 : vector<64x32xf32> to vector<64x32xbf16>
    %c0_145 = arith.constant 0 : index
    %c2_146 = arith.constant 2 : index
    %c0_147 = arith.constant 0 : index
    %c0_148 = arith.constant 0 : index
    %100 = vector.load %arg4[%c0_145, %c2_146, %c0_147, %c0_148] : memref<3x3x32x64xbf16, #tpu.memory_space<vmem>>, vector<1x1x32x64xbf16>
    %101 = vector.shape_cast %100 : vector<1x1x32x64xbf16> to vector<32x64xbf16>
    %cst_149 = arith.constant dense<0.000000e+00> : vector<64x64xf32>
    %102 = tpu.matmul %99, %101, %cst_149 {dimension_numbers = #tpu.dot_dimension_numbers<[1], [0], [0], [1], [0, 0, 1, 1], [], []>} : vector<64x32xbf16>, vector<32x64xbf16>, vector<64x64xf32> -> vector<64x64xf32>
    %103 = arith.addf %96, %102 : vector<64x64xf32>
    %c0_150 = arith.constant 0 : index
    %c1_151 = arith.constant 1 : index
    %c0_152 = arith.constant 0 : index
    %c0_153 = arith.constant 0 : index
    %104 = vector.load %arg11[%c0_150, %c1_151, %c0_152, %c0_153] : memref<1x10x10x32xf32, #tpu.memory_space<vmem>>, vector<1x8x8x32xf32>
    %105 = vector.shape_cast %104 : vector<1x8x8x32xf32> to vector<64x32xf32>
    %106 = arith.truncf %105 : vector<64x32xf32> to vector<64x32xbf16>
    %c1_154 = arith.constant 1 : index
    %c0_155 = arith.constant 0 : index
    %c0_156 = arith.constant 0 : index
    %c0_157 = arith.constant 0 : index
    %107 = vector.load %arg4[%c1_154, %c0_155, %c0_156, %c0_157] : memref<3x3x32x64xbf16, #tpu.memory_space<vmem>>, vector<1x1x32x64xbf16>
    %108 = vector.shape_cast %107 : vector<1x1x32x64xbf16> to vector<32x64xbf16>
    %cst_158 = arith.constant dense<0.000000e+00> : vector<64x64xf32>
    %109 = tpu.matmul %106, %108, %cst_158 {dimension_numbers = #tpu.dot_dimension_numbers<[1], [0], [0], [1], [0, 0, 1, 1], [], []>} : vector<64x32xbf16>, vector<32x64xbf16>, vector<64x64xf32> -> vector<64x64xf32>
    %110 = arith.addf %103, %109 : vector<64x64xf32>
    %c0_159 = arith.constant 0 : index
    %c1_160 = arith.constant 1 : index
    %c1_161 = arith.constant 1 : index
    %c0_162 = arith.constant 0 : index
    %111 = vector.load %arg11[%c0_159, %c1_160, %c1_161, %c0_162] : memref<1x10x10x32xf32, #tpu.memory_space<vmem>>, vector<1x8x8x32xf32>
    %112 = vector.shape_cast %111 : vector<1x8x8x32xf32> to vector<64x32xf32>
    %113 = arith.truncf %112 : vector<64x32xf32> to vector<64x32xbf16>
    %c1_163 = arith.constant 1 : index
    %c1_164 = arith.constant 1 : index
    %c0_165 = arith.constant 0 : index
    %c0_166 = arith.constant 0 : index
    %114 = vector.load %arg4[%c1_163, %c1_164, %c0_165, %c0_166] : memref<3x3x32x64xbf16, #tpu.memory_space<vmem>>, vector<1x1x32x64xbf16>
    %115 = vector.shape_cast %114 : vector<1x1x32x64xbf16> to vector<32x64xbf16>
    %cst_167 = arith.constant dense<0.000000e+00> : vector<64x64xf32>
    %116 = tpu.matmul %113, %115, %cst_167 {dimension_numbers = #tpu.dot_dimension_numbers<[1], [0], [0], [1], [0, 0, 1, 1], [], []>} : vector<64x32xbf16>, vector<32x64xbf16>, vector<64x64xf32> -> vector<64x64xf32>
    %117 = arith.addf %110, %116 : vector<64x64xf32>
    %c0_168 = arith.constant 0 : index
    %c1_169 = arith.constant 1 : index
    %c2_170 = arith.constant 2 : index
    %c0_171 = arith.constant 0 : index
    %118 = vector.load %arg11[%c0_168, %c1_169, %c2_170, %c0_171] : memref<1x10x10x32xf32, #tpu.memory_space<vmem>>, vector<1x8x8x32xf32>
    %119 = vector.shape_cast %118 : vector<1x8x8x32xf32> to vector<64x32xf32>
    %120 = arith.truncf %119 : vector<64x32xf32> to vector<64x32xbf16>
    %c1_172 = arith.constant 1 : index
    %c2_173 = arith.constant 2 : index
    %c0_174 = arith.constant 0 : index
    %c0_175 = arith.constant 0 : index
    %121 = vector.load %arg4[%c1_172, %c2_173, %c0_174, %c0_175] : memref<3x3x32x64xbf16, #tpu.memory_space<vmem>>, vector<1x1x32x64xbf16>
    %122 = vector.shape_cast %121 : vector<1x1x32x64xbf16> to vector<32x64xbf16>
    %cst_176 = arith.constant dense<0.000000e+00> : vector<64x64xf32>
    %123 = tpu.matmul %120, %122, %cst_176 {dimension_numbers = #tpu.dot_dimension_numbers<[1], [0], [0], [1], [0, 0, 1, 1], [], []>} : vector<64x32xbf16>, vector<32x64xbf16>, vector<64x64xf32> -> vector<64x64xf32>
    %124 = arith.addf %117, %123 : vector<64x64xf32>
    %c0_177 = arith.constant 0 : index
    %c2_178 = arith.constant 2 : index
    %c0_179 = arith.constant 0 : index
    %c0_180 = arith.constant 0 : index
    %125 = vector.load %arg11[%c0_177, %c2_178, %c0_179, %c0_180] : memref<1x10x10x32xf32, #tpu.memory_space<vmem>>, vector<1x8x8x32xf32>
    %126 = vector.shape_cast %125 : vector<1x8x8x32xf32> to vector<64x32xf32>
    %127 = arith.truncf %126 : vector<64x32xf32> to vector<64x32xbf16>
    %c2_181 = arith.constant 2 : index
    %c0_182 = arith.constant 0 : index
    %c0_183 = arith.constant 0 : index
    %c0_184 = arith.constant 0 : index
    %128 = vector.load %arg4[%c2_181, %c0_182, %c0_183, %c0_184] : memref<3x3x32x64xbf16, #tpu.memory_space<vmem>>, vector<1x1x32x64xbf16>
    %129 = vector.shape_cast %128 : vector<1x1x32x64xbf16> to vector<32x64xbf16>
    %cst_185 = arith.constant dense<0.000000e+00> : vector<64x64xf32>
    %130 = tpu.matmul %127, %129, %cst_185 {dimension_numbers = #tpu.dot_dimension_numbers<[1], [0], [0], [1], [0, 0, 1, 1], [], []>} : vector<64x32xbf16>, vector<32x64xbf16>, vector<64x64xf32> -> vector<64x64xf32>
    %131 = arith.addf %124, %130 : vector<64x64xf32>
    %c0_186 = arith.constant 0 : index
    %c2_187 = arith.constant 2 : index
    %c1_188 = arith.constant 1 : index
    %c0_189 = arith.constant 0 : index
    %132 = vector.load %arg11[%c0_186, %c2_187, %c1_188, %c0_189] : memref<1x10x10x32xf32, #tpu.memory_space<vmem>>, vector<1x8x8x32xf32>
    %133 = vector.shape_cast %132 : vector<1x8x8x32xf32> to vector<64x32xf32>
    %134 = arith.truncf %133 : vector<64x32xf32> to vector<64x32xbf16>
    %c2_190 = arith.constant 2 : index
    %c1_191 = arith.constant 1 : index
    %c0_192 = arith.constant 0 : index
    %c0_193 = arith.constant 0 : index
    %135 = vector.load %arg4[%c2_190, %c1_191, %c0_192, %c0_193] : memref<3x3x32x64xbf16, #tpu.memory_space<vmem>>, vector<1x1x32x64xbf16>
    %136 = vector.shape_cast %135 : vector<1x1x32x64xbf16> to vector<32x64xbf16>
    %cst_194 = arith.constant dense<0.000000e+00> : vector<64x64xf32>
    %137 = tpu.matmul %134, %136, %cst_194 {dimension_numbers = #tpu.dot_dimension_numbers<[1], [0], [0], [1], [0, 0, 1, 1], [], []>} : vector<64x32xbf16>, vector<32x64xbf16>, vector<64x64xf32> -> vector<64x64xf32>
    %138 = arith.addf %131, %137 : vector<64x64xf32>
    %c0_195 = arith.constant 0 : index
    %c2_196 = arith.constant 2 : index
    %c2_197 = arith.constant 2 : index
    %c0_198 = arith.constant 0 : index
    %139 = vector.load %arg11[%c0_195, %c2_196, %c2_197, %c0_198] : memref<1x10x10x32xf32, #tpu.memory_space<vmem>>, vector<1x8x8x32xf32>
    %140 = vector.shape_cast %139 : vector<1x8x8x32xf32> to vector<64x32xf32>
    %141 = arith.truncf %140 : vector<64x32xf32> to vector<64x32xbf16>
    %c2_199 = arith.constant 2 : index
    %c2_200 = arith.constant 2 : index
    %c0_201 = arith.constant 0 : index
    %c0_202 = arith.constant 0 : index
    %142 = vector.load %arg4[%c2_199, %c2_200, %c0_201, %c0_202] : memref<3x3x32x64xbf16, #tpu.memory_space<vmem>>, vector<1x1x32x64xbf16>
    %143 = vector.shape_cast %142 : vector<1x1x32x64xbf16> to vector<32x64xbf16>
    %cst_203 = arith.constant dense<0.000000e+00> : vector<64x64xf32>
    %144 = tpu.matmul %141, %143, %cst_203 {dimension_numbers = #tpu.dot_dimension_numbers<[1], [0], [0], [1], [0, 0, 1, 1], [], []>} : vector<64x32xbf16>, vector<32x64xbf16>, vector<64x64xf32> -> vector<64x64xf32>
    %145 = arith.addf %138, %144 : vector<64x64xf32>
    %c0_204 = arith.constant 0 : index
    %c0_205 = arith.constant 0 : index
    %146 = vector.load %arg5[%c0_204, %c0_205] : memref<1x64xf32, #tpu.memory_space<vmem>>, vector<1x64xf32>
    %147 = vector.broadcast %146 : vector<1x64xf32> to vector<64x64xf32>
    %148 = arith.addf %145, %147 : vector<64x64xf32>
    %cst_206 = arith.constant 0.000000e+00 : f32
    %149 = vector.broadcast %cst_206 : f32 to vector<64x64xf32>
    %150 = arith.maximumf %148, %149 : vector<64x64xf32>
    %151 = vector.shape_cast %150 : vector<64x64xf32> to vector<1x8x8x64xf32>
    %c0_207 = arith.constant 0 : index
    %c0_208 = arith.constant 0 : index
    %c0_209 = arith.constant 0 : index
    %c0_210 = arith.constant 0 : index
    %152 = vector.load %arg12[%c0_207, %c0_208, %c0_209, %c0_210] : memref<1x8x8x64xf32, #tpu.memory_space<vmem>>, vector<1x8x8x64xf32>
    tpu.vector_store %arg12[%c0_207, %c0_208, %c0_209, %c0_210], %151 {strides = array<i32>} : memref<1x8x8x64xf32, #tpu.memory_space<vmem>>, vector<1x8x8x64xf32>,
    %c0_211 = arith.constant 0 : index
    %c0_212 = arith.constant 0 : index
    %c0_213 = arith.constant 0 : index
    %c0_214 = arith.constant 0 : index
    %153 = vector.load %arg12[%c0_211, %c0_212, %c0_213, %c0_214] : memref<1x8x8x64xf32, #tpu.memory_space<vmem>>, vector<1x8x8x64xf32>
    %154 = vector.shape_cast %153 : vector<1x8x8x64xf32> to vector<1x4x2x8x64xf32>
    %155 = vector.extract_strided_slice %154 {offsets = [0, 0, 0, 0, 0], sizes = [1, 4, 1, 8, 64], strides = [1, 1, 1, 1, 1]} : vector<1x4x2x8x64xf32> to vector<1x4x1x8x64xf32>
    %156 = vector.shape_cast %155 : vector<1x4x1x8x64xf32> to vector<1x4x8x64xf32>
    %157 = vector.extract_strided_slice %154 {offsets = [0, 0, 1, 0, 0], sizes = [1, 4, 1, 8, 64], strides = [1, 1, 1, 1, 1]} : vector<1x4x2x8x64xf32> to vector<1x4x1x8x64xf32>
    %158 = vector.shape_cast %157 : vector<1x4x1x8x64xf32> to vector<1x4x8x64xf32>
    %159 = arith.maximumf %156, %158 : vector<1x4x8x64xf32>
    %c0_215 = arith.constant 0 : index
    %c0_216 = arith.constant 0 : index
    %c0_217 = arith.constant 0 : index
    %c0_218 = arith.constant 0 : index
    %160 = vector.load %arg13[%c0_215, %c0_216, %c0_217, %c0_218] : memref<1x4x8x64xf32, #tpu.memory_space<vmem>>, vector<1x4x8x64xf32>
    tpu.vector_store %arg13[%c0_215, %c0_216, %c0_217, %c0_218], %159 {strides = array<i32>} : memref<1x4x8x64xf32, #tpu.memory_space<vmem>>, vector<1x4x8x64xf32>,
    %c0_219 = arith.constant 0 : index
    %c0_220 = arith.constant 0 : index
    %c0_221 = arith.constant 0 : index
    %c0_222 = arith.constant 0 : index
    %161 = tpu.strided_load %arg13[%c0_219, %c0_220, %c0_221, %c0_222] {strides = array<i32: 1, 1, 2, 1>} : memref<1x4x8x64xf32, #tpu.memory_space<vmem>>, vector<1x4x4x64xf32>
    %c0_223 = arith.constant 0 : index
    %c0_224 = arith.constant 0 : index
    %c1_225 = arith.constant 1 : index
    %c0_226 = arith.constant 0 : index
    %162 = tpu.strided_load %arg13[%c0_223, %c0_224, %c1_225, %c0_226] {strides = array<i32: 1, 1, 2, 1>} : memref<1x4x8x64xf32, #tpu.memory_space<vmem>>, vector<1x4x4x64xf32>
    %163 = arith.maximumf %161, %162 : vector<1x4x4x64xf32>
    %cst_227 = arith.constant dense<0.000000e+00> : vector<1x4x64xf32>
    %164 = vector.multi_reduction <add>, %163, %cst_227 [1] : vector<1x4x4x64xf32> to vector<1x4x64xf32>
    %cst_228 = arith.constant dense<0.000000e+00> : vector<1x64xf32>
    %165 = vector.multi_reduction <add>, %164, %cst_228 [1] : vector<1x4x64xf32> to vector<1x64xf32>
    %c0_229 = arith.constant 0 : index
    %c0_230 = arith.constant 0 : index
    %166 = vector.load %arg6[%c0_229, %c0_230] : memref<64x128xf32, #tpu.memory_space<vmem>>, vector<64x128xf32>
    %cst_231 = arith.constant dense<0.000000e+00> : vector<1x128xf32>
    %167 = tpu.matmul %165, %166, %cst_231 {dimension_numbers = #tpu.dot_dimension_numbers<[1], [0], [0], [1], [0, 0, 1, 1], [], []>} : vector<1x64xf32>, vector<64x128xf32>, vector<1x128xf32> -> vector<1x128xf32>
    %c0_232 = arith.constant 0 : index
    %c0_233 = arith.constant 0 : index
    %168 = vector.load %arg7[%c0_232, %c0_233] : memref<1x128xf32, #tpu.memory_space<vmem>>, vector<1x128xf32>
    %169 = arith.addf %167, %168 : vector<1x128xf32>
    %c0_234 = arith.constant 0 : index
    %c0_235 = arith.constant 0 : index
    %c0_236 = arith.constant 0 : index
    %170 = vector.load %arg8[%c0_234, %c0_235, %c0_236] : memref<1x1x128xf32, #tpu.memory_space<vmem>>, vector<1x1x128xf32>
    %171 = vector.shape_cast %170 : vector<1x1x128xf32> to vector<1x128xf32>
    %172 = vector.shape_cast %169 : vector<1x128xf32> to vector<1x1x128xf32>
    tpu.vector_store %arg8[%c0_234, %c0_235, %c0_236], %172 {strides = array<i32>} : memref<1x1x128xf32, #tpu.memory_space<vmem>>, vector<1x1x128xf32>,
    return
  }
  func.func @transform_0(%arg0: i32) -> (i32, i32, i32, i32) {
    %c0_i32 = arith.constant 0 : i32
    %c0_i32_0 = arith.constant 0 : i32
    %c0_i32_1 = arith.constant 0 : i32
    %c0_i32_2 = arith.constant 0 : i32
    return %arg0, %c0_i32, %c0_i32_0, %c0_i32_1 : i32, i32, i32, i32
  }
  func.func @transform_1(%arg0: i32) -> (i32, i32, i32, i32) {
    %c0_i32 = arith.constant 0 : i32
    %c0_i32_0 = arith.constant 0 : i32
    %c0_i32_1 = arith.constant 0 : i32
    %c0_i32_2 = arith.constant 0 : i32
    %c0_i32_3 = arith.constant 0 : i32
    return %c0_i32, %c0_i32_0, %c0_i32_1, %c0_i32_2 : i32, i32, i32, i32
  }
  func.func @transform_2(%arg0: i32) -> (i32, i32) {
    %c0_i32 = arith.constant 0 : i32
    %c0_i32_0 = arith.constant 0 : i32
    %c0_i32_1 = arith.constant 0 : i32
    return %c0_i32, %c0_i32_0 : i32, i32
  }
  func.func @transform_3(%arg0: i32) -> (i32, i32, i32, i32) {
    %c0_i32 = arith.constant 0 : i32
    %c0_i32_0 = arith.constant 0 : i32
    %c0_i32_1 = arith.constant 0 : i32
    %c0_i32_2 = arith.constant 0 : i32
    %c0_i32_3 = arith.constant 0 : i32
    return %c0_i32, %c0_i32_0, %c0_i32_1, %c0_i32_2 : i32, i32, i32, i32
  }
  func.func @transform_4(%arg0: i32) -> (i32, i32) {
    %c0_i32 = arith.constant 0 : i32
    %c0_i32_0 = arith.constant 0 : i32
    %c0_i32_1 = arith.constant 0 : i32
    return %c0_i32, %c0_i32_0 : i32, i32
  }
  func.func @transform_5(%arg0: i32) -> (i32, i32) {
    %c0_i32 = arith.constant 0 : i32
    %c0_i32_0 = arith.constant 0 : i32
    %c0_i32_1 = arith.constant 0 : i32
    return %c0_i32, %c0_i32_0 : i32, i32
  }
  func.func @transform_6(%arg0: i32) -> (i32, i32) {
    %c0_i32 = arith.constant 0 : i32
    %c0_i32_0 = arith.constant 0 : i32
    %c0_i32_1 = arith.constant 0 : i32
    return %c0_i32, %c0_i32_0 : i32, i32
  }
  func.func @transform_7(%arg0: i32) -> (i32, i32, i32) {
    %c0_i32 = arith.constant 0 : i32
    %c0_i32_0 = arith.constant 0 : i32
    %c0_i32_1 = arith.constant 0 : i32
    return %arg0, %c0_i32, %c0_i32_0 : i32, i32, i32
  }
}

</mosaic_0001>

<bundles_post_ra>
// kernel: tpu_custom_call.1
= control target key start
LH: loop header
LB: loop body
LE: loop exit
PB: predicated region body
PF: predicated region fallthrough
CT: control target
= control target key end

     0   :  { %12 = vsyncpa [#allocation8], 0  ;;  %s10360_s0 = inlined_call_operand.vmem [shape: bf16[2,18,18,4], index: 0, kind: input, shape index: {}]   ;;  %s10361_s1 = inlined_call_operand.vmem [shape: bf16[3,3,4,32], index: 1, kind: input, shape index: {}]   ;;  %s10362_s2 = inlined_call_operand.vmem [shape: f32[1,32], index: 2, kind: input, shape index: {}]   ;;  %s10363_s3 = inlined_call_operand.vmem [shape: bf16[3,3,32,64], index: 3, kind: input, shape index: {}]   ;;  %s10364_s4 = inlined_call_operand.vmem [shape: f32[1,64], index: 4, kind: input, shape index: {}]   ;;  %s10365_s5 = inlined_call_operand.vmem [shape: f32[64,128], index: 5, kind: input, shape index: {}]   ;;  %s10366_s6 = inlined_call_operand.vmem [shape: f32[1,128], index: 6, kind: input, shape index: {}]   ;;  %s10367_s7 = inlined_call_operand.hbm [shape: f32[2,1,128], index: 7, kind: output, shape index: {}]  }
   0x1   :  { %14 = vsyncpa [#allocation8 + $0x1], 0  ;;  %s8204_s24 = smov 0   ;;  %s8206_s25 = smov 0  }
   0x2   :  { %s8208_s26 = smov 0   ;;  %s8210_s27 = smov 0  }
   0x3 LB: > { %s8225_s28 = sadd.s32 4294967295, %s8158_s27   ;;  %s6314_s29 = sadd.s32 4294967294, %s8158_s27   ;;  %s8158_s27 = sphi %s8210_s27, %s10461_s27   ;;  %s8154_s26 = sphi %s8208_s26, %s10460_s26   ;;  %s8150_s25 = sphi %s8206_s25, %s10459_s25   ;;  %s8146_s24 = sphi %s8204_s24, %s10458_s24  }
   0x4   : > { %s8229_s30 = sadd.s32 1, %s8158_s27   ;;  %s179_s8 = sadd.s32 1, %s8154_s26 }
   0x5   : > { %s176_s9 = ssub.s32 %s8158_s27, %s8229_s30  ;;  %p189_p0 = scmp.ne.s32.totalorder %s8154_s26, %s8150_s25 }
   0x6   : > { %p177_p1 = scmp.eq.s32.totalorder %s176_s9, 0  ;;  %p190_p2 = scmp.eq.s32.totalorder %s8225_s28, 1 }
   0x7   : > { %p195_p3 = scmp.ne.s32.totalorder %s8150_s25, %s8146_s24  ;;  %p196_p4 = scmp.eq.s32.totalorder %s6314_s29, 1 }
   0x8   : > { %s8240_s10 = scalar_select %p177_p1, %s8154_s26, %s179_s8  }
   0x9   : > { %p8242_p5 = por %p190_p2, %p189_p0  ;;  %p8246_p6 = por %p196_p4, %p195_p3 }
   0xa   : > { %p6317_p7 = scmp.ge.s32.totalorder %s8158_s27, 1  ;;  %p240_p8 = scmp.lt.s32.totalorder %s8158_s27, 3 }
   0xc   : > { %p241_p9 = pnand %p6317_p7, %p240_p8 }
   0xe   : > { %244 = sbr.rel (%p241_p9) target bundleno = 1290 (0x50a), region = 48 }
  0x15   : > { %vm812_vm0 = vcmask 1041408   ;;  %v6465_v0 = vld [vmem:[%s10361_s1 + $0x6] sm:$0x3]  ;;  %p271_p10 = scmp.lt.s32.totalorder %s8225_s28, 1  ;;  %v6546_v2 = vld [vmem:[%s10361_s1 + $0x8] sm:$0x3] }
  0x16   : > { %7933 = vmatprep.subr.msk.bf16.mxu0 %vm812_vm0, %v6465_v0  ;;  %v8258_v1 = vsel %vm812_vm0, %v6465_v0, 0  ;;  %v6319_v3 = vld [vmem:[%s10361_s1 + $0x2] sm:$0x3]  ;;  %v309_v5 = vld [vmem:[%s10361_s1] sm:$0x3]  ;;  %vm763_vm1 = vcmask 31744  }
  0x17   : > { %10391 = vst [vmem:[#allocation10_spill] sm:$0xff] %v8258_v1  ;;  %7266 = vmatpush3.bf16.msra.mxu0 %v8258_v1  ;;  %s272_s19 = scalar_select %p271_p10, %s8225_s28, 1  ;;  %7930 = vmatprep.subr.msk.bf16.mxu1 %vm812_vm0, %v6319_v3  ;;  %v814_v4 = vsel %vm812_vm0, %v6319_v3, 0  ;;  %v6611_v6 = vld [vmem:[%s10361_s1 + $0xa] sm:$0x3]  ;;  %v2616_v9 = vsel %vm812_vm0, %v6546_v2, 0 }
  0x18   : > { %7935 = vmatprep.subr.msk.bf16.mxu0 %vm812_vm0, %v6546_v2  ;;  %7164 = vmatpush3.bf16.msra.mxu1 %v814_v4  ;;  %vm326_vm2 = vsmask.f32 3328  ;;  %vm327_vm3 = vsmask.f32 7440  ;;  %v8290_v11 = vsel %vm812_vm0, %v6611_v6, 0  ;;  %v8325_v41 = vsel %vm812_vm0, %v309_v5, 0 }
  0x19   : > { %s7940_s22 = smul.u32 216, %s272_s19  ;;  %7931 = vmatprep.subr.msk.bf16.mxu1 %vm812_vm0, %v309_v5  ;;  %vm8320_vm4 = vmor %vm326_vm2, %vm327_vm3  ;;  %vm1317_vm5 = vcmask 1042432   ;;  %vm1318_vm6 = vcmask 1046532   ;;  %vm4923_vm8 = vcmask 261120   ;;  %vm5036_vm9 = vcmask 254976   ;;  %s269_s29 = sand.u32 1, %s8150_s25  }
  0x1a   : > { %vm8795_vm7 = vmor %vm1317_vm5, %vm1318_vm6  ;;  %vm5041_vm10 = vcmask 253952   ;;  %vm8162_vm11 = vmmov 0   ;;  %vm6104_vm12 = vcmask 523264   ;;  %vm6148_vm13 = vcmask 519168   ;;  %s270_s14 = scalar_lea.vmem [#allocation7], %s269_s29  ;;  %s6247_s19 = scalar_lea.sflag [#allocation8], %s269_s29 }
  0x1b   : > { %s8281_s13 = scalar_lea.vmem %s10360_s0, %s7940_s22  ;;  %s6259_s15 = sshll.u32 %s270_s14, 4  ;;  %s10320_s15 = int_to_ptr.vmem [resolvable:$true] %s6259_s15 }
  0x1c   : > { %v7983_v7 = vld [vmem:[%s8281_s13 + $0xc] sm:$0xff]   ;;  %v7984_v8 = vld [vmem:[%s8281_s13 + $0x18] sm:$0xff]   ;;  %v7985_v10 = vld [vmem:[%s8281_s13 + $0x24] sm:$0xff]   ;;  %s8096_s20 = scalar_lea.vmem %s10320_s15, 16 }
  0x1d   : > { %7267 = vmatprep.mubr.msk.bf16.mxu0 %vm763_vm1, %v7983_v7  ;;  %v8294_v12 = vld [vmem:[%s8281_s13] sm:$0xf]  ;;  %v8297_v13 = vld [vmem:[%s8281_s13 + $0x4] sm:$0xf]  ;;  %v310_v14 = vld [vmem:[%s8281_s13 + $0x8] sm:$0x1]  ;;  %p8097_p11 = scmp.ne.s32.totalorder %s10320_s15, %s8096_s20 }
  0x1e   : > { %7268 = vmatmul.mubr.msk.bf16.vlgmr.msra.gmra.mrb[0].mxu0 %vm763_vm1, %v7984_v8  ;;  %v330_v15 = vshrl.u32 %v8294_v12, 16  ;;  %v333_v16 = vshll.u32 %v8294_v12, 16  ;;  %v339_v17 = vshll.u32 %v8297_v13, 16  ;;  %v343_v18 = vshrl.u32 %v8297_v13, 16  ;;  %v8305_v19 = vld [vmem:[%s8281_s13 + $0xc] sm:$0xf] }
  0x1f   : > { %7300 = vmatpush3.bf16.msra.mxu0 %v2616_v9  ;;  %7271 = vmatprep.mubr.msk.bf16.mxu0 %vm763_vm1, %v7985_v10  ;;  %v7986_v20 = vld [vmem:[%s8281_s13 + $0x30] sm:$0xff]   ;;  %v349_v21 = vshll.u32 %v310_v14, 16  ;;  %v354_v29 = vshrl.u32 %v8305_v19, 16  ;;  %v357_v30 = vshll.u32 %v8305_v19, 16  ;;  %v7987_v36 = vld [vmem:[%s8281_s13 + $0x3c] sm:$0xff]   ;;  %v6352_v46 = vcombine.low %v8294_v12, %v8297_v13  ;;  %v7988_v61 = vld [vmem:[%s8281_s13 + $0x48] sm:$0xff]   ;;  %p8098_p12 = pnand %p8097_p11, %p8242_p5 }
  0x20   : > { %7936 = vmatprep.subr.msk.bf16.mxu0 %vm812_vm0, %v6611_v6  ;;  %v8310_v22 = vld [vmem:[%s8281_s13 + $0x10] sm:$0xf]  ;;  %v311_v23 = vld [vmem:[%s8281_s13 + $0x14] sm:$0x1]  ;;  %v332_v24 = vrot.slane %v330_v15, 4  ;;  %v335_v25 = vrot.slane %v333_v16, 5 }
  0x21   : > { %v341_v26 = vrot.slane %v339_v17, 5  ;;  %v345_v27 = vrot.slane %v343_v18, 4  ;;  %v351_v28 = vrot.slane %v349_v21, 5  ;;  %v363_v31 = vshll.u32 %v8310_v22, 16  ;;  %v281_v45 = vld [vmem:[%s8281_s13 + $0x18] sm:$0xf]  ;;  %p8099_p13 = pneg %p8098_p12 }
  0x22   : > { %v336_v32 = vor.u32 %v335_v25, %v332_v24  ;;  %v367_v34 = vshrl.u32 %v8310_v22, 16  ;;  %v373_v35 = vshll.u32 %v311_v23, 16  ;;  %v356_v38 = vrot.slane %v354_v29, 4  ;;  %v282_v49 = vld [vmem:[%s8281_s13 + $0x1c] sm:$0xf]  ;;  %v7989_v10 = vld [vmem:[%s8281_s13 + $0x54] sm:$0xff]  }
  0x23   : > { %v346_v33 = vor.u32 %v345_v27, %v341_v26  ;;  %v359_v39 = vrot.slane %v357_v30, 5  ;;  %v365_v40 = vrot.slane %v363_v31, 5  ;;  %v312_v50 = vld [vmem:[%s8281_s13 + $0x20] sm:$0x1]  ;;  %v378_v51 = vshrl.u32 %v281_v45, 16 }
  0x24   : > { %v337_v42 = vrot.slane %v336_v32, 4  ;;  %v369_v44 = vrot.slane %v367_v34, 4  ;;  %v375_v48 = vrot.slane %v373_v35, 5  ;;  %v6353_v52 = vcombine.low %v8305_v19, %v8310_v22  ;;  %v283_v57 = vld [vmem:[%s8281_s13 + $0x24] sm:$0xf] }
  0x25   : > { %v347_v43 = vrot.slane %v346_v33, 4  ;;  %v360_v47 = vor.u32 %v359_v39, %v356_v38  ;;  %v381_v56 = vshll.u32 %v281_v45, 16  ;;  %v284_v58 = vld [vmem:[%s8281_s13 + $0x28] sm:$0xf]  ;;  %v380_v62 = vrot.slane %v378_v51, 4 }
  0x26   : > { %7272 = vmatmul.mubr.msk.bf16.gmra.mrb[4].mxu0 %vm763_vm1, %v7986_v20  ;;  %v342_v53 = vsel %vm8320_vm4, %v337_v42, %v341_v26  ;;  %v370_v55 = vor.u32 %v369_v44, %v365_v40  ;;  %v387_v63 = vshll.u32 %v282_v49, 16  ;;  %v313_v0 = vld [vmem:[%s8281_s13 + $0x2c] sm:$0x1]  ;;  %v391_v4 = vshrl.u32 %v282_v49, 16  ;;  %v285_v24 = vld [vmem:[%s8281_s13 + $0x30] sm:$0xf] }
  0x27   : > { %7275 = vmatprep.mubr.msk.bf16.mxu0 %vm763_vm1, %v7987_v36  ;;  %v352_v54 = vsel %vm8320_vm4, %v347_v43, %v351_v28  ;;  %v361_v60 = vrot.slane %v360_v47, 4  ;;  %v383_v3 = vrot.slane %v381_v56, 5  ;;  %v397_v5 = vshll.u32 %v312_v50, 16  ;;  %v286_v29 = vld [vmem:[%s8281_s13 + $0x34] sm:$0xf] }
  0x28   : > { %v6320_v59 = vcombine.low %v342_v53, %v352_v54  ;;  %v371_v2 = vrot.slane %v370_v55, 4  ;;  %v389_v7 = vrot.slane %v387_v63, 5  ;;  %v402_v8 = vshrl.u32 %v283_v57, 16  ;;  %v314_v32 = vld [vmem:[%s8281_s13 + $0x38] sm:$0x1] }
  0x29   : > { %v366_v6 = vsel %vm8320_vm4, %v361_v60, %v365_v40  ;;  %v405_v9 = vshll.u32 %v283_v57, 16  ;;  %v384_v15 = vor.u32 %v383_v3, %v380_v62  ;;  %v393_v16 = vrot.slane %v391_v4, 4  ;;  %v7990_v40 = vld [vmem:[%s8281_s13 + $0x60] sm:$0xff]   ;;  %v287_v42 = vld [vmem:[%s8281_s13 + $0x3c] sm:$0xf] }
  0x2a   : > { %7165 = vmatprep.mubr.msk.bf16.mxu1 %vm763_vm1, %v6320_v59  ;;  %v376_v14 = vsel %vm8320_vm4, %v371_v2, %v375_v48  ;;  %v399_v17 = vrot.slane %v397_v5, 5  ;;  %v404_v20 = vrot.slane %v402_v8, 4  ;;  %v411_v23 = vshll.u32 %v284_v58, 16  ;;  %v288_v48 = vld [vmem:[%s8281_s13 + $0x40] sm:$0xf] }
  0x2b   : > { %v6321_v18 = vcombine.low %v366_v6, %v376_v14  ;;  %v407_v21 = vrot.slane %v405_v9, 5  ;;  %v385_v25 = vrot.slane %v384_v15, 4  ;;  %v394_v26 = vor.u32 %v393_v16, %v389_v7  ;;  %v315_v54 = vld [vmem:[%s8281_s13 + $0x44] sm:$0x1]  ;;  %v289_v4 = vld [vmem:[%s8281_s13 + $0x48] sm:$0xf] }
  0x2c   : > { %v415_v27 = vshrl.u32 %v284_v58, 16  ;;  %v421_v28 = vshll.u32 %v313_v0, 16  ;;  %v413_v31 = vrot.slane %v411_v23, 5  ;;  %v426_v33 = vshrl.u32 %v285_v24, 16  ;;  %v290_v9 = vld [vmem:[%s8281_s13 + $0x4c] sm:$0xf] }
  0x2d   : > { %7166 = vmatmul.mubr.msk.bf16.vlgmr.msra.gmra.mrb[0].mxu1 %vm763_vm1, %v6321_v18  ;;  %v408_v30 = vor.u32 %v407_v21, %v404_v20  ;;  %v429_v34 = vshll.u32 %v285_v24, 16  ;;  %v390_v35 = vsel %vm8320_vm4, %v385_v25, %v389_v7  ;;  %v395_v36 = vrot.slane %v394_v26, 4  ;;  %v291_v18 = vld [vmem:[%s8281_s13 + $0x54] sm:$0xf]  ;;  %v292_v25 = vld [vmem:[%s8281_s13 + $0x58] sm:$0xf] }
  0x2e   : > { %7276 = vmatmul.mubr.msk.bf16.gmra.mrb[8].mxu0 %vm763_vm1, %v7988_v61  ;;  %v417_v38 = vrot.slane %v415_v27, 4  ;;  %v423_v39 = vrot.slane %v421_v28, 5  ;;  %7198 = vmatpush3.bf16.msra.mxu1 %v8325_v41  ;;  %v428_v44 = vrot.slane %v426_v33, 4  ;;  %v435_v47 = vshll.u32 %v286_v29, 16  ;;  %v7991_v41 = vld [vmem:[%s8281_s13 + $0x6c] sm:$0xff]   ;;  %v7992_v27 = vld [vmem:[%s8281_s13 + $0x78] sm:$0xff]  }
  0x2f   : > { %7279 = vmatprep.mubr.msk.bf16.mxu0 %vm763_vm1, %v7989_v10  ;;  %v409_v43 = vrot.slane %v408_v30, 4  ;;  %v431_v45 = vrot.slane %v429_v34, 5  ;;  %v400_v49 = vsel %vm8320_vm4, %v395_v36, %v399_v17  ;;  %v439_v51 = vshrl.u32 %v286_v29, 16  ;;  %v316_v17 = vld [vmem:[%s8281_s13 + $0x50] sm:$0x1] }
  0x30   : > { %v418_v50 = vor.u32 %v417_v38, %v413_v31  ;;  %v445_v53 = vshll.u32 %v314_v32, 16  ;;  %v6322_v55 = vcombine.low %v390_v35, %v400_v49  ;;  %v437_v58 = vrot.slane %v435_v47, 5  ;;  %v317_v49 = vld [vmem:[%s8281_s13 + $0x5c] sm:$0x1] }
  0x31   : > { %v414_v56 = vsel %vm8320_vm4, %v409_v43, %v413_v31  ;;  %v432_v57 = vor.u32 %v431_v45, %v428_v44  ;;  %v441_v60 = vrot.slane %v439_v51, 4  ;;  %v450_v62 = vshrl.u32 %v287_v42, 16 }
  0x32   : > { %v419_v59 = vrot.slane %v418_v50, 4  ;;  %v447_v61 = vrot.slane %v445_v53, 5  ;;  %7169 = vmatprep.mubr.msk.bf16.mxu1 %vm763_vm1, %v6322_v55  ;;  %v453_v0 = vshll.u32 %v287_v42, 16  ;;  %v459_v2 = vshll.u32 %v288_v48, 16  ;;  %v293_v53 = vld [vmem:[%s8281_s13 + $0x60] sm:$0xf] }
  0x33   : > { %v433_v63 = vrot.slane %v432_v57, 4  ;;  %v463_v3 = vshrl.u32 %v288_v48, 16  ;;  %v442_v6 = vor.u32 %v441_v60, %v437_v58  ;;  %v452_v7 = vrot.slane %v450_v62, 4 }
  0x34   : > { %v424_v5 = vsel %vm8320_vm4, %v419_v59, %v423_v39  ;;  %v469_v8 = vshll.u32 %v315_v54, 16  ;;  %v455_v15 = vrot.slane %v453_v0, 5  ;;  %v461_v16 = vrot.slane %v459_v2, 5 }
  0x35   : > { %v6323_v10 = vcombine.low %v414_v56, %v424_v5  ;;  %v438_v14 = vsel %vm8320_vm4, %v433_v63, %v437_v58  ;;  %v443_v20 = vrot.slane %v442_v6, 4  ;;  %v465_v21 = vrot.slane %v463_v3, 4  ;;  %v294_v58 = vld [vmem:[%s8281_s13 + $0x64] sm:$0xf]  ;;  %v318_v5 = vld [vmem:[%s8281_s13 + $0x68] sm:$0x1] }
  0x36   : > { %7280 = vmatmul.mubr.msk.bf16.gmra.mrb[12].mxu0 %vm763_vm1, %v7990_v40  ;;  %v471_v23 = vrot.slane %v469_v8, 5  ;;  %v474_v24 = vshrl.u32 %v289_v4, 16  ;;  %v456_v26 = vor.u32 %v455_v15, %v452_v7  ;;  %v477_v28 = vshll.u32 %v289_v4, 16  ;;  %v7993_v40 = vld [vmem:[%s8281_s13 + $0x84] sm:$0xff]   ;;  %v295_v8 = vld [vmem:[%s8281_s13 + $0x6c] sm:$0xf] }
  0x37   : > { %7283 = vmatprep.mubr.msk.bf16.mxu0 %vm763_vm1, %v7991_v41  ;;  %7170 = vmatmul.mubr.msk.bf16.gmra.mrb[4].mxu1 %vm763_vm1, %v6323_v10  ;;  %v483_v29 = vshll.u32 %v290_v9, 16  ;;  %v487_v30 = vshrl.u32 %v290_v9, 16  ;;  %v448_v31 = vsel %vm8320_vm4, %v443_v20, %v447_v61  ;;  %v466_v32 = vor.u32 %v465_v21, %v461_v16  ;;  %v7994_v15 = vld [vmem:[%s8281_s13 + $0x90] sm:$0xff]  }
  0x38   : > { %v476_v33 = vrot.slane %v474_v24, 4  ;;  %v493_v34 = vshll.u32 %v316_v17, 16  ;;  %v6324_v35 = vcombine.low %v438_v14, %v448_v31  ;;  %v457_v36 = vrot.slane %v456_v26, 4  ;;  %v296_v17 = vld [vmem:[%s8281_s13 + $0x70] sm:$0xf] }
  0x39   : > { %v479_v38 = vrot.slane %v477_v28, 5  ;;  %v485_v39 = vrot.slane %v483_v29, 5  ;;  %v467_v42 = vrot.slane %v466_v32, 4  ;;  %v489_v43 = vrot.slane %v487_v30, 4  ;;  %v319_v30 = vld [vmem:[%s8281_s13 + $0x74] sm:$0x1] }
  0x3a   : > { %v495_v44 = vrot.slane %v493_v34, 5  ;;  %v498_v45 = vshrl.u32 %v291_v18, 16  ;;  %7173 = vmatprep.mubr.msk.bf16.mxu1 %vm763_vm1, %v6324_v35  ;;  %v462_v47 = vsel %vm8320_vm4, %v457_v36, %v461_v16  ;;  %v501_v50 = vshll.u32 %v291_v18, 16 }
  0x3b   : > { %v480_v48 = vor.u32 %v479_v38, %v476_v33  ;;  %v507_v51 = vshll.u32 %v292_v25, 16  ;;  %v472_v54 = vsel %vm8320_vm4, %v467_v42, %v471_v23  ;;  %v490_v55 = vor.u32 %v489_v43, %v485_v39  ;;  %v6498_v33 = vld [vmem:[%s8281_s13 + $0xc] sm:$0xf] }
  0x3c   : > { %v500_v56 = vrot.slane %v498_v45, 4  ;;  %v511_v57 = vshrl.u32 %v292_v25, 16  ;;  %v6325_v41 = vcombine.low %v462_v47, %v472_v54  ;;  %v503_v60 = vrot.slane %v501_v50, 5 }
  0x3d   : > { %v481_v59 = vrot.slane %v480_v48, 4  ;;  %v509_v61 = vrot.slane %v507_v51, 5  ;;  %v491_v62 = vrot.slane %v490_v55, 4  ;;  %v517_v0 = vshll.u32 %v317_v49, 16 }
  0x3e   : > { %7284 = vmatmul.mubr.msk.bf16.gmra.mrb[16].mxu0 %vm763_vm1, %v7992_v27  ;;  %v513_v63 = vrot.slane %v511_v57, 4  ;;  %v522_v2 = vshrl.u32 %v293_v53, 16  ;;  %v504_v4 = vor.u32 %v503_v60, %v500_v56  ;;  %v525_v6 = vshll.u32 %v293_v53, 16  ;;  %v6500_v53 = vld [vmem:[%s8281_s13 + $0x14] sm:$0x1] }
  0x3f   : > { %7287 = vmatprep.mubr.msk.bf16.mxu0 %vm763_vm1, %v7993_v40  ;;  %7174 = vmatmul.mubr.msk.bf16.gmra.mrb[8].mxu1 %vm763_vm1, %v6325_v41  ;;  %v486_v3 = vsel %vm8320_vm4, %v481_v59, %v485_v39  ;;  %v531_v7 = vshll.u32 %v294_v58, 16  ;;  %v496_v9 = vsel %vm8320_vm4, %v491_v62, %v495_v44  ;;  %v519_v14 = vrot.slane %v517_v0, 5  ;;  %v6499_v39 = vld [vmem:[%s8281_s13 + $0x10] sm:$0xf]  ;;  %v6501_v56 = vld [vmem:[%s8281_s13 + $0x18] sm:$0xf] }
  0x40   : > { %v514_v10 = vor.u32 %v513_v63, %v509_v61  ;;  %v524_v16 = vrot.slane %v522_v2, 4  ;;  %v6326_v18 = vcombine.low %v486_v3, %v496_v9  ;;  %v505_v20 = vrot.slane %v504_v4, 4  ;;  %v6502_v4 = vld [vmem:[%s8281_s13 + $0x1c] sm:$0xf] }
  0x41   : > { %v527_v21 = vrot.slane %v525_v6, 5  ;;  %v533_v23 = vrot.slane %v531_v7, 5  ;;  %v535_v25 = vshrl.u32 %v294_v58, 16  ;;  %v541_v26 = vshll.u32 %v318_v5, 16 }
  0x42   : > { %v515_v24 = vrot.slane %v514_v10, 4  ;;  %v546_v27 = vshrl.u32 %v295_v8, 16  ;;  %7177 = vmatprep.mubr.msk.bf16.mxu1 %vm763_vm1, %v6326_v18  ;;  %v510_v28 = vsel %vm8320_vm4, %v505_v20, %v509_v61  ;;  %v549_v31 = vshll.u32 %v295_v8, 16  ;;  %v6503_v10 = vld [vmem:[%s8281_s13 + $0x20] sm:$0x1] }
  0x43   : > { %v528_v29 = vor.u32 %v527_v21, %v524_v16  ;;  %v555_v32 = vshll.u32 %v296_v17, 16  ;;  %v537_v35 = vrot.slane %v535_v25, 4  ;;  %v543_v36 = vrot.slane %v541_v26, 5 }
  0x44   : > { %v520_v34 = vsel %vm8320_vm4, %v515_v24, %v519_v14  ;;  %v548_v38 = vrot.slane %v546_v27, 4  ;;  %v551_v43 = vrot.slane %v549_v31, 5  ;;  %v559_v47 = vshrl.u32 %v296_v17, 16  ;;  %v297_v14 = vld [vmem:[%s8281_s13 + $0x78] sm:$0xf] }
  0x45   : > { %v6327_v40 = vcombine.low %v510_v28, %v520_v34  ;;  %v529_v42 = vrot.slane %v528_v29, 4  ;;  %v557_v44 = vrot.slane %v555_v32, 5  ;;  %v538_v45 = vor.u32 %v537_v35, %v533_v23  ;;  %v298_v28 = vld [vmem:[%s8281_s13 + $0x7c] sm:$0xf]  ;;  %v320_v34 = vld [vmem:[%s8281_s13 + $0x80] sm:$0x1] }
  0x46   : > { %7288 = vmatmul.mubr.msk.bf16.gmra.mrb[20].mxu0 %vm763_vm1, %v7994_v15  ;;  %v565_v48 = vshll.u32 %v319_v30, 16  ;;  %v2134_v49 = vshrl.u32 %v6498_v33, 16  ;;  %v552_v51 = vor.u32 %v551_v43, %v548_v38  ;;  %v2137_v54 = vshll.u32 %v6498_v33, 16 }
  0x47   : > { %7178 = vmatmul.mubr.msk.bf16.gmra.mrb[12].mxu1 %vm763_vm1, %v6327_v40  ;;  %v534_v50 = vsel %vm8320_vm4, %v529_v42, %v533_v23  ;;  %v2143_v55 = vshll.u32 %v6499_v39, 16  ;;  %v539_v57 = vrot.slane %v538_v45, 4  ;;  %v561_v58 = vrot.slane %v559_v47, 4  ;;  %v299_v40 = vld [vmem:[%s8281_s13 + $0x84] sm:$0xf] }
  0x48   : > { %v567_v41 = vrot.slane %v565_v48, 5  ;;  %v2136_v59 = vrot.slane %v2134_v49, 4  ;;  %v553_v60 = vrot.slane %v552_v51, 4  ;;  %v2139_v61 = vrot.slane %v2137_v54, 5  ;;  %v300_v51 = vld [vmem:[%s8281_s13 + $0x88] sm:$0xf] }
  0x49   : > { %v2145_v62 = vrot.slane %v2143_v55, 5  ;;  %v2147_v63 = vshrl.u32 %v6499_v39, 16  ;;  %v544_v0 = vsel %vm8320_vm4, %v539_v57, %v543_v36  ;;  %v562_v2 = vor.u32 %v561_v58, %v557_v44 }
  0x4a   : > { %v2153_v3 = vshll.u32 %v6500_v53, 16  ;;  %v2158_v5 = vshrl.u32 %v6501_v56, 16  ;;  %v6328_v6 = vcombine.low %v534_v50, %v544_v0  ;;  %v558_v7 = vsel %vm8320_vm4, %v553_v60, %v557_v44 }
  0x4b   : > { %v2140_v8 = vor.u32 %v2139_v61, %v2136_v59  ;;  %v2149_v9 = vrot.slane %v2147_v63, 4  ;;  %v563_v15 = vrot.slane %v562_v2, 4  ;;  %v2161_v18 = vshll.u32 %v6501_v56, 16  ;;  %v321_v56 = vld [vmem:[%s8281_s13 + $0x8c] sm:$0x1] }
  0x4c   : > { %v2155_v16 = vrot.slane %v2153_v3, 5  ;;  %v2160_v17 = vrot.slane %v2158_v5, 4  ;;  %7181 = vmatprep.mubr.msk.bf16.mxu1 %vm763_vm1, %v6328_v6  ;;  %v2167_v23 = vshll.u32 %v6502_v4, 16  ;;  %v2171_v24 = vshrl.u32 %v6502_v4, 16  ;;  %v6504_v2 = vld [vmem:[%s8281_s13 + $0x24] sm:$0xf] }
  0x4d   : > { %v2141_v20 = vrot.slane %v2140_v8, 4  ;;  %v2150_v21 = vor.u32 %v2149_v9, %v2145_v62  ;;  %v568_v25 = vsel %vm8320_vm4, %v563_v15, %v567_v41  ;;  %v2163_v26 = vrot.slane %v2161_v18, 5  ;;  %v8448_v18 = vld [vmem:[%s8281_s13 + $0x2c] sm:$0x1] }
  0x4e   : > { %v2177_v27 = vshll.u32 %v6503_v10, 16  ;;  %v570_v29 = vshrl.u32 %v297_v14, 16  ;;  %v6329_v30 = vcombine.low %v558_v7, %v568_v25  ;;  %v2169_v33 = vrot.slane %v2167_v23, 5  ;;  %v8445_v7 = vld [vmem:[%s8281_s13 + $0x28] sm:$0xf] }
  0x4f   : > { %v2146_v31 = vsel %vm8320_vm4, %v2141_v20, %v2145_v62  ;;  %v2151_v32 = vrot.slane %v2150_v21, 4  ;;  %v2164_v35 = vor.u32 %v2163_v26, %v2160_v17  ;;  %v2173_v36 = vrot.slane %v2171_v24, 4  ;;  %v6507_v26 = vld [vmem:[%s8281_s13 + $0x30] sm:$0xf] }
  0x50   : > { %v2179_v38 = vrot.slane %v2177_v27, 5  ;;  %v572_v39 = vrot.slane %v570_v29, 4  ;;  %7182 = vmatmul.mubr.msk.bf16.gmra.mrb[16].mxu1 %vm763_vm1, %v6329_v30  ;;  %v573_v43 = vshll.u32 %v297_v14, 16  ;;  %v579_v44 = vshll.u32 %v298_v28, 16 }
  0x51   : > { %v2156_v42 = vsel %vm8320_vm4, %v2151_v32, %v2155_v16  ;;  %v583_v45 = vshrl.u32 %v298_v28, 16  ;;  %v2165_v48 = vrot.slane %v2164_v35, 4  ;;  %v2174_v49 = vor.u32 %v2173_v36, %v2169_v33 }
  0x52   : > { %v6547_v47 = vcombine.low %v2146_v31, %v2156_v42  ;;  %v589_v50 = vshll.u32 %v320_v34, 16  ;;  %v575_v53 = vrot.slane %v573_v43, 5  ;;  %v581_v54 = vrot.slane %v579_v44, 5  ;;  %v8459_v31 = vld [vmem:[%s8281_s13 + $0x34] sm:$0xf] }
  0x53   : > { %v585_v55 = vrot.slane %v583_v45, 4  ;;  %v594_v57 = vshrl.u32 %v299_v40, 16  ;;  %v2170_v58 = vsel %vm8320_vm4, %v2165_v48, %v2169_v33  ;;  %v2175_v41 = vrot.slane %v2174_v49, 4 }
  0x54   : > { %7301 = vmatprep.mubr.msk.bf16.mxu0 %vm763_vm1, %v6547_v47  ;;  %v591_v59 = vrot.slane %v589_v50, 5  ;;  %v597_v60 = vshll.u32 %v299_v40, 16  ;;  %v576_v61 = vor.u32 %v575_v53, %v572_v39  ;;  %v603_v0 = vshll.u32 %v300_v51, 16  ;;  %v8471_v47 = vld [vmem:[%s8281_s13 + $0x90] sm:$0xf] }
  0x55   : > { %v586_v62 = vor.u32 %v585_v55, %v581_v54  ;;  %v596_v63 = vrot.slane %v594_v57, 4  ;;  %v2180_v3 = vsel %vm8320_vm4, %v2175_v41, %v2179_v38  ;;  %v607_v5 = vshrl.u32 %v300_v51, 16  ;;  %v8467_v38 = vld [vmem:[%s8281_s13 + $0x38] sm:$0x1]  ;;  %v8477_v53 = vld [vmem:[%s8281_s13 + $0x94] sm:$0xf] }
  0x56   : > { %v599_v4 = vrot.slane %v597_v60, 5  ;;  %v613_v6 = vshll.u32 %v321_v56, 16  ;;  %v6548_v8 = vcombine.low %v2170_v58, %v2180_v3  ;;  %v577_v9 = vrot.slane %v576_v61, 4 }
  0x57   : > { %v587_v10 = vrot.slane %v586_v62, 4  ;;  %v605_v14 = vrot.slane %v603_v0, 5  ;;  %v609_v16 = vrot.slane %v607_v5, 4  ;;  %v2182_v20 = vshrl.u32 %v6504_v2, 16 }
  0x58   : > { %v600_v15 = vor.u32 %v599_v4, %v596_v63  ;;  %v615_v17 = vrot.slane %v613_v6, 5  ;;  %7302 = vmatmul.mubr.msk.bf16.vlgmr.msra.gmra.mrb[0].mxu0 %vm763_vm1, %v6548_v8  ;;  %v582_v21 = vsel %vm8320_vm4, %v577_v9, %v581_v54  ;;  %v2185_v24 = vshll.u32 %v6504_v2, 16  ;;  %v322_v63 = vld [vmem:[%s8281_s13 + $0x98] sm:$0x1]  ;;  %v8488_v8 = vld [vmem:[%s8281_s13 + $0x9c] sm:$0xf] }
  0x59   : > { %v592_v23 = vsel %vm8320_vm4, %v587_v10, %v591_v59  ;;  %v2191_v25 = vshll.u32 %v8445_v7, 16  ;;  %7334 = vmatpush3.bf16.msra.mxu0 %v8290_v11  ;;  %v610_v29 = vor.u32 %v609_v16, %v605_v14  ;;  %v2184_v30 = vrot.slane %v2182_v20, 4  ;;  %v8494_v16 = vld [vmem:[%s8281_s13 + $0xa0] sm:$0xf] }
  0x5a   : > { %v6330_v27 = vcombine.low %v582_v21, %v592_v23  ;;  %v601_v28 = vrot.slane %v600_v15, 4  ;;  %v2187_v32 = vrot.slane %v2185_v24, 5  ;;  %v2195_v34 = vshrl.u32 %v8445_v7, 16 }
  0x5b   : > { %v2193_v33 = vrot.slane %v2191_v25, 5  ;;  %v2201_v35 = vshll.u32 %v8448_v18, 16  ;;  %v611_v11 = vrot.slane %v610_v29, 4  ;;  %v2206_v39 = vshrl.u32 %v6507_v26, 16 }
  0x5c   : > { %7185 = vmatprep.mubr.msk.bf16.mxu1 %vm763_vm1, %v6330_v27  ;;  %v606_v36 = vsel %vm8320_vm4, %v601_v28, %v605_v14  ;;  %v2209_v40 = vshll.u32 %v6507_v26, 16  ;;  %v2188_v42 = vor.u32 %v2187_v32, %v2184_v30  ;;  %v2197_v43 = vrot.slane %v2195_v34, 4  ;;  %v323_v26 = vld [vmem:[%s8281_s13 + $0xa4] sm:$0x1]  ;;  %v6510_v34 = vld [vmem:[%s8281_s13 + $0x3c] sm:$0xf] }
  0x5d   : > { %v2203_v44 = vrot.slane %v2201_v35, 5  ;;  %v2215_v45 = vshll.u32 %v8459_v31, 16  ;;  %v616_v48 = vsel %vm8320_vm4, %v611_v11, %v615_v17  ;;  %v2208_v49 = vrot.slane %v2206_v39, 4 }
  0x5e   : > { %v2211_v50 = vrot.slane %v2209_v40, 5  ;;  %v2219_v51 = vshrl.u32 %v8459_v31, 16  ;;  %v6331_v54 = vcombine.low %v606_v36, %v616_v48  ;;  %v2189_v55 = vrot.slane %v2188_v42, 4  ;;  %v8508_v40 = vld [vmem:[%s8281_s13 + $0x40] sm:$0xf] }
  0x5f   : > { %v2198_v56 = vor.u32 %v2197_v43, %v2193_v33  ;;  %v2217_v57 = vrot.slane %v2215_v45, 5  ;;  %v2225_v59 = vshll.u32 %v8467_v38, 16  ;;  %v618_v60 = vshrl.u32 %v8471_v47, 16 }
  0x60   : > { %v2212_v58 = vor.u32 %v2211_v50, %v2208_v49  ;;  %v2221_v41 = vrot.slane %v2219_v51, 4  ;;  %7186 = vmatmul.mubr.msk.bf16.gmra.mrb[20].mxu1 %vm763_vm1, %v6331_v54  ;;  %v2194_v61 = vsel %vm8320_vm4, %v2189_v55, %v2193_v33  ;;  %v621_v0 = vshll.u32 %v8471_v47, 16 }
  0x61   : > { %v2199_v62 = vrot.slane %v2198_v56, 4  ;;  %v627_v2 = vshll.u32 %v8477_v53, 16  ;;  %v2227_v5 = vrot.slane %v2225_v59, 5  ;;  %v620_v6 = vrot.slane %v618_v60, 4 }
  0x62   : > { %v2213_v3 = vrot.slane %v2212_v58, 4  ;;  %v2222_v4 = vor.u32 %v2221_v41, %v2217_v57  ;;  %v623_v10 = vrot.slane %v621_v0, 5  ;;  %v631_v15 = vshrl.u32 %v8477_v53, 16  ;;  %v6513_v41 = vld [vmem:[%s8281_s13 + $0x48] sm:$0xf] }
  0x63   : > { %v2204_v9 = vsel %vm8320_vm4, %v2199_v62, %v2203_v44  ;;  %v629_v14 = vrot.slane %v627_v2, 5  ;;  %v637_v23 = vshll.u32 %v322_v63, 16  ;;  %v642_v27 = vshrl.u32 %v8488_v8, 16  ;;  %v8522_v63 = vld [vmem:[%s8281_s13 + $0x4c] sm:$0xf] }
  0x64   : > { %v6549_v17 = vcombine.low %v2194_v61, %v2204_v9  ;;  %v2218_v20 = vsel %vm8320_vm4, %v2213_v3, %v2217_v57  ;;  %v2223_v21 = vrot.slane %v2222_v4, 4  ;;  %v624_v24 = vor.u32 %v623_v10, %v620_v6  ;;  %v8514_v57 = vld [vmem:[%s8281_s13 + $0x44] sm:$0x1] }
  0x65   : > { %v633_v25 = vrot.slane %v631_v15, 4  ;;  %v645_v28 = vshll.u32 %v8488_v8, 16  ;;  %v639_v30 = vrot.slane %v637_v23, 5  ;;  %v651_v32 = vshll.u32 %v8494_v16, 16  ;;  %v8535_v23 = vld [vmem:[%s8281_s13 + $0xa8] sm:$0xf] }
  0x66   : > { %7305 = vmatprep.mubr.msk.bf16.mxu0 %vm763_vm1, %v6549_v17  ;;  %v2228_v29 = vsel %vm8320_vm4, %v2223_v21, %v2227_v5  ;;  %v655_v33 = vshrl.u32 %v8494_v16, 16  ;;  %v625_v36 = vrot.slane %v624_v24, 4  ;;  %v644_v39 = vrot.slane %v642_v27, 4  ;;  %v8531_v17 = vld [vmem:[%s8281_s13 + $0x50] sm:$0x1] }
  0x67   : > { %v6550_v35 = vcombine.low %v2218_v20, %v2228_v29  ;;  %v634_v11 = vor.u32 %v633_v25, %v629_v14  ;;  %v647_v42 = vrot.slane %v645_v28, 5  ;;  %v653_v43 = vrot.slane %v651_v32, 5  ;;  %v8538_v28 = vld [vmem:[%s8281_s13 + $0xac] sm:$0xf] }
  0x68   : > { %v657_v44 = vrot.slane %v655_v33, 4  ;;  %v661_v45 = vshll.u32 %v323_v26, 16  ;;  %v630_v48 = vsel %vm8320_vm4, %v625_v36, %v629_v14  ;;  %v2230_v50 = vshrl.u32 %v6510_v34, 16 }
  0x69   : > { %7306 = vmatmul.mubr.msk.bf16.gmra.mrb[4].mxu0 %vm763_vm1, %v6550_v35  ;;  %v635_v49 = vrot.slane %v634_v11, 4  ;;  %v2233_v51 = vshll.u32 %v6510_v34, 16  ;;  %v648_v54 = vor.u32 %v647_v42, %v644_v39  ;;  %v2239_v58 = vshll.u32 %v8508_v40, 16  ;;  %v8544_v34 = vld [vmem:[%s10361_s1 + $0xc] sm:$0x3] }
  0x6a   : > { %v658_v55 = vor.u32 %v657_v44, %v653_v43  ;;  %v663_v56 = vrot.slane %v661_v45, 5  ;;  %v2232_v60 = vrot.slane %v2230_v50, 4  ;;  %v2243_v62 = vshrl.u32 %v8508_v40, 16  ;;  %v324_v39 = vld [vmem:[%s8281_s13 + $0xb0] sm:$0x1]  ;;  %7937 = vmatprep.subr.msk.bf16.mxu0 %vm812_vm0, %v8544_v34 }
  0x6b   : > { %v640_v59 = vsel %vm8320_vm4, %v635_v49, %v639_v30  ;;  %v2235_v61 = vrot.slane %v2233_v51, 5  ;;  %v649_v2 = vrot.slane %v648_v54, 4  ;;  %v2241_v4 = vrot.slane %v2239_v58, 5  ;;  %v8557_v49 = vld [vmem:[%s8281_s13 + $0xb4] sm:$0xf] }
  0x6c   : > { %v6332_v0 = vcombine.low %v630_v48, %v640_v59  ;;  %v659_v3 = vrot.slane %v658_v55, 4  ;;  %v2245_v6 = vrot.slane %v2243_v62, 4  ;;  %v2249_v9 = vshll.u32 %v8514_v57, 16 }
  0x6d   : > { %v2236_v5 = vor.u32 %v2235_v61, %v2232_v60  ;;  %v2254_v10 = vshrl.u32 %v6513_v41, 16  ;;  %v654_v14 = vsel %vm8320_vm4, %v649_v2, %v653_v43  ;;  %v2257_v20 = vshll.u32 %v6513_v41, 16  ;;  %v8563_v60 = vld [vmem:[%s8281_s13 + $0xb8] sm:$0xf] }
  0x6e   : > { %7189 = vmatprep.mubr.msk.bf16.mxu1 %vm763_vm1, %v6332_v0  ;;  %v664_v15 = vsel %vm8320_vm4, %v659_v3, %v663_v56  ;;  %v2263_v21 = vshll.u32 %v8522_v63, 16  ;;  %v2246_v26 = vor.u32 %v2245_v6, %v2241_v4  ;;  %v2251_v27 = vrot.slane %v2249_v9, 5  ;;  %v325_v6 = vld [vmem:[%s8281_s13 + $0xbc] sm:$0x1] }
  0x6f   : > { %v6333_v24 = vcombine.low %v654_v14, %v664_v15  ;;  %v2237_v25 = vrot.slane %v2236_v5, 4  ;;  %v2256_v29 = vrot.slane %v2254_v10, 4  ;;  %v2259_v30 = vrot.slane %v2257_v20, 5  ;;  %v8574_v10 = vld [vmem:[%s10361_s1 + $0x4] sm:$0x3] }
  0x70   : > { %v2265_v32 = vrot.slane %v2263_v21, 5  ;;  %v2267_v33 = vshrl.u32 %v8522_v63, 16  ;;  %v2247_v36 = vrot.slane %v2246_v26, 4  ;;  %v2273_v11 = vshll.u32 %v8531_v17, 16  ;;  %7932 = vmatprep.subr.msk.bf16.mxu1 %vm812_vm0, %v8574_v10 }
  0x71   : > { %7190 = vmatmul.mubr.msk.bf16.gmra.mrb[24].mxu1 %vm763_vm1, %v6333_v24  ;;  %v2242_v35 = vsel %vm8320_vm4, %v2237_v25, %v2241_v4  ;;  %v666_v42 = vshrl.u32 %v8535_v23, 16  ;;  %v2260_v43 = vor.u32 %v2259_v30, %v2256_v29  ;;  %v669_v45 = vshll.u32 %v8535_v23, 16  ;;  %v6516_v24 = vld [vmem:[%s8281_s13 + $0x54] sm:$0xf]  ;;  %v8584_v30 = vld [vmem:[%s8281_s13 + $0x58] sm:$0xf] }
  0x72   : > { %v2269_v44 = vrot.slane %v2267_v33, 4  ;;  %v675_v48 = vshll.u32 %v8538_v28, 16  ;;  %v2252_v50 = vsel %vm8320_vm4, %v2247_v36, %v2251_v27  ;;  %v2275_v51 = vrot.slane %v2273_v11, 5 }
  0x73   : > { %v668_v54 = vrot.slane %v666_v42, 4  ;;  %v679_v55 = vshrl.u32 %v8538_v28, 16  ;;  %v6551_v56 = vcombine.low %v2242_v35, %v2252_v50  ;;  %v2261_v58 = vrot.slane %v2260_v43, 4  ;;  %v8589_v43 = vld [vmem:[%s8281_s13 + $0x5c] sm:$0x1] }
  0x74   : > { %v2270_v41 = vor.u32 %v2269_v44, %v2265_v32  ;;  %v671_v59 = vrot.slane %v669_v45, 5  ;;  %v677_v61 = vrot.slane %v675_v48, 5  ;;  %v685_v0 = vshll.u32 %v324_v39, 16 }
  0x75   : > { %v681_v62 = vrot.slane %v679_v55, 4  ;;  %v690_v2 = vshrl.u32 %v8557_v49, 16  ;;  %7309 = vmatprep.mubr.msk.bf16.mxu0 %vm763_vm1, %v6551_v56  ;;  %v2266_v3 = vsel %vm8320_vm4, %v2261_v58, %v2265_v32  ;;  %v693_v9 = vshll.u32 %v8557_v49, 16 }
  0x76   : > { %v2271_v4 = vrot.slane %v2270_v41, 4  ;;  %v672_v5 = vor.u32 %v671_v59, %v668_v54  ;;  %v687_v15 = vrot.slane %v685_v0, 5  ;;  %v699_v21 = vshll.u32 %v8563_v60, 16  ;;  %v6519_v54 = vld [vmem:[%s8281_s13 + $0x60] sm:$0xf] }
  0x77   : > { %v682_v14 = vor.u32 %v681_v62, %v677_v61  ;;  %v692_v20 = vrot.slane %v690_v2, 4  ;;  %v695_v27 = vrot.slane %v693_v9, 5  ;;  %v703_v29 = vshrl.u32 %v8563_v60, 16  ;;  %v8597_v59 = vld [vmem:[%s8281_s13 + $0x64] sm:$0xf] }
  0x78   : > { %v2276_v25 = vsel %vm8320_vm4, %v2271_v4, %v2275_v51  ;;  %v673_v26 = vrot.slane %v672_v5, 4  ;;  %v701_v35 = vrot.slane %v699_v21, 5  ;;  %v709_v36 = vshll.u32 %v325_v6, 16  ;;  %v8605_v5 = vld [vmem:[%s8281_s13 + $0x68] sm:$0x1] }
  0x79   : > { %v6552_v32 = vcombine.low %v2266_v3, %v2276_v25  ;;  %v683_v33 = vrot.slane %v682_v14, 4  ;;  %v696_v39 = vor.u32 %v695_v27, %v692_v20  ;;  %v705_v42 = vrot.slane %v703_v29, 4 }
  0x7a   : > { %v678_v11 = vsel %vm8320_vm4, %v673_v26, %v677_v61  ;;  %v2278_v44 = vshrl.u32 %v6516_v24, 16  ;;  %v711_v48 = vrot.slane %v709_v36, 5  ;;  %v2281_v50 = vshll.u32 %v6516_v24, 16  ;;  %v6522_v24 = vld [vmem:[%s8281_s13 + $0x6c] sm:$0xf] }
  0x7b   : > { %7310 = vmatmul.mubr.msk.bf16.gmra.mrb[8].mxu0 %vm763_vm1, %v6552_v32  ;;  %v688_v45 = vsel %vm8320_vm4, %v683_v33, %v687_v15  ;;  %v2287_v51 = vshll.u32 %v8584_v30, 16  ;;  %v697_v56 = vrot.slane %v696_v39, 4  ;;  %v706_v58 = vor.u32 %v705_v42, %v701_v35  ;;  %v8613_v32 = vld [vmem:[%s8281_s13 + $0x70] sm:$0xf] }
  0x7c   : > { %v6334_v55 = vcombine.low %v678_v11, %v688_v45  ;;  %v2280_v41 = vrot.slane %v2278_v44, 4  ;;  %v2283_v61 = vrot.slane %v2281_v50, 5  ;;  %v2291_v0 = vshrl.u32 %v8584_v30, 16  ;;  %v8617_v45 = vld [vmem:[%s8281_s13 + $0x74] sm:$0x1] }
  0x7d   : > { %v2289_v62 = vrot.slane %v2287_v51, 5  ;;  %v2297_v2 = vshll.u32 %v8589_v43, 16  ;;  %v702_v3 = vsel %vm8320_vm4, %v697_v56, %v701_v35  ;;  %v707_v4 = vrot.slane %v706_v58, 4  ;;  %v6525_v56 = vld [vmem:[%s8281_s13 + $0x78] sm:$0xf] }
  0x7e   : > { %7193 = vmatprep.mubr.msk.bf16.mxu1 %vm763_vm1, %v6334_v55  ;;  %v2302_v6 = vshrl.u32 %v6519_v54, 16  ;;  %v2305_v9 = vshll.u32 %v6519_v54, 16  ;;  %v2284_v14 = vor.u32 %v2283_v61, %v2280_v41  ;;  %v2293_v15 = vrot.slane %v2291_v0, 4 }
  0x7f   : > { %v2299_v20 = vrot.slane %v2297_v2, 5  ;;  %v2311_v21 = vshll.u32 %v8597_v59, 16  ;;  %v712_v25 = vsel %vm8320_vm4, %v707_v4, %v711_v48  ;;  %v2315_v29 = vshrl.u32 %v8597_v59, 16  ;;  %v8629_v2 = vld [vmem:[%s8281_s13 + $0x7c] sm:$0xf] }
  0x80   : > { %v2304_v26 = vrot.slane %v2302_v6, 4  ;;  %v2307_v27 = vrot.slane %v2305_v9, 5  ;;  %v6335_v33 = vcombine.low %v702_v3, %v712_v25  ;;  %v2285_v35 = vrot.slane %v2284_v14, 4  ;;  %v8635_v9 = vld [vmem:[%s8281_s13 + $0x80] sm:$0x1] }
  0x81   : > { %v2294_v36 = vor.u32 %v2293_v15, %v2289_v62  ;;  %v2313_v11 = vrot.slane %v2311_v21, 5  ;;  %v2317_v42 = vrot.slane %v2315_v29, 4  ;;  %v2321_v44 = vshll.u32 %v8605_v5, 16 }
  0x82   : > { %v2308_v39 = vor.u32 %v2307_v27, %v2304_v26  ;;  %v2326_v50 = vshrl.u32 %v6522_v24, 16  ;;  %7194 = vmatmul.mubr.msk.bf16.gmra.mrb[28].mxu1 %vm763_vm1, %v6335_v33  ;;  %v2290_v48 = vsel %vm8320_vm4, %v2285_v35, %v2289_v62  ;;  %v2329_v54 = vshll.u32 %v6522_v24, 16 }
  0x83   : > { %v2295_v51 = vrot.slane %v2294_v36, 4  ;;  %v2335_v55 = vshll.u32 %v8613_v32, 16  ;;  %v2318_v41 = vor.u32 %v2317_v42, %v2313_v11  ;;  %v2323_v61 = vrot.slane %v2321_v44, 5  ;;  %7199 = vmatprep.mubr.msk.bf16.mxu1 %vm763_vm1, %v6352_v46  ;;  %v8647_v42 = vld [vmem:[%s8281_s13 + $0x88] sm:$0xf] }
  0x84   : > { %v2309_v58 = vrot.slane %v2308_v39, 4  ;;  %v2328_v0 = vrot.slane %v2326_v50, 4  ;;  %v2331_v3 = vrot.slane %v2329_v54, 5  ;;  %v2339_v6 = vshrl.u32 %v8613_v32, 16  ;;  %v8651_v54 = vld [vmem:[%s8281_s13 + $0x8c] sm:$0x1] }
  0x85   : > { %v2300_v62 = vsel %vm8320_vm4, %v2295_v51, %v2299_v20  ;;  %v2337_v4 = vrot.slane %v2335_v55, 5  ;;  %v2319_v12 = vrot.slane %v2318_v41, 4  ;;  %v2345_v13 = vshll.u32 %v8617_v45, 16  ;;  %v6528_v20 = vld [vmem:[%s8281_s13 + $0x84] sm:$0xf] }
  0x86   : > { %v6553_v14 = vcombine.low %v2290_v48, %v2300_v62  ;;  %v2314_v15 = vsel %vm8320_vm4, %v2309_v58, %v2313_v11  ;;  %v2332_v46 = vor.u32 %v2331_v3, %v2328_v0  ;;  %v2341_v21 = vrot.slane %v2339_v6, 4  ;;  %v8049_v58 = vld [vmem:[%s8281_s13 + $0x18] sm:$0xf]  ;;  %v8662_v41 = vld [vmem:[%s8281_s13 + $0x1c] sm:$0xf] }
  0x87   : > { %v2350_v24 = vshrl.u32 %v6525_v56, 16  ;;  %v2353_v25 = vshll.u32 %v6525_v56, 16  ;;  %v2324_v26 = vsel %vm8320_vm4, %v2319_v12, %v2323_v61  ;;  %v2347_v27 = vrot.slane %v2345_v13, 5  ;;  %v8051_v0 = vld [vmem:[%s8281_s13 + $0x24] sm:$0xf] }
  0x88   : > { %7313 = vmatprep.mubr.msk.bf16.mxu0 %vm763_vm1, %v6553_v14  ;;  %v2359_v29 = vshll.u32 %v8629_v2, 16  ;;  %v2363_v33 = vshrl.u32 %v8629_v2, 16  ;;  %v6554_v35 = vcombine.low %v2314_v15, %v2324_v26  ;;  %v2333_v36 = vrot.slane %v2332_v46, 4  ;;  %v8667_v62 = vld [vmem:[%s8281_s13 + $0x28] sm:$0xf] }
  0x89   : > { %v2342_v11 = vor.u32 %v2341_v21, %v2337_v4  ;;  %v2352_v39 = vrot.slane %v2350_v24, 4  ;;  %v2355_v44 = vrot.slane %v2353_v25, 5  ;;  %v2369_v51 = vshll.u32 %v8635_v9, 16  ;;  %v6531_v6 = vld [vmem:[%s8281_s13 + $0x90] sm:$0xf] }
  0x8a   : > { %v2361_v50 = vrot.slane %v2359_v29, 5  ;;  %v2365_v48 = vrot.slane %v2363_v33, 4  ;;  %7314 = vmatmul.mubr.msk.bf16.gmra.mrb[12].mxu0 %vm763_vm1, %v6554_v35  ;;  %7200 = vmatmul.mubr.msk.bf16.vlgmr.msra.gmra.mrb[0].mxu1 %vm763_vm1, %v6353_v52  ;;  %v2338_v55 = vsel %vm8320_vm4, %v2333_v36, %v2337_v4  ;;  %v6354_v61 = vcombine.low %v8049_v58, %v8662_v41  ;;  %v8677_v46 = vld [vmem:[%s8281_s13 + $0x94] sm:$0xf]  ;;  %v8680_v29 = vld [vmem:[%s8281_s13 + $0x98] sm:$0x1] }
  0x8b   : > { %v2343_v56 = vrot.slane %v2342_v11, 4  ;;  %v6355_v3 = vcombine.low %v8051_v0, %v8667_v62  ;;  %v2356_v19 = vor.u32 %v2355_v44, %v2352_v39  ;;  %v2371_v52 = vrot.slane %v2369_v51, 5  ;;  %v6534_v58 = vld [vmem:[%s8281_s13 + $0x9c] sm:$0xf] }
  0x8c   : > { %v2366_v22 = vor.u32 %v2365_v48, %v2361_v50  ;;  %v2374_v14 = vshrl.u32 %v6528_v20, 16  ;;  %7203 = vmatprep.mubr.msk.bf16.mxu1 %vm763_vm1, %v6354_v61  ;;  %v2377_v15 = vshll.u32 %v6528_v20, 16  ;;  %v2383_v12 = vshll.u32 %v8647_v42, 16 }
  0x8d   : > { %v2348_v4 = vsel %vm8320_vm4, %v2343_v56, %v2347_v27  ;;  %v2387_v13 = vshrl.u32 %v8647_v42, 16  ;;  %v2357_v24 = vrot.slane %v2356_v19, 4  ;;  %v2393_v27 = vshll.u32 %v8651_v54, 16 }
  0x8e   : > { %v6555_v21 = vcombine.low %v2338_v55, %v2348_v4  ;;  %v2367_v25 = vrot.slane %v2366_v22, 4  ;;  %v2376_v26 = vrot.slane %v2374_v14, 4  ;;  %v2379_v33 = vrot.slane %v2377_v15, 5  ;;  %v8692_v22 = vld [vmem:[%s8281_s13 + $0xa0] sm:$0xf] }
  0x8f   : > { %v2385_v35 = vrot.slane %v2383_v12, 5  ;;  %v2389_v36 = vrot.slane %v2387_v13, 4  ;;  %v2362_v20 = vsel %vm8320_vm4, %v2357_v24, %v2361_v50  ;;  %v2398_v39 = vshrl.u32 %v6531_v6, 16  ;;  %10394 = vst [vmem:[#allocation11_spill] sm:$0xff] %v8692_v22  ;;  %v8053_v15 = vld [vmem:[%s8281_s13 + $0x30] sm:$0xf] }
  0x90   : > { %7317 = vmatprep.mubr.msk.bf16.mxu0 %vm763_vm1, %v6555_v21  ;;  %v2372_v11 = vsel %vm8320_vm4, %v2367_v25, %v2371_v52  ;;  %v2401_v44 = vshll.u32 %v6531_v6, 16  ;;  %v2380_v51 = vor.u32 %v2379_v33, %v2376_v26  ;;  %v2395_v56 = vrot.slane %v2393_v27, 5  ;;  %v8695_v52 = vld [vmem:[%s8281_s13 + $0xa4] sm:$0x1]  ;;  %v8702_v12 = vld [vmem:[%s8281_s13 + $0x34] sm:$0xf] }
  0x91   : > { %v6556_v48 = vcombine.low %v2362_v20, %v2372_v11  ;;  %v2390_v55 = vor.u32 %v2389_v36, %v2385_v35  ;;  %v2400_v61 = vrot.slane %v2398_v39, 4  ;;  %v2407_v19 = vshll.u32 %v8677_v46, 16  ;;  %10395 = vst [vmem:[#allocation12_spill] sm:$0xff] %v8695_v52  ;;  %v6537_v21 = vld [vmem:[%s8281_s13 + $0xa8] sm:$0xf] }
  0x92   : > { %v2403_v0 = vrot.slane %v2401_v44, 5  ;;  %v2411_v50 = vshrl.u32 %v8677_v46, 16  ;;  %7204 = vmatmul.mubr.msk.bf16.gmra.mrb[4].mxu1 %vm763_vm1, %v6355_v3  ;;  %v2381_v6 = vrot.slane %v2380_v51, 4  ;;  %v2417_v4 = vshll.u32 %v8680_v29, 16  ;;  %v8055_v33 = vld [vmem:[%s8281_s13 + $0x3c] sm:$0xf] }
  0x93   : > { %7318 = vmatmul.mubr.msk.bf16.gmra.mrb[16].mxu0 %vm763_vm1, %v6556_v48  ;;  %v2391_v14 = vrot.slane %v2390_v55, 4  ;;  %v6356_v13 = vcombine.low %v8053_v15, %v8702_v12  ;;  %v2409_v25 = vrot.slane %v2407_v19, 5  ;;  %v8708_v36 = vld [vmem:[%s8281_s13 + $0x40] sm:$0xf]  ;;  %v2422_v39 = vshrl.u32 %v6534_v58, 16 }
  0x94   : > { %v2404_v24 = vor.u32 %v2403_v0, %v2400_v61  ;;  %v2413_v26 = vrot.slane %v2411_v50, 4  ;;  %v6357_v3 = vcombine.low %v8055_v33, %v8708_v36  ;;  %v2386_v27 = vsel %vm8320_vm4, %v2381_v6, %v2385_v35  ;;  %v8717_v44 = vld [vmem:[%s8281_s13 + $0xac] sm:$0xf]  ;;  %v6540_v33 = vld [vmem:[%s8281_s13 + $0xb4] sm:$0xf] }
  0x95   : > { %v2396_v20 = vsel %vm8320_vm4, %v2391_v14, %v2395_v56  ;;  %v2419_v11 = vrot.slane %v2417_v4, 5  ;;  %7207 = vmatprep.mubr.msk.bf16.mxu1 %vm763_vm1, %v6356_v13  ;;  %v2425_v61 = vshll.u32 %v6534_v58, 16  ;;  %v2424_v0 = vrot.slane %v2422_v39, 4  ;;  %v8723_v56 = vld [vmem:[%s8281_s13 + $0xb0] sm:$0x1] }
  0x96   : > { %v6557_v48 = vcombine.low %v2386_v27, %v2396_v20  ;;  %v2405_v51 = vrot.slane %v2404_v24, 4  ;;  %v2414_v55 = vor.u32 %v2413_v26, %v2409_v25  ;;  %v2431_v19 = vshll.u32 %v8692_v22, 16 }
  0x97   : > { %v2435_v50 = vshrl.u32 %v8692_v22, 16  ;;  %v2441_v35 = vshll.u32 %v8695_v52, 16  ;;  %v2427_v4 = vrot.slane %v2425_v61, 5  ;;  %v2446_v15 = vshrl.u32 %v6537_v21, 16  ;;  %v8733_v52 = vld [vmem:[%s8281_s13 + $0xb8] sm:$0xf] }
  0x98   : > { %7321 = vmatprep.mubr.msk.bf16.mxu0 %vm763_vm1, %v6557_v48  ;;  %v2410_v6 = vsel %vm8320_vm4, %v2405_v51, %v2409_v25  ;;  %v2415_v14 = vrot.slane %v2414_v55, 4  ;;  %v2433_v13 = vrot.slane %v2431_v19, 5  ;;  %v2449_v26 = vshll.u32 %v6537_v21, 16 }
  0x99   : > { %v2437_v58 = vrot.slane %v2435_v50, 4  ;;  %v2443_v24 = vrot.slane %v2441_v35, 5  ;;  %v2428_v20 = vor.u32 %v2427_v4, %v2424_v0  ;;  %v2448_v39 = vrot.slane %v2446_v15, 4  ;;  %v8057_v0 = vld [vmem:[%s8281_s13 + $0x48] sm:$0xf] }
  0x9a   : > { %v2420_v27 = vsel %vm8320_vm4, %v2415_v14, %v2419_v11  ;;  %v2455_v48 = vshll.u32 %v8717_v44, 16  ;;  %7208 = vmatmul.mubr.msk.bf16.gmra.mrb[8].mxu1 %vm763_vm1, %v6357_v3  ;;  %v2451_v55 = vrot.slane %v2449_v26, 5  ;;  %v2459_v21 = vshrl.u32 %v8717_v44, 16  ;;  %v8740_v50 = vld [vmem:[%s8281_s13 + $0x4c] sm:$0xf] }
  0x9b   : > { %v6558_v25 = vcombine.low %v2410_v6, %v2420_v27  ;;  %v2438_v51 = vor.u32 %v2437_v58, %v2433_v13  ;;  %v2429_v61 = vrot.slane %v2428_v20, 4  ;;  %v2465_v11 = vshll.u32 %v8723_v56, 16  ;;  %10396 = vst [vmem:[#allocation13_spill] sm:$0xff] %v8740_v50  ;;  %v8744_v6 = vld [vmem:[%s8281_s13 + $0xbc] sm:$0x1] }
  0x9c   : > { %v2457_v19 = vrot.slane %v2455_v48, 5  ;;  %v6358_v35 = vcombine.low %v8057_v0, %v8740_v50  ;;  %10397 = vst [vmem:[#allocation14_spill] sm:$0xff] %v8744_v6  ;;  %v2452_v14 = vor.u32 %v2451_v55, %v2448_v39  ;;  %v2461_v4 = vrot.slane %v2459_v21, 4  ;;  %v8059_v15 = vld [vmem:[%s8281_s13 + $0x54] sm:$0xf] }
  0x9d   : > { %7322 = vmatmul.mubr.msk.bf16.gmra.mrb[20].mxu0 %vm763_vm1, %v6558_v25  ;;  %v2439_v3 = vrot.slane %v2438_v51, 4  ;;  %v8749_v58 = vld [vmem:[%s8281_s13 + $0x58] sm:$0xf]  ;;  %v6543_v27 = vld [vmem:[%s8281_s13 + $0xc0] sm:$0xf]  ;;  %v2434_v20 = vsel %vm8320_vm4, %v2429_v61, %v2433_v13  ;;  %v2467_v48 = vrot.slane %v2465_v11, 5 }
  0x9e   : > { %10398 = vst [vmem:[#allocation15_spill] sm:$0xff] %v8749_v58  ;;  %v6359_v26 = vcombine.low %v8059_v15, %v8749_v58  ;;  %7211 = vmatprep.mubr.msk.bf16.mxu1 %vm763_vm1, %v6358_v35  ;;  %v2470_v0 = vshrl.u32 %v6540_v33, 16  ;;  %v2473_v22 = vshll.u32 %v6540_v33, 16  ;;  %v8757_v50 = vld [vmem:[%s8281_s13 + $0xc4] sm:$0xf]  ;;  %v2453_v25 = vrot.slane %v2452_v14, 4 }
  0x9f   : > { %v2444_v39 = vsel %vm8320_vm4, %v2439_v3, %v2443_v24  ;;  %v2462_v51 = vor.u32 %v2461_v4, %v2457_v19  ;;  %v2479_v55 = vshll.u32 %v8733_v52, 16  ;;  %v2483_v1 = vshrl.u32 %v8733_v52, 16  ;;  %v8764_v13 = vld [vmem:[%s8281_s13 + $0xc8] sm:$0x1] }
  0xa0   : > { %v6559_v21 = vcombine.low %v2434_v20, %v2444_v39  ;;  %v2472_v15 = vrot.slane %v2470_v0, 4  ;;  %v2475_v58 = vrot.slane %v2473_v22, 5  ;;  %v2458_v33 = vsel %vm8320_vm4, %v2453_v25, %v2457_v19  ;;  %v6579_v39 = vld [vmem:[%s8281_s13 + $0xc] sm:$0xe] }
  0xa1   : > { %v2463_v61 = vrot.slane %v2462_v51, 4  ;;  %v2481_v11 = vrot.slane %v2479_v55, 5  ;;  %v2489_v35 = vshll.u32 %v8744_v6, 16  ;;  %v2485_v3 = vrot.slane %v2483_v1, 4  ;;  %v8819_v6 = vld [vmem:[%s8281_s13 + $0x10] sm:$0xf] }
  0xa2   : > { %7325 = vmatprep.mubr.msk.bf16.mxu0 %vm763_vm1, %v6559_v21  ;;  %v2476_v24 = vor.u32 %v2475_v58, %v2472_v15  ;;  %v2494_v14 = vshrl.u32 %v6543_v27, 16  ;;  %v2497_v4 = vshll.u32 %v6543_v27, 16  ;;  %7212 = vmatmul.mubr.msk.bf16.gmra.mrb[12].mxu1 %vm763_vm1, %v6359_v26  ;;  %v2503_v19 = vshll.u32 %v8757_v50, 16 }
  0xa3   : > { %v2468_v22 = vsel %vm8320_vm4, %v2463_v61, %v2467_v48  ;;  %v2491_v20 = vrot.slane %v2489_v35, 5  ;;  %v2507_v0 = vshrl.u32 %v8757_v50, 16  ;;  %v2486_v1 = vor.u32 %v2485_v3, %v2481_v11  ;;  %v8061_v61 = vld [vmem:[%s8281_s13 + $0x60] sm:$0xf]  ;;  %v8782_v35 = vld [vmem:[%s8281_s13 + $0x64] sm:$0xf] }
  0xa4   : > { %v6560_v25 = vcombine.low %v2458_v33, %v2468_v22  ;;  %v2477_v58 = vrot.slane %v2476_v24, 4  ;;  %v2496_v51 = vrot.slane %v2494_v14, 4  ;;  %v2499_v27 = vrot.slane %v2497_v4, 5  ;;  %v8063_v24 = vld [vmem:[%s8281_s13 + $0x6c] sm:$0xf] }
  0xa5   : > { %v2505_v55 = vrot.slane %v2503_v19, 5  ;;  %v2509_v48 = vrot.slane %v2507_v0, 4  ;;  %v2513_v26 = vshll.u32 %v8764_v13, 16  ;;  %v2487_v15 = vrot.slane %v2486_v1, 4  ;;  %v8787_v3 = vld [vmem:[%s8281_s13 + $0x70] sm:$0xf] }
  0xa6   : > { %7326 = vmatmul.mubr.msk.bf16.gmra.mrb[24].mxu0 %vm763_vm1, %v6560_v25  ;;  %v2482_v21 = vsel %vm8320_vm4, %v2477_v58, %v2481_v11  ;;  %v6360_v33 = vcombine.low %v8061_v61, %v8782_v35  ;;  %10399 = vst [vmem:[#allocation16_spill] sm:$0xff] %v8787_v3  ;;  %v6361_v14 = vcombine.low %v8063_v24, %v8787_v3  ;;  %v6580_v0 = vld [vmem:[%s8281_s13 + $0x18] sm:$0xe]  ;;  %v6595_v25 = vrot.slane %v6579_v39, 9  ;;  %v8065_v58 = vld [vmem:[%s8281_s13 + $0x10] sm:$0xf] }
  0xa7   : > { %v2500_v4 = vor.u32 %v2499_v27, %v2496_v51  ;;  %v2510_v22 = vor.u32 %v2509_v48, %v2505_v55  ;;  %v2515_v19 = vrot.slane %v2513_v26, 5  ;;  %v2492_v11 = vsel %vm8320_vm4, %v2487_v15, %v2491_v20  ;;  %v8066_v27 = vld [vmem:[%s8281_s13 + $0x14] sm:$0x1]  ;;  %v8067_v39 = vld [vmem:[%s8281_s13 + $0x1c] sm:$0xf] }
  0xa8   : > { %7215 = vmatprep.mubr.msk.bf16.mxu1 %vm763_vm1, %v6360_v33  ;;  %v2877_v1 = vrot.slane %v8065_v58, 5  ;;  %v6561_v61 = vcombine.low %v2482_v21, %v2492_v11  ;;  %v2880_v48 = vrot.slane %v8066_v27, 5  ;;  %v6596_v15 = vrot.slane %v6580_v0, 9  ;;  %v6581_v21 = vld [vmem:[%s8281_s13 + $0x24] sm:$0xe] }
  0xa9   : > { %v2501_v24 = vrot.slane %v2500_v4, 4  ;;  %v2511_v3 = vrot.slane %v2510_v22, 4  ;;  %v2884_v33 = vrot.slane %v8067_v39, 5  ;;  %v8068_v11 = vld [vmem:[%s8281_s13 + $0x20] sm:$0x1] }
  0xaa   : > { %v2878_v20 = vsel %vm8795_vm7, %v6595_v25, %v2877_v1  ;;  %v2879_v26 = vrot.slane %v2877_v1, 4  ;;  %7329 = vmatprep.mubr.msk.bf16.mxu0 %vm763_vm1, %v6561_v61  ;;  %7216 = vmatmul.mubr.msk.bf16.gmra.mrb[16].mxu1 %vm763_vm1, %v6361_v14  ;;  %v2887_v25 = vrot.slane %v8068_v11, 5  ;;  %v6582_v58 = vld [vmem:[%s8281_s13 + $0x30] sm:$0xe]  ;;  %v8813_v0 = vld [vmem:[%s8281_s13 + $0x8] sm:$0x1] }
  0xab   : > { %v2506_v4 = vsel %vm8320_vm4, %v2501_v24, %v2505_v55  ;;  %v2516_v22 = vsel %vm8320_vm4, %v2511_v3, %v2515_v19  ;;  %v2886_v39 = vrot.slane %v2884_v33, 4  ;;  %v1329_v55 = vrot.slane %v8819_v6, 5  ;;  %v8071_v14 = vld [vmem:[%s8281_s13 + $0x78] sm:$0xf]  ;;  %v8824_v19 = vld [vmem:[%s8281_s13 + $0x7c] sm:$0xf] }
  0xac   : > { %v6562_v27 = vcombine.low %v2506_v4, %v2516_v22  ;;  %v2881_v61 = vsel %vm8795_vm7, %v2879_v26, %v2880_v48  ;;  %v6362_v24 = vcombine.low %v8071_v14, %v8824_v19  ;;  %v6597_v11 = vrot.slane %v6581_v21, 9  ;;  %v6583_v1 = vld [vmem:[%s8281_s13 + $0x3c] sm:$0xe]  ;;  %v8073_v21 = vld [vmem:[%s8281_s13 + $0x84] sm:$0xf] }
  0xad   : > { %v6612_v3 = vcombine.low %v2878_v20, %v2881_v61  ;;  %v2885_v48 = vsel %vm8795_vm7, %v6596_v15, %v2884_v33  ;;  %v2891_v26 = vrot.slane %v8445_v7, 5  ;;  %v2894_v4 = vrot.slane %v8448_v18, 5  ;;  %v8839_v61 = vld [vmem:[%s8281_s13 + $0x88] sm:$0xf]  ;;  %v8845_v18 = vld [vmem:[%s8281_s13 + $0x14] sm:$0x1] }
  0xae   : > { %7330 = vmatmul.mubr.msk.bf16.gmra.mrb[28].mxu0 %vm763_vm1, %v6562_v27  ;;  %v6598_v22 = vrot.slane %v6582_v58, 9  ;;  %v2888_v20 = vsel %vm8795_vm7, %v2886_v39, %v2887_v25  ;;  %7219 = vmatprep.mubr.msk.bf16.mxu1 %vm763_vm1, %v6362_v24  ;;  %v6363_v27 = vcombine.low %v8073_v21, %v8839_v61  ;;  %v2898_v15 = vrot.slane %v8459_v31, 5  ;;  %v8856_v24 = vld [vmem:[%s8281_s13 + $0x48] sm:$0xe]  ;;  %v1269_v33 = vld [vmem:[%s8281_s13] sm:$0xe] }
  0xaf   : > { %7335 = vmatprep.mubr.msk.bf16.mxu0 %vm763_vm1, %v6612_v3  ;;  %v2901_v7 = vrot.slane %v8467_v38, 5  ;;  %v2892_v25 = vsel %vm8795_vm7, %v6597_v11, %v2891_v26  ;;  %v2893_v58 = vrot.slane %v2891_v26, 4  ;;  %v6364_v39 = vcombine.low %v8471_v47, %v8477_v53  ;;  %v6585_v53 = vld [vmem:[%s8281_s13 + $0x54] sm:$0xe] }
  0xb0   : > { %v3445_v3 = vsel %vm812_vm0, %v8544_v34, 0  ;;  %v2900_v31 = vrot.slane %v2898_v15, 4  ;;  %v6599_v14 = vrot.slane %v6583_v1, 9  ;;  %v2905_v38 = vrot.slane %v8508_v40, 5 }
  0xb1   : > { %v6613_v21 = vcombine.low %v2885_v48, %v2888_v20  ;;  %v2895_v11 = vsel %vm8795_vm7, %v2893_v58, %v2894_v4  ;;  %v8862_v26 = vsel %vm8795_vm7, %v6598_v22, %v2898_v15  ;;  %v2912_v47 = vrot.slane %v8522_v63, 5  ;;  %v6586_v20 = vld [vmem:[%s8281_s13 + $0x60] sm:$0xe] }
  0xb2   : > { %7220 = vmatmul.mubr.msk.bf16.gmra.mrb[20].mxu1 %vm763_vm1, %v6363_v27  ;;  %v6614_v34 = vcombine.low %v2892_v25, %v2895_v11  ;;  %v2902_v40 = vsel %vm8795_vm7, %v2900_v31, %v2901_v7  ;;  %v2907_v1 = vrot.slane %v2905_v38, 4  ;;  %v2908_v48 = vrot.slane %v8514_v57, 5  ;;  %v1270_v27 = vld [vmem:[%s8281_s13 + $0xc] sm:$0xe] }
  0xb3   : > { %7223 = vmatprep.mubr.msk.bf16.mxu1 %vm763_vm1, %v6364_v39  ;;  %v6365_v4 = vcombine.low %v8488_v8, %v8494_v16  ;;  %v6600_v22 = vrot.slane %v8856_v24, 9  ;;  %v2915_v15 = vrot.slane %v8531_v17, 5  ;;  %v6615_v25 = vcombine.low %v8862_v26, %v2902_v40  ;;  %v8885_v39 = vld [vmem:[%s10361_s1 + $0xe] sm:$0x3] }
  0xb4   : > { %v2906_v7 = vsel %vm8795_vm7, %v6599_v14, %v2905_v38  ;;  %v6601_v58 = vrot.slane %v6585_v53, 9  ;;  %v2919_v57 = vrot.slane %v8584_v30, 5  ;;  %v2914_v8 = vrot.slane %v2912_v47, 4  ;;  %v6587_v14 = vld [vmem:[%s8281_s13 + $0x6c] sm:$0xe] }
  0xb5   : > { %v6366_v16 = vcombine.low %v8535_v23, %v8538_v28  ;;  %v2922_v17 = vrot.slane %v8589_v43, 5  ;;  %v6602_v31 = vrot.slane %v6586_v20, 9  ;;  %v2909_v30 = vsel %vm8795_vm7, %v2907_v1, %v2908_v48  ;;  %v6588_v1 = vld [vmem:[%s8281_s13 + $0x78] sm:$0xe]  ;;  %v8077_v48 = vld [vmem:[%s10361_s1 + $0x6] sm:$0x3] }
  0xb6   : > { %7336 = vmatmul.mubr.msk.bf16.vlgmr.msra.gmra.mrb[0].mxu0 %vm763_vm1, %v6613_v21  ;;  %v8899_v38 = vsel %vm8795_vm7, %v6601_v58, %v2919_v57  ;;  %v2921_v24 = vrot.slane %v2919_v57, 4  ;;  %v2926_v21 = vrot.slane %v8597_v59, 5  ;;  %v2929_v23 = vrot.slane %v8605_v5, 5 }
  0xb7   : > { %7368 = vmatpush3.bf16.msra.mxu0 %v3445_v3  ;;  %7339 = vmatprep.mubr.msk.bf16.mxu0 %vm763_vm1, %v6614_v34  ;;  %v1531_v28 = vsel %vm812_vm0, %v8574_v10, 0  ;;  %v6384_v43 = vrot.slane %v1269_v33, 9  ;;  %v8076_v3 = vld [vmem:[%s8281_s13 + $0x4] sm:$0xf]  ;;  %v6385_v5 = vrot.slane %v1270_v27, 9  ;;  %v6616_v34 = vcombine.low %v2906_v7, %v2909_v30 }
  0xb8   : > { %v1322_v11 = vrot.slane %v8076_v3, 5  ;;  %7938 = vmatprep.subr.msk.bf16.mxu0 %vm812_vm0, %v8885_v39  ;;  %v8910_v26 = vsel %vm8795_vm7, %v2921_v24, %v2922_v17  ;;  %v8914_v53 = vsel %vm8795_vm7, %v6602_v31, %v2926_v21  ;;  %v2928_v59 = vrot.slane %v2926_v21, 4  ;;  %7232 = vmatpush3.bf16.msra.mxu1 %v1531_v28  ;;  %v1271_v30 = vld [vmem:[%s8281_s13 + $0x18] sm:$0xe] }
  0xb9   : > { %v6618_v10 = vcombine.low %v8899_v38, %v8910_v26  ;;  %v1331_v40 = vrot.slane %v1329_v55, 4  ;;  %7934 = vmatprep.subr.msk.bf16.mxu1 %vm812_vm0, %v8077_v48  ;;  %v8934_v27 = vsel %vm8795_vm7, %v6385_v5, %v1329_v55  ;;  %v6603_v7 = vrot.slane %v6587_v14, 9 }
  0xba   : > { %v1324_v33 = vrot.slane %v1322_v11, 4  ;;  %7224 = vmatmul.mubr.msk.bf16.gmra.mrb[24].mxu1 %vm763_vm1, %v6365_v4  ;;  %v8928_v20 = vsel %vm8795_vm7, %v2928_v59, %v2929_v23  ;;  %v2933_v58 = vrot.slane %v8613_v32, 5  ;;  %v1323_v4 = vsel %vm8795_vm7, %v6384_v43, %v1322_v11  ;;  %v6589_v23 = vld [vmem:[%s8281_s13 + $0x84] sm:$0xe]  ;;  %v8078_v11 = vld [vmem:[%s8281_s13 + $0x20] sm:$0x1] }
  0xbb   : > { %7227 = vmatprep.mubr.msk.bf16.mxu1 %vm763_vm1, %v6366_v16  ;;  %v6619_v57 = vcombine.low %v8914_v53, %v8928_v20  ;;  %v10402_v17 = vrot.slane %v8845_v18, 5  ;;  %v2936_v55 = vrot.slane %v8617_v45, 5  ;;  %v10403_v31 = vrot.slane %v8813_v0, 5  ;;  %v6591_v53 = vld [vmem:[%s8281_s13 + $0x9c] sm:$0xe]  ;;  %v10406_v20 = vld [vmem:[#allocation11_spill] sm:$0xff] }
  0xbc   : > { %v8957_v14 = vsel %vm8795_vm7, %v6603_v7, %v2933_v58  ;;  %v2935_v18 = vrot.slane %v2933_v58, 4  ;;  %v2913_v45 = vsel %vm8795_vm7, %v6600_v22, %v2912_v47  ;;  %v6604_v0 = vrot.slane %v6588_v1, 9  ;;  %v6590_v22 = vld [vmem:[%s8281_s13 + $0x90] sm:$0xe]  ;;  %v1272_v58 = vld [vmem:[%s8281_s13 + $0x24] sm:$0xe] }
  0xbd   : > { %v8946_v6 = vsel %vm8795_vm7, %v1331_v40, %v10402_v17  ;;  %v1326_v32 = vsel %vm8795_vm7, %v1324_v33, %v10403_v31  ;;  %v2940_v24 = vrot.slane %v8629_v2, 5  ;;  %v2943_v21 = vrot.slane %v8635_v9, 5  ;;  %v1273_v17 = vld [vmem:[%s8281_s13 + $0x30] sm:$0xe] }
  0xbe   : > { %v6402_v16 = vcombine.low %v8934_v27, %v8946_v6  ;;  %7340 = vmatmul.mubr.msk.bf16.gmra.mrb[4].mxu0 %vm763_vm1, %v6615_v25  ;;  %v2916_v28 = vsel %vm8795_vm7, %v2914_v8, %v2915_v15  ;;  %v6367_v25 = vcombine.low %v8557_v49, %v8563_v60  ;;  %v8975_v63 = vsel %vm8795_vm7, %v2935_v18, %v2936_v55  ;;  %v6592_v55 = vld [vmem:[%s8281_s13 + $0xa8] sm:$0xe] }
  0xbf   : > { %7343 = vmatprep.mubr.msk.bf16.mxu0 %vm763_vm1, %v6616_v34  ;;  %v1336_v47 = vrot.slane %v8662_v41, 5  ;;  %v6401_v43 = vcombine.low %v1323_v4, %v1326_v32  ;;  %v6620_v2 = vcombine.low %v8957_v14, %v8975_v63  ;;  %v8983_v9 = vsel %vm8795_vm7, %v6604_v0, %v2940_v24  ;;  %v8082_v63 = vld [vmem:[%s8281_s13 + $0x50] sm:$0x1] }
  0xc0   : > { %v2942_v3 = vrot.slane %v2940_v24, 4  ;;  %v6386_v15 = vrot.slane %v1271_v30, 9  ;;  %v1339_v49 = vrot.slane %v8078_v11, 5  ;;  %v6605_v60 = vrot.slane %v6589_v23, 9  ;;  %v10405_v11 = vld [vmem:[#allocation13_spill] sm:$0xff] }
  0xc1   : > { %v1338_v8 = vrot.slane %v1336_v47, 4  ;;  %v6617_v59 = vcombine.low %v2913_v45, %v2916_v28  ;;  %v2947_v5 = vrot.slane %v8647_v42, 5  ;;  %v2950_v33 = vrot.slane %v8651_v54, 5  ;;  %v8079_v45 = vld [vmem:[%s8281_s13 + $0x2c] sm:$0x1] }
  0xc2   : > { %v8988_v41 = vsel %vm8795_vm7, %v2942_v3, %v2943_v21  ;;  %7228 = vmatmul.mubr.msk.bf16.gmra.mrb[28].mxu1 %vm763_vm1, %v6367_v25  ;;  %v6606_v40 = vrot.slane %v6590_v22, 9  ;;  %v1343_v1 = vrot.slane %v8667_v62, 5  ;;  %v1337_v42 = vsel %vm8795_vm7, %v6386_v15, %v1336_v47  ;;  %v1274_v28 = vld [vmem:[%s8281_s13 + $0x3c] sm:$0xe]  ;;  %v10404_v15 = vld [vmem:[#allocation10_spill] sm:$0xff] }
  0xc3   : > { %v6621_v34 = vcombine.low %v8983_v9, %v8988_v41  ;;  %7233 = vmatprep.mubr.msk.bf16.mxu1 %vm763_vm1, %v6401_v43  ;;  %v8999_v48 = vsel %vm8795_vm7, %v6605_v60, %v2947_v5  ;;  %v2949_v27 = vrot.slane %v2947_v5, 4  ;;  %v1340_v7 = vsel %vm8795_vm7, %v1338_v8, %v1339_v49  ;;  %v1275_v8 = vld [vmem:[%s8281_s13 + $0x48] sm:$0xe] }
  0xc4   : > { %v2954_v54 = vrot.slane %v8677_v46, 5  ;;  %v2957_v4 = vrot.slane %v8680_v29, 5  ;;  %v1350_v6 = vrot.slane %v8702_v12, 5  ;;  %v6403_v32 = vcombine.low %v1337_v42, %v1340_v7 }
  0xc5   : > { %v9011_v62 = vsel %vm8795_vm7, %v2949_v27, %v2950_v33  ;;  %v6387_v18 = vrot.slane %v1272_v58, 9  ;;  %v1345_v30 = vrot.slane %v1343_v1, 4  ;;  %v1346_v12 = vrot.slane %v8079_v45, 5 }
  0xc6   : > { %7344 = vmatmul.mubr.msk.bf16.gmra.mrb[8].mxu0 %vm763_vm1, %v6617_v59  ;;  %v6622_v46 = vcombine.low %v8999_v48, %v9011_v62  ;;  %v9024_v29 = vsel %vm8795_vm7, %v6606_v40, %v2954_v54  ;;  %v2956_v31 = vrot.slane %v2954_v54, 4  ;;  %v6388_v38 = vrot.slane %v1273_v17, 9  ;;  %v6594_v59 = vld [vmem:[%s8281_s13 + $0xc0] sm:$0xe]  ;;  %v8081_v40 = vld [vmem:[%s8281_s13 + $0x44] sm:$0x1] }
  0xc7   : > { %7347 = vmatprep.mubr.msk.bf16.mxu0 %vm763_vm1, %v6618_v10  ;;  %v1352_v26 = vrot.slane %v1350_v6, 4  ;;  %v8080_v10 = vld [vmem:[%s8281_s13 + $0x38] sm:$0x1]  ;;  %v6608_v23 = vrot.slane %v6592_v55, 9  ;;  %v1357_v25 = vrot.slane %v8708_v36, 5  ;;  %v1344_v47 = vsel %vm8795_vm7, %v6387_v18, %v1343_v1 }
  0xc8   : > { %v9029_v0 = vsel %vm8795_vm7, %v2956_v31, %v2957_v4  ;;  %v1353_v24 = vrot.slane %v8080_v10, 5  ;;  %v1347_v22 = vsel %vm8795_vm7, %v1345_v30, %v1346_v12  ;;  %v2968_v43 = vrot.slane %v8717_v44, 5  ;;  %v1276_v12 = vld [vmem:[%s8281_s13 + $0x54] sm:$0xe] }
  0xc9   : > { %v6623_v21 = vcombine.low %v9024_v29, %v9029_v0  ;;  %v2971_v3 = vrot.slane %v8723_v56, 5  ;;  %v1364_v49 = vrot.slane %v10405_v11, 5  ;;  %v6389_v44 = vrot.slane %v1274_v28, 9 }
  0xca   : > { %7234 = vmatmul.mubr.msk.bf16.vlgmr.msra.gmra.mrb[0].mxu1 %vm763_vm1, %v6402_v16  ;;  %v1351_v16 = vsel %vm8795_vm7, %v6388_v38, %v1350_v6  ;;  %v1354_v36 = vsel %vm8795_vm7, %v1352_v26, %v1353_v24  ;;  %v9057_v56 = vsel %vm8795_vm7, %v6608_v23, %v2968_v43  ;;  %v2970_v60 = vrot.slane %v2968_v43, 4  ;;  %v10407_v6 = vld [vmem:[#allocation12_spill] sm:$0xff]  ;;  %v10408_v38 = vld [vmem:[#allocation15_spill] sm:$0xff]  ;;  %v8083_v43 = vld [vmem:[%s8281_s13 + $0x5c] sm:$0x1] }
  0xcb   : > { %7237 = vmatprep.mubr.msk.bf16.mxu1 %vm763_vm1, %v6403_v32  ;;  %7609 = vmatpush3.bf16.msra.mxu1 %v10404_v15  ;;  %v6404_v5 = vcombine.low %v1344_v47, %v1347_v22  ;;  %v1359_v33 = vrot.slane %v1357_v25, 4  ;;  %v1360_v1 = vrot.slane %v8081_v40, 5  ;;  %v6405_v27 = vcombine.low %v1351_v16, %v1354_v36  ;;  %v6593_v15 = vld [vmem:[%s8281_s13 + $0xb4] sm:$0xe]  ;;  %v8084_v16 = vld [vmem:[%s8281_s13 + $0x68] sm:$0x1] }
  0xcc   : > { %v9069_v42 = vsel %vm8795_vm7, %v2970_v60, %v2971_v3  ;;  %v6390_v7 = vrot.slane %v1275_v8, 9  ;;  %v1366_v14 = vrot.slane %v1364_v49, 4  ;;  %v6610_v54 = vrot.slane %v6594_v59, 9 }
  0xcd   : > { %v6625_v58 = vcombine.low %v9057_v56, %v9069_v42  ;;  %v1358_v4 = vsel %vm8795_vm7, %v6389_v44, %v1357_v25  ;;  %v6607_v17 = vrot.slane %v6591_v53, 9  ;;  %v2964_v55 = vrot.slane %v10407_v6, 5  ;;  %v1277_v25 = vld [vmem:[%s8281_s13 + $0x60] sm:$0xe]  ;;  %v1278_v53 = vld [vmem:[%s8281_s13 + $0x6c] sm:$0xe] }
  0xce   : > { %7348 = vmatmul.mubr.msk.bf16.gmra.mrb[12].mxu0 %vm763_vm1, %v6619_v57  ;;  %v2961_v57 = vrot.slane %v10406_v20, 5  ;;  %v1361_v31 = vsel %vm8795_vm7, %v1359_v33, %v1360_v1  ;;  %v2982_v18 = vrot.slane %v8757_v50, 5  ;;  %v2985_v30 = vrot.slane %v8764_v13, 5  ;;  %v8011_v56 = vld [vmem:[%s8281_s13 + $0x18] sm:$0xff]  }
  0xcf   : > { %7351 = vmatprep.mubr.msk.bf16.mxu0 %vm763_vm1, %v6620_v2  ;;  %v1367_v2 = vrot.slane %v8082_v63, 5  ;;  %v1365_v45 = vsel %vm8795_vm7, %v6390_v7, %v1364_v49  ;;  %v1371_v26 = vrot.slane %v10408_v38, 5  ;;  %v1378_v13 = vrot.slane %v8782_v35, 5  ;;  %v10409_v49 = vld [vmem:[#allocation14_spill] sm:$0xff] }
  0xd0   : > { %v2963_v32 = vrot.slane %v2961_v57, 4  ;;  %v9091_v24 = vsel %vm8795_vm7, %v6610_v54, %v2982_v18  ;;  %v2984_v50 = vrot.slane %v2982_v18, 4  ;;  %v6406_v23 = vcombine.low %v1358_v4, %v1361_v31 }
  0xd1   : > { %v1368_v10 = vsel %vm8795_vm7, %v1366_v14, %v1367_v2  ;;  %v2962_v28 = vsel %vm8795_vm7, %v6607_v17, %v2961_v57  ;;  %v6391_v35 = vrot.slane %v1276_v12, 9  ;;  %v2975_v22 = vrot.slane %v8733_v52, 5  ;;  %v1279_v57 = vld [vmem:[%s8281_s13 + $0x78] sm:$0xe]  ;;  %v8087_v12 = vld [vmem:[%s8281_s13 + $0x94] sm:$0xf] }
  0xd2   : > { %7238 = vmatmul.mubr.msk.bf16.gmra.mrb[4].mxu1 %vm763_vm1, %v6404_v5  ;;  %v2965_v47 = vsel %vm8795_vm7, %v2963_v32, %v2964_v55  ;;  %v9110_v9 = vsel %vm8795_vm7, %v2984_v50, %v2985_v30  ;;  %v6407_v41 = vcombine.low %v1365_v45, %v1368_v10  ;;  %v1374_v3 = vrot.slane %v8083_v43, 5  ;;  %v10410_v5 = vld [vmem:[#allocation16_spill] sm:$0xff]  ;;  %v1280_v45 = vld [vmem:[%s8281_s13 + $0x84] sm:$0xe] }
  0xd3   : > { %7241 = vmatprep.mubr.msk.bf16.mxu1 %vm763_vm1, %v6405_v27  ;;  %v6627_v48 = vcombine.low %v9091_v24, %v9110_v9  ;;  %v6392_v62 = vrot.slane %v1277_v25, 9  ;;  %v1381_v36 = vrot.slane %v8084_v16, 5  ;;  %v6624_v52 = vcombine.low %v2962_v28, %v2965_v47  ;;  %v1283_v16 = vld [vmem:[%s8281_s13 + $0xa8] sm:$0xe]  ;;  %v1284_v24 = vld [vmem:[%s8281_s13 + $0xb4] sm:$0xe] }
  0xd4   : > { %v6609_v8 = vrot.slane %v6593_v15, 9  ;;  %v2977_v11 = vrot.slane %v2975_v22, 4  ;;  %v2978_v44 = vrot.slane %v10409_v49, 5  ;;  %v1372_v60 = vsel %vm8795_vm7, %v6391_v35, %v1371_v26  ;;  %v8089_v35 = vld [vmem:[%s8281_s13 + $0x98] sm:$0x1] }
  0xd5   : > { %v1385_v33 = vrot.slane %v10410_v5, 5  ;;  %v1379_v40 = vsel %vm8795_vm7, %v6392_v62, %v1378_v13  ;;  %v1392_v20 = vrot.slane %v8824_v19, 5  ;;  %v6393_v2 = vrot.slane %v1278_v53, 9  ;;  %v8085_v19 = vld [vmem:[%s8281_s13 + $0x74] sm:$0x1] }
  0xd6   : > { %7352 = vmatmul.mubr.msk.bf16.gmra.mrb[16].mxu0 %vm763_vm1, %v6621_v34  ;;  %v1373_v34 = vrot.slane %v1371_v26, 4  ;;  %v2976_v7 = vsel %vm8795_vm7, %v6609_v8, %v2975_v22  ;;  %v2979_v14 = vsel %vm8795_vm7, %v2977_v11, %v2978_v44  ;;  %v1388_v4 = vrot.slane %v8085_v19, 5  ;;  %v1281_v26 = vld [vmem:[%s8281_s13 + $0x90] sm:$0xe]  ;;  %v1282_v15 = vld [vmem:[%s8281_s13 + $0x9c] sm:$0xe] }
  0xd7   : > { %7355 = vmatprep.mubr.msk.bf16.mxu0 %vm763_vm1, %v6622_v46  ;;  %v1380_v46 = vrot.slane %v1378_v13, 4  ;;  %v1387_v54 = vrot.slane %v1385_v33, 4  ;;  %v6394_v29 = vrot.slane %v1279_v57, 9  ;;  %v1394_v0 = vrot.slane %v1392_v20, 4  ;;  %v8091_v62 = vld [vmem:[%s8281_s13 + $0xac] sm:$0xf] }
  0xd8   : > { %v1375_v59 = vsel %vm8795_vm7, %v1373_v34, %v1374_v3  ;;  %v6626_v6 = vcombine.low %v2976_v7, %v2979_v14  ;;  %v1386_v55 = vsel %vm8795_vm7, %v6393_v2, %v1385_v33  ;;  %v1399_v32 = vrot.slane %v8839_v61, 5  ;;  %v8092_v49 = vld [vmem:[%s8281_s13 + $0xa4] sm:$0x1]  ;;  %v8093_v5 = vld [vmem:[%s8281_s13 + $0xb0] sm:$0x1] }
  0xd9   : > { %v1382_v1 = vsel %vm8795_vm7, %v1380_v46, %v1381_v36  ;;  %v6408_v27 = vcombine.low %v1372_v60, %v1375_v59  ;;  %v1389_v31 = vsel %vm8795_vm7, %v1387_v54, %v1388_v4  ;;  %v1393_v18 = vsel %vm8795_vm7, %v6394_v29, %v1392_v20  ;;  %v8094_v9 = vld [vmem:[%s8281_s13 + $0xb8] sm:$0xf]  ;;  %v8095_v2 = vld [vmem:[%s8281_s13 + $0xbc] sm:$0x1] }
  0xda   : > { %7242 = vmatmul.mubr.msk.bf16.gmra.mrb[8].mxu1 %vm763_vm1, %v6406_v23  ;;  %v6409_v63 = vcombine.low %v1379_v40, %v1382_v1  ;;  %v1406_v38 = vrot.slane %v8087_v12, 5  ;;  %v6410_v61 = vcombine.low %v1386_v55, %v1389_v31  ;;  %v6395_v50 = vrot.slane %v1280_v45, 9  ;;  %v8088_v23 = vld [vmem:[%s8281_s13 + $0x8c] sm:$0x1]  ;;  %v8012_v40 = vld [vmem:[%s8281_s13 + $0x24] sm:$0xff]   ;;  %v8013_v1 = vld [vmem:[%s8281_s13 + $0x30] sm:$0xff]  }
  0xdb   : > { %7245 = vmatprep.mubr.msk.bf16.mxu1 %vm763_vm1, %v6407_v41  ;;  %v1401_v13 = vrot.slane %v1399_v32, 4  ;;  %v1402_v28 = vrot.slane %v8088_v23, 5  ;;  %v6396_v25 = vrot.slane %v1281_v26, 9  ;;  %v1409_v22 = vrot.slane %v8089_v35, 5  ;;  %v8090_v41 = vld [vmem:[%s8281_s13 + $0xa0] sm:$0xf] }
  0xdc   : > { %v1408_v47 = vrot.slane %v1406_v38, 4  ;;  %v1400_v42 = vsel %vm8795_vm7, %v6395_v50, %v1399_v32  ;;  %v1413_v34 = vrot.slane %v8090_v41, 5  ;;  %v1420_v46 = vrot.slane %v8091_v62, 5  ;;  %v6709_v19 = vld [vmem:[%s8281_s13 + $0x18] sm:$0xf]  ;;  %v8015_v26 = vld [vmem:[%s8281_s13 + $0x48] sm:$0xff]  }
  0xdd   : > { %v1407_v43 = vsel %vm8795_vm7, %v6396_v25, %v1406_v38  ;;  %v6397_v8 = vrot.slane %v1282_v15, 9  ;;  %v1416_v44 = vrot.slane %v8092_v49, 5  ;;  %v6398_v60 = vrot.slane %v1283_v16, 9  ;;  %v9211_v4 = vld [vmem:[%s8281_s13 + $0x1c] sm:$0xf] }
  0xde   : > { %7356 = vmatmul.mubr.msk.bf16.gmra.mrb[20].mxu0 %vm763_vm1, %v6623_v21  ;;  %v8086_v21 = vld [vmem:[%s8281_s13 + $0x80] sm:$0x1]  ;;  %v1410_v3 = vsel %vm8795_vm7, %v1408_v47, %v1409_v22  ;;  %v1415_v11 = vrot.slane %v1413_v34, 4  ;;  %v1422_v59 = vrot.slane %v1420_v46, 4  ;;  %v1423_v33 = vrot.slane %v8093_v5, 5 }
  0xdf   : > { %7359 = vmatprep.mubr.msk.bf16.mxu0 %vm763_vm1, %v6624_v52  ;;  %v1395_v17 = vrot.slane %v8086_v21, 5  ;;  %v6413_v52 = vcombine.low %v1407_v43, %v1410_v3  ;;  %v4171_v53 = vsel %vm812_vm0, %v8885_v39, 0  ;;  %v1414_v20 = vsel %vm8795_vm7, %v6397_v8, %v1413_v34  ;;  %v9205_v39 = vld [vmem:[%s10361_s1 + $0x10] sm:$0x3]  ;;  %v9234_v25 = vld [vmem:[%s8281_s13 + $0x34] sm:$0xf] }
  0xe0   : > { %v1417_v57 = vsel %vm8795_vm7, %v1415_v11, %v1416_v44  ;;  %v1424_v7 = vsel %vm8795_vm7, %v1422_v59, %v1423_v33  ;;  %v6399_v14 = vrot.slane %v1284_v24, 9  ;;  %v1430_v54 = vrot.slane %v8095_v2, 5  ;;  %v6715_v50 = vld [vmem:[%s8281_s13 + $0x30] sm:$0xf]  ;;  %v9238_v47 = vld [vmem:[%s8281_s13 + $0x20] sm:$0x1] }
  0xe1   : > { %v1396_v30 = vsel %vm8795_vm7, %v1394_v0, %v1395_v17  ;;  %v6414_v29 = vcombine.low %v1414_v20, %v1417_v57  ;;  %v6712_v0 = vld [vmem:[%s8281_s13 + $0x24] sm:$0xf]  ;;  %v9218_v17 = vld [vmem:[%s8281_s13 + $0x28] sm:$0xf]  ;;  %v3689_v55 = vshrl.u32 %v6709_v19, 16  ;;  %v3692_v31 = vshll.u32 %v6709_v19, 16 }
  0xe2   : > { %7246 = vmatmul.mubr.msk.bf16.gmra.mrb[12].mxu1 %vm763_vm1, %v6408_v27  ;;  %v6411_v10 = vcombine.low %v1393_v18, %v1396_v30  ;;  %v1421_v27 = vsel %vm8795_vm7, %v6398_v60, %v1420_v46  ;;  %v3698_v32 = vshll.u32 %v9211_v4, 16  ;;  %v8014_v18 = vld [vmem:[%s8281_s13 + $0x3c] sm:$0xff]   ;;  %v3702_v45 = vshrl.u32 %v9211_v4, 16  ;;  %v8023_v19 = vld [vmem:[%s8281_s13 + $0xb4] sm:$0xff]  }
  0xe3   : > { %7249 = vmatprep.mubr.msk.bf16.mxu1 %vm763_vm1, %v6409_v63  ;;  %v6415_v21 = vcombine.low %v1421_v27, %v1424_v7  ;;  %v3713_v12 = vshrl.u32 %v6712_v0, 16  ;;  %v3716_v38 = vshll.u32 %v6712_v0, 16  ;;  %v3691_v23 = vrot.slane %v3689_v55, 4  ;;  %v8019_v15 = vld [vmem:[%s8281_s13 + $0x9c] sm:$0xff]   ;;  %v8020_v27 = vld [vmem:[%s8281_s13 + $0xa8] sm:$0xff]  }
  0xe4   : > { %v9240_v35 = vrot.slane %v3698_v32, 5  ;;  %v3704_v22 = vrot.slane %v3702_v45, 4  ;;  %v3737_v43 = vshrl.u32 %v6715_v50, 16  ;;  %v3740_v3 = vshll.u32 %v6715_v50, 16  ;;  %v8017_v44 = vld [vmem:[%s8281_s13 + $0x60] sm:$0xff]  }
  0xe5   : > { %v3746_v62 = vshll.u32 %v9234_v25, 16  ;;  %v3750_v46 = vshrl.u32 %v9234_v25, 16  ;;  %v3708_v16 = vshll.u32 %v9238_v47, 16  ;;  %v6718_v24 = vld [vmem:[%s8281_s13 + $0x3c] sm:$0xf] }
  0xe6   : > { %7360 = vmatmul.mubr.msk.bf16.gmra.mrb[24].mxu0 %vm763_vm1, %v6625_v58  ;;  %v1403_v58 = vsel %vm8795_vm7, %v1401_v13, %v1402_v28  ;;  %v3694_v28 = vrot.slane %v3692_v31, 5  ;;  %v3705_v8 = vor.u32 %v3704_v22, %v9240_v35  ;;  %v3739_v59 = vrot.slane %v3737_v43, 4  ;;  %v9291_v50 = vld [vmem:[%s8281_s13 + $0x44] sm:$0x1] }
  0xe7   : > { %7363 = vmatprep.mubr.msk.bf16.mxu0 %vm763_vm1, %v6626_v6  ;;  %v6412_v36 = vcombine.low %v1400_v42, %v1403_v58  ;;  %v3718_v42 = vrot.slane %v3716_v38, 5  ;;  %v9244_v58 = vld [vmem:[%s8281_s13 + $0x2c] sm:$0x1]  ;;  %v3742_v5 = vrot.slane %v3740_v3, 5  ;;  %v9259_v33 = vrot.slane %v3746_v62, 5  ;;  %v8024_v22 = vld [vmem:[%s8281_s13 + $0xc0] sm:$0xff]  }
  0xe8   : > { %v3732_v49 = vshll.u32 %v9244_v58, 16  ;;  %v3761_v2 = vshrl.u32 %v6718_v24, 16  ;;  %v3780_v62 = vshll.u32 %v9291_v50, 16 }
  0xea   : > { %7250 = vmatmul.mubr.msk.bf16.gmra.mrb[16].mxu1 %vm763_vm1, %v6410_v61  ;;  %v3722_v61 = vshll.u32 %v9218_v17, 16  ;;  %v3734_v57 = vrot.slane %v3732_v49, 5  ;;  %v3763_v38 = vrot.slane %v3761_v2, 4  ;;  %v9326_v49 = vld [vmem:[%s8281_s13 + $0x50] sm:$0x1] }
  0xeb   : > { %7253 = vmatprep.mubr.msk.bf16.mxu1 %vm763_vm1, %v6411_v10  ;;  %v3726_v10 = vshrl.u32 %v9218_v17, 16 }
  0xec   : > { %v9246_v41 = vrot.slane %v3722_v61, 5 }
  0xed   : > { %v3728_v34 = vrot.slane %v3726_v10, 4 }
  0xee   : > { %7364 = vmatmul.mubr.msk.bf16.gmra.mrb[28].mxu0 %vm763_vm1, %v6627_v48  ;;  %v1427_v48 = vrot.slane %v8094_v9, 5  ;;  %v3710_v9 = vrot.slane %v3708_v16, 5  ;;  %v6727_v16 = vld [vmem:[%s8281_s13 + $0x60] sm:$0xf] }
  0xef   : > { %7369 = vmatprep.mubr.msk.bf16.mxu0 %vm763_vm1, %v8011_v56  ;;  %v3715_v56 = vrot.slane %v3713_v12, 4  ;;  %v3729_v60 = vor.u32 %v3728_v34, %v9246_v41  ;;  %v6724_v34 = vld [vmem:[%s8281_s13 + $0x54] sm:$0xf] }
  0xf0   : > { %v1429_v63 = vrot.slane %v1427_v48, 4  ;;  %v1428_v6 = vsel %vm8795_vm7, %v6399_v14, %v1427_v48  ;;  %v9263_v48 = vld [vmem:[%s8281_s13 + $0x38] sm:$0x1]  ;;  %v3743_v14 = vor.u32 %v3742_v5, %v3739_v59  ;;  %v3809_v59 = vshrl.u32 %v6724_v34, 16 }
  0xf1   : > { %v3719_v11 = vor.u32 %v3718_v42, %v3715_v56  ;;  %v3730_v7 = vrot.slane %v3729_v60, 4  ;;  %v3756_v0 = vshll.u32 %v9263_v48, 16  ;;  %v3812_v5 = vshll.u32 %v6724_v34, 16 }
  0xf2   : > { %7254 = vmatmul.mubr.msk.bf16.gmra.mrb[20].mxu1 %vm763_vm1, %v6412_v36  ;;  %v1431_v30 = vsel %vm8795_vm7, %v1429_v63, %v1430_v54  ;;  %v8016_v36 = vld [vmem:[%s8281_s13 + $0x54] sm:$0xff]   ;;  %v9269_v63 = vld [vmem:[%s8281_s13 + $0x40] sm:$0xf]  ;;  %v3764_v54 = vshll.u32 %v6718_v24, 16  ;;  %v3744_v12 = vrot.slane %v3743_v14, 4 }
  0xf3   : > { %7257 = vmatprep.mubr.msk.bf16.mxu1 %vm763_vm1, %v6413_v52  ;;  %v6416_v13 = vcombine.low %v1428_v6, %v1431_v30  ;;  %v3695_v52 = vor.u32 %v3694_v28, %v3691_v23  ;;  %v3720_v20 = vrot.slane %v3719_v11, 4  ;;  %v8018_v6 = vld [vmem:[%s8281_s13 + $0x6c] sm:$0xff]   ;;  %v8021_v30 = vld [vmem:[%s8281_s13 + $0x78] sm:$0xff]   ;;  %v3735_v45 = vsel %vm8320_vm4, %v3730_v7, %v3734_v57  ;;  %v9323_v11 = vld [vmem:[%s8281_s13 + $0x64] sm:$0xf] }
  0xf4   : > { %v3758_v10 = vrot.slane %v3756_v0, 5  ;;  %v9295_v28 = vld [vmem:[%s8281_s13 + $0x4c] sm:$0xf]  ;;  %v3749_v43 = vsel %vm8320_vm4, %v3744_v12, %v9259_v33  ;;  %v9336_v57 = vrot.slane %v3780_v62, 5  ;;  %v3846_v7 = vshrl.u32 %v9323_v11, 16 }
  0xf5   : > { %v3725_v32 = vsel %vm8320_vm4, %v3720_v20, %v9246_v41  ;;  %v9305_v41 = vsel %vm812_vm0, %v9205_v39, 0  ;;  %v3798_v60 = vshrl.u32 %v9295_v28, 16  ;;  %v6730_v14 = vld [vmem:[%s8281_s13 + $0x6c] sm:$0xf]  ;;  %v9348_v0 = vld [vmem:[%s8281_s13 + $0x70] sm:$0xf] }
  0xf6   : > { %7370 = vmatmul.mubr.msk.bf16.vlgmr.msra.gmra.mrb[0].mxu0 %vm763_vm1, %v8012_v40  ;;  %v3752_v40 = vrot.slane %v3750_v46, 4  ;;  %v9301_v42 = vcombine.low %v3725_v32, %v3735_v45  ;;  %v9316_v46 = vld [vmem:[%s8281_s13 + $0x58] sm:$0xf] }
  0xf7   : > { %7402 = vmatpush3.bf16.msra.mxu0 %v4171_v53  ;;  %7373 = vmatprep.mubr.msk.bf16.mxu0 %vm763_vm1, %v8013_v1  ;;  %v3696_v1 = vrot.slane %v3695_v52, 4  ;;  %v3706_v53 = vrot.slane %v3705_v8, 4  ;;  %v3794_v8 = vshll.u32 %v9295_v28, 16  ;;  %v3822_v24 = vshrl.u32 %v9316_v46, 16  ;;  %v6733_v32 = vld [vmem:[%s8281_s13 + $0x78] sm:$0xf] }
  0xf8   : > { %7939 = vmatprep.subr.msk.bf16.mxu0 %vm812_vm0, %v9205_v39  ;;  %v3881_v34 = vshrl.u32 %v6733_v32, 16 }
  0xf9   : > { %v3701_v55 = vsel %vm8320_vm4, %v3696_v1, %v9240_v35  ;;  %v3711_v31 = vsel %vm8320_vm4, %v3706_v53, %v3710_v9  ;;  %v3833_v9 = vshrl.u32 %v6727_v16, 16  ;;  %v3836_v1 = vshll.u32 %v6727_v16, 16  ;;  %v8025_v53 = vld [vmem:[%s8281_s13 + $0x90] sm:$0xff]  }
  0xfa   : > { %7258 = vmatmul.mubr.msk.bf16.gmra.mrb[24].mxu1 %vm763_vm1, %v6414_v29  ;;  %v3753_v29 = vor.u32 %v3752_v40, %v9259_v33  ;;  %v9299_v56 = vcombine.low %v3701_v55, %v3711_v31  ;;  %v8022_v33 = vld [vmem:[%s8281_s13 + $0x84] sm:$0xff]   ;;  %v3818_v40 = vshll.u32 %v9316_v46, 16  ;;  %v3811_v55 = vrot.slane %v3809_v59, 4  ;;  %v9374_v59 = vld [vmem:[%s8281_s13 + $0x7c] sm:$0xf] }
  0xfb   : > { %7261 = vmatprep.mubr.msk.bf16.mxu1 %vm763_vm1, %v6415_v21  ;;  %v6721_v21 = vld [vmem:[%s8281_s13 + $0x48] sm:$0xf]  ;;  %v3814_v31 = vrot.slane %v3812_v5, 5  ;;  %v3835_v45 = vrot.slane %v3833_v9, 4  ;;  %v3838_v12 = vrot.slane %v3836_v1, 5 }
  0xfc   : > { %v3754_v61 = vrot.slane %v3753_v29, 4  ;;  %v3785_v23 = vshrl.u32 %v6721_v21, 16  ;;  %v3788_v35 = vshll.u32 %v6721_v21, 16  ;;  %v3804_v29 = vshll.u32 %v9326_v49, 16  ;;  %v8027_v5 = vld [vmem:[%s8281_s13 + $0xa8] sm:$0xff]  }
  0xfd   : > { %v9380_v9 = vld [vmem:[%s8281_s13 + $0x74] sm:$0x1] }
  0xfe   : > { %7374 = vmatmul.mubr.msk.bf16.gmra.mrb[4].mxu0 %vm763_vm1, %v8014_v18  ;;  %v3770_v18 = vshll.u32 %v9269_v63, 16  ;;  %v3759_v39 = vsel %vm8320_vm4, %v3754_v61, %v3758_v10  ;;  %v3787_v52 = vrot.slane %v3785_v23, 4  ;;  %v3848_v61 = vrot.slane %v3846_v7, 4  ;;  %v9361_v23 = vld [vmem:[%s8281_s13 + $0x68] sm:$0x1] }
  0xff   : > { %7377 = vmatprep.mubr.msk.bf16.mxu0 %vm763_vm1, %v8015_v26  ;;  %v3766_v26 = vrot.slane %v3764_v54, 5  ;;  %v9334_v20 = vcombine.low %v3749_v43, %v3759_v39  ;;  %v3857_v10 = vshrl.u32 %v6730_v14, 16  ;;  %v3884_v43 = vshll.u32 %v6733_v32, 16 }
 0x101   : > { %v3767_v3 = vor.u32 %v3766_v26, %v3763_v38  ;;  %v9356_v38 = vld [vmem:[%s8281_s13 + $0x5c] sm:$0x1]  ;;  %v3886_v7 = vrot.slane %v3884_v43, 5 }
 0x102   : > { %7262 = vmatmul.mubr.msk.bf16.gmra.mrb[28].mxu1 %vm763_vm1, %v6416_v13  ;;  %v3774_v13 = vshrl.u32 %v9269_v63, 16 }
 0x103   : > { %7291 = vmatprep.mubr.msk.bf16.mxu1 %vm763_vm1, %v8019_v15  ;;  %v9312_v15 = vrot.slane %v3770_v18, 5  ;;  %v9341_v2 = vrot.slane %v3767_v3, 4  ;;  %v9352_v18 = vrot.slane %v3818_v40, 5  ;;  %v3852_v40 = vshll.u32 %v9361_v23, 16 }
 0x105   : > { %v3773_v3 = vsel %vm8320_vm4, %v9341_v2, %v9312_v15  ;;  %v3806_v2 = vrot.slane %v3804_v29, 5  ;;  %v3876_v29 = vshll.u32 %v9380_v9, 16 }
 0x106   : > { %7378 = vmatmul.mubr.msk.bf16.gmra.mrb[8].mxu0 %vm763_vm1, %v8016_v36  ;;  %v3776_v36 = vrot.slane %v3774_v13, 4  ;;  %v3860_v13 = vshll.u32 %v6730_v14, 16 }
 0x107   : > { %7381 = vmatprep.mubr.msk.bf16.mxu0 %vm763_vm1, %v8017_v44  ;;  %v3790_v44 = vrot.slane %v3788_v35, 5  ;;  %v3866_v35 = vshll.u32 %v9348_v0, 16 }
 0x108   : > { %v3777_v54 = vor.u32 %v3776_v36, %v9312_v15  ;;  %v8026_v36 = vld [vmem:[%s8281_s13 + $0x9c] sm:$0xff]   ;;  %v3862_v15 = vrot.slane %v3860_v13, 5 }
 0x109   : > { %v3791_v21 = vor.u32 %v3790_v44, %v3787_v52  ;;  %v3815_v52 = vor.u32 %v3814_v31, %v3811_v55  ;;  %v3828_v44 = vshll.u32 %v9356_v38, 16  ;;  %v9382_v1 = vrot.slane %v3866_v35, 5 }
 0x10a   : > { %7292 = vmatmul.mubr.msk.bf16.vlgmr.msra.gmra.mrb[24].mxu1 %vm763_vm1, %v8020_v27  ;;  %v3842_v27 = vshll.u32 %v9323_v11, 16  ;;  %v3778_v62 = vrot.slane %v3777_v54, 4  ;;  %v3890_v54 = vshll.u32 %v9374_v59, 16 }
 0x10b   : > { %7295 = vmatprep.mubr.msk.bf16.mxu1 %vm763_vm1, %v8023_v19  ;;  %v9344_v19 = vrot.slane %v3794_v8, 5  ;;  %v3792_v16 = vrot.slane %v3791_v21, 4  ;;  %v3894_v21 = vshrl.u32 %v9374_v59, 16  ;;  %v3830_v31 = vrot.slane %v3828_v44, 5  ;;  %v9417_v44 = vld [vmem:[%s8281_s13 + $0x8c] sm:$0x1] }
 0x10c   : > { %v9358_v26 = vrot.slane %v3842_v27, 5  ;;  %v3883_v27 = vrot.slane %v3881_v34, 4 }
 0x10d   : > { %v3797_v13 = vsel %vm8320_vm4, %v3792_v16, %v9344_v19 }
 0x10e   : > { %7382 = vmatmul.mubr.msk.bf16.gmra.mrb[12].mxu0 %vm763_vm1, %v8018_v6  ;;  %v3800_v6 = vrot.slane %v3798_v60, 4  ;;  %v3839_v60 = vor.u32 %v3838_v12, %v3835_v45  ;;  %v3854_v12 = vrot.slane %v3852_v40, 5  ;;  %v3887_v34 = vor.u32 %v3886_v7, %v3883_v27 }
 0x10f   : > { %7385 = vmatprep.mubr.msk.bf16.mxu0 %vm763_vm1, %v8021_v30  ;;  %v3824_v30 = vrot.slane %v3822_v24, 4  ;;  %v3859_v24 = vrot.slane %v3857_v10, 4  ;;  %v3783_v10 = vsel %vm8320_vm4, %v3778_v62, %v9336_v57  ;;  %v8028_v62 = vld [vmem:[%s8281_s13 + $0xb4] sm:$0xff]  }
 0x110   : > { %v3801_v39 = vor.u32 %v3800_v6, %v9344_v19  ;;  %v3816_v6 = vrot.slane %v3815_v52, 4  ;;  %v3840_v32 = vrot.slane %v3839_v60, 4  ;;  %v9405_v52 = vld [vmem:[%s8281_s13 + $0x88] sm:$0xf]  ;;  %v9430_v27 = vrot.slane %v3887_v34, 4 }
 0x111   : > { %v3825_v8 = vor.u32 %v3824_v30, %v9352_v18  ;;  %v6736_v30 = vld [vmem:[%s8281_s13 + $0x84] sm:$0xf]  ;;  %v3918_v7 = vshrl.u32 %v9405_v52, 16 }
 0x112   : > { %7296 = vmatmul.mubr.msk.bf16.gmra.mrb[28].mxu1 %vm763_vm1, %v8024_v22  ;;  %v3870_v22 = vshrl.u32 %v9348_v0, 16  ;;  %v3802_v14 = vrot.slane %v3801_v39, 4  ;;  %v9402_v39 = vrot.slane %v3890_v54, 5  ;;  %v3905_v57 = vshrl.u32 %v6736_v30, 16 }
 0x113   : > { %v3826_v55 = vrot.slane %v3825_v8, 4  ;;  %v3821_v19 = vsel %vm8320_vm4, %v3816_v6, %v9352_v18  ;;  %v3845_v8 = vsel %vm8320_vm4, %v3840_v32, %v9358_v26  ;;  %v3908_v60 = vshll.u32 %v6736_v30, 16  ;;  %v9442_v6 = vld [vmem:[%s8281_s13 + $0x94] sm:$0xf] }
 0x114   : > { %v3807_v43 = vsel %vm8320_vm4, %v3802_v14, %v3806_v2  ;;  %v9434_v14 = vcombine.low %v3773_v3, %v3783_v10  ;;  %v6792_v3 = vld [vmem:[%s8281_s13 + $0x30] sm:$0xe]  ;;  %v9470_v34 = vrot.slane %v3918_v7, 4  ;;  %v4449_v7 = vrot.slane %v9263_v48, 5  ;;  %v6796_v48 = vld [vmem:[%s8281_s13 + $0x60] sm:$0xe] }
 0x115   : > { %v3831_v16 = vsel %vm8320_vm4, %v3826_v55, %v3830_v31  ;;  %v9436_v2 = vcombine.low %v3797_v13, %v3807_v43  ;;  %v9445_v55 = vrot.slane %v3908_v60, 5  ;;  %v3924_v31 = vshll.u32 %v9417_v44, 16  ;;  %v6803_v10 = vld [vmem:[%s8281_s13 + $0xb4] sm:$0xe] }
 0x116   : > { %7386 = vmatmul.mubr.msk.bf16.gmra.mrb[16].mxu0 %vm763_vm1, %v8022_v33  ;;  %v3849_v33 = vor.u32 %v3848_v61, %v9358_v26  ;;  %v3863_v61 = vor.u32 %v3862_v15, %v3859_v24  ;;  %v9424_v24 = vrot.slane %v3876_v29, 5  ;;  %v6739_v15 = vld [vmem:[%s8281_s13 + $0x90] sm:$0xf]  ;;  %v3914_v26 = vshll.u32 %v9405_v52, 16 }
 0x117   : > { %7389 = vmatprep.mubr.msk.bf16.mxu0 %vm763_vm1, %v8025_v53  ;;  %v3872_v53 = vrot.slane %v3870_v22, 4  ;;  %v9398_v22 = vld [vmem:[%s8281_s13 + $0x80] sm:$0x1]  ;;  %v3929_v32 = vshrl.u32 %v6739_v15, 16  ;;  %v3932_v30 = vshll.u32 %v6739_v15, 16  ;;  %v9480_v60 = vrot.slane %v3924_v31, 5 }
 0x118   : > { %v3850_v45 = vrot.slane %v3849_v33, 4  ;;  %v9422_v40 = vrot.slane %v3863_v61, 4  ;;  %v3900_v18 = vshll.u32 %v9398_v22, 16 }
 0x119   : > { %v3873_v35 = vor.u32 %v3872_v53, %v9382_v1 }
 0x11a   : > { %v3855_v33 = vsel %vm8320_vm4, %v3850_v45, %v3854_v12  ;;  %v9450_v45 = vcombine.low %v3821_v19, %v3831_v16  ;;  %v9458_v29 = vrot.slane %v3900_v18, 5  ;;  %v6793_v19 = vld [vmem:[%s8281_s13 + $0x3c] sm:$0xe]  ;;  %v8030_v16 = vld [vmem:[%s8281_s13 + $0xcc] sm:$0xff]   ;;  %v6794_v18 = vld [vmem:[%s8281_s13 + $0x48] sm:$0xe] }
 0x11b   : > { %v9428_v53 = vrot.slane %v3873_v35, 4  ;;  %v9452_v12 = vcombine.low %v3845_v8, %v3855_v33  ;;  %v9468_v35 = vrot.slane %v3914_v26, 5  ;;  %v9484_v33 = vrot.slane %v3932_v30, 5  ;;  %v6795_v30 = vld [vmem:[%s8281_s13 + $0x54] sm:$0xe] }
 0x11c   : > { %v6809_v31 = vrot.slane %v6793_v19, 9  ;;  %v6797_v19 = vld [vmem:[%s8281_s13 + $0x6c] sm:$0xe]  ;;  %v9637_v8 = vld [vmem:[%s8281_s13 + $0xbc] sm:$0x1] }
 0x11e   : > { %7390 = vmatmul.mubr.msk.bf16.gmra.mrb[20].mxu0 %vm763_vm1, %v8026_v36  ;;  %v3896_v36 = vrot.slane %v3894_v21, 4  ;;  %v9439_v21 = vrot.slane %v3905_v57, 4  ;;  %v6808_v57 = vrot.slane %v6792_v3, 9  ;;  %v4456_v3 = vrot.slane %v9291_v50, 5 }
 0x11f   : > { %7393 = vmatprep.mubr.msk.bf16.mxu0 %vm763_vm1, %v8027_v5  ;;  %v8029_v5 = vld [vmem:[%s8281_s13 + $0xc0] sm:$0xff]  }
 0x120   : > { %v3897_v54 = vor.u32 %v3896_v36, %v9402_v39  ;;  %v3938_v36 = vshll.u32 %v9442_v6, 16 }
 0x122   : > { %v9472_v43 = vrot.slane %v3897_v54, 4  ;;  %v9498_v13 = vrot.slane %v3938_v36, 5  ;;  %v4463_v36 = vrot.slane %v9326_v49, 5  ;;  %v4474_v49 = vrot.slane %v9323_v11, 5 }
 0x126   : > { %7394 = vmatmul.mubr.msk.bf16.gmra.mrb[24].mxu0 %vm763_vm1, %v8028_v62  ;;  %v4446_v62 = vrot.slane %v9234_v25, 5 }
 0x127   : > { %7397 = vmatprep.mubr.msk.bf16.mxu0 %vm763_vm1, %v8029_v5  ;;  %v9482_v5 = vrot.slane %v3929_v32, 4  ;;  %v4453_v32 = vrot.slane %v9269_v63, 5 }
 0x128   : > { %v9490_v26 = vsel %vm8795_vm7, %v6808_v57, %v4446_v62  ;;  %v4448_v25 = vrot.slane %v4446_v62, 4  ;;  %v6810_v57 = vrot.slane %v6794_v18, 9  ;;  %v4460_v62 = vrot.slane %v9295_v28, 5 }
 0x129   : > { %v9511_v63 = vsel %vm8795_vm7, %v6809_v31, %v4453_v32  ;;  %v4455_v50 = vrot.slane %v4453_v32, 4  ;;  %v4470_v31 = vrot.slane %v9356_v38, 5  ;;  %v6812_v32 = vrot.slane %v6796_v48, 9 }
 0x12a   : > { %v9502_v61 = vsel %vm8795_vm7, %v4448_v25, %v4449_v7  ;;  %v9518_v28 = vsel %vm8795_vm7, %v6810_v57, %v4460_v62  ;;  %v4462_v18 = vrot.slane %v4460_v62, 4  ;;  %v4467_v25 = vrot.slane %v9316_v46, 5 }
 0x12b   : > { %v9523_v7 = vsel %vm8795_vm7, %v4455_v50, %v4456_v3  ;;  %v9543_v11 = vsel %vm8795_vm7, %v6812_v32, %v4474_v49  ;;  %v4476_v62 = vrot.slane %v4474_v49, 4  ;;  %v4477_v48 = vrot.slane %v9361_v23, 5 }
 0x12c   : > { %v9532_v57 = vsel %vm8795_vm7, %v4462_v18, %v4463_v36  ;;  %v4469_v3 = vrot.slane %v4467_v25, 4  ;;  %v6813_v36 = vrot.slane %v6797_v19, 9  ;;  %v4481_v18 = vrot.slane %v9348_v0, 5 }
 0x12d   : > { %v9557_v32 = vsel %vm8795_vm7, %v4476_v62, %v4477_v48  ;;  %v4488_v23 = vrot.slane %v9374_v59, 5  ;;  %v4495_v62 = vrot.slane %v9405_v52, 5  ;;  %v4498_v48 = vrot.slane %v9417_v44, 5 }
 0x12e   : > { %7398 = vmatmul.mubr.msk.bf16.gmra.mrb[28].mxu0 %vm763_vm1, %v8030_v16  ;;  %v6811_v16 = vrot.slane %v6795_v30, 9  ;;  %v6798_v30 = vld [vmem:[%s8281_s13 + $0x78] sm:$0xe]  ;;  %v9548_v50 = vsel %vm8795_vm7, %v4469_v3, %v4470_v31  ;;  %10411 = vst [vmem:[#allocation10_spill] sm:$0xff] %v9557_v32  ;;  %v9565_v0 = vsel %vm8795_vm7, %v6813_v36, %v4481_v18  ;;  %v4491_v31 = vrot.slane %v9398_v22, 5 }
 0x12f   : > { %7403 = vmatprep.mubr.msk.bf16.mxu0 %vm763_vm1, %v9299_v56  ;;  %v6814_v49 = vrot.slane %v6798_v30, 9  ;;  %v6800_v56 = vld [vmem:[%s8281_s13 + $0x90] sm:$0xe]  ;;  %10412 = vst [vmem:[#allocation13_spill] sm:$0xff] %v9565_v0  ;;  %v4490_v59 = vrot.slane %v4488_v23, 4  ;;  %v4497_v44 = vrot.slane %v4495_v62, 4 }
 0x130   : > { %v9536_v46 = vsel %vm8795_vm7, %v6811_v16, %v4467_v25  ;;  %v4484_v16 = vrot.slane %v9380_v9, 5  ;;  %v6799_v25 = vld [vmem:[%s8281_s13 + $0x84] sm:$0xe]  ;;  %v4483_v9 = vrot.slane %v4481_v18, 4  ;;  %v9579_v22 = vld [vmem:[%s8281_s13 + $0xa0] sm:$0xf] }
 0x131   : > { %v9572_v3 = vsel %vm8795_vm7, %v6814_v49, %v4488_v23  ;;  %v6815_v30 = vrot.slane %v6799_v25, 9  ;;  %v6816_v36 = vrot.slane %v6800_v56, 9  ;;  %v4502_v18 = vrot.slane %v9442_v6, 5  ;;  %v6801_v25 = vld [vmem:[%s8281_s13 + $0x9c] sm:$0xe] }
 0x132   : > { %10413 = vst [vmem:[#allocation11_spill] sm:$0xff] %v9572_v3  ;;  %v9589_v49 = vld [vmem:[%s8281_s13 + $0x98] sm:$0x1]  ;;  %v6802_v56 = vld [vmem:[%s8281_s13 + $0xa8] sm:$0xe]  ;;  %v4509_v19 = vrot.slane %v9579_v22, 5  ;;  %v10434_v51 = vcombine.low %v9536_v46, %v9548_v50 }
 0x133   : > { %v9599_v52 = vsel %vm8795_vm7, %v6815_v30, %v4495_v62  ;;  %v9606_v23 = vld [vmem:[%s8281_s13 + $0xac] sm:$0xf]  ;;  %v4505_v30 = vrot.slane %v9589_v49, 5  ;;  %v9617_v62 = vsel %vm8795_vm7, %v4497_v44, %v4498_v48  ;;  %v6818_v54 = vrot.slane %v6802_v56, 9  ;;  %v6804_v44 = vld [vmem:[%s8281_s13 + $0xc0] sm:$0xe] }
 0x134   : > { %10416 = vst [vmem:[#allocation14_spill] sm:$0xff] %v9599_v52  ;;  %10418 = vst [vmem:[#allocation17_spill] sm:$0xff] %v9617_v62  ;;  %v4516_v48 = vrot.slane %v9606_v23, 5  ;;  %v10424_v0 = vshrl.u32 %v9442_v6, 16  ;;  %v3903_v6 = vsel %vm8320_vm4, %v9472_v43, %v9458_v29  ;;  %v3990_v29 = vshrl.u32 %v9606_v23, 16 }
 0x136   : > { %7404 = vmatmul.mubr.msk.bf16.vlgmr.msra.gmra.mrb[0].mxu0 %vm763_vm1, %v9301_v42  ;;  %v9583_v42 = vsel %vm8795_vm7, %v4483_v9, %v4484_v16  ;;  %v9603_v16 = vld [vmem:[%s8281_s13 + $0xa4] sm:$0x1]  ;;  %v9623_v9 = vld [vmem:[%s8281_s13 + $0xb0] sm:$0x1]  ;;  %v9651_v62 = vsel %vm8795_vm7, %v6818_v54, %v4516_v48  ;;  %v4518_v52 = vrot.slane %v4516_v48, 4  ;;  %v3944_v32 = vrot.slane %v10424_v0, 4 }
 0x137   : > { %7436 = vmatpush3.bf16.msra.mxu0 %v9305_v41  ;;  %7407 = vmatprep.mubr.msk.bf16.mxu0 %vm763_vm1, %v9334_v20  ;;  %10414 = vst [vmem:[#allocation12_spill] sm:$0xff] %v9583_v42  ;;  %v9595_v20 = vsel %vm8795_vm7, %v4490_v59, %v4491_v31  ;;  %v9612_v31 = vsel %vm8795_vm7, %v6816_v36, %v4502_v18  ;;  %v4504_v59 = vrot.slane %v4502_v18, 4  ;;  %v6817_v41 = vrot.slane %v6801_v25, 9  ;;  %v9634_v25 = vld [vmem:[%s8281_s13 + $0xb8] sm:$0xf] }
 0x138   : > { %10415 = vst [vmem:[#allocation15_spill] sm:$0xff] %v9595_v20  ;;  %10417 = vst [vmem:[#allocation16_spill] sm:$0xff] %v9612_v31  ;;  %v4512_v38 = vrot.slane %v9603_v16, 5  ;;  %v4519_v56 = vrot.slane %v9623_v9, 5  ;;  %v6819_v20 = vrot.slane %v6803_v10, 9  ;;  %v4523_v15 = vrot.slane %v9634_v25, 5 }
 0x139   : > { %v9629_v18 = vsel %vm8795_vm7, %v4504_v59, %v4505_v30  ;;  %v9643_v36 = vsel %vm8795_vm7, %v6817_v41, %v4509_v19  ;;  %v4511_v59 = vrot.slane %v4509_v19, 4  ;;  %v9647_v30 = vld [vmem:[%s8281_s13 + $0xc4] sm:$0xf]  ;;  %10421 = vst [vmem:[#allocation20_spill] sm:$0xff] %v9651_v62  ;;  %v4526_v41 = vrot.slane %v9637_v8, 5 }
 0x13a   : > { %10419 = vst [vmem:[#allocation18_spill] sm:$0xff] %v9629_v18  ;;  %10420 = vst [vmem:[#allocation19_spill] sm:$0xff] %v9643_v36  ;;  %v6820_v18 = vrot.slane %v6804_v44, 9  ;;  %v4530_v31 = vrot.slane %v9647_v30, 5  ;;  %v6805_v54 = vld [vmem:[%s8281_s13 + $0xcc] sm:$0xe]  ;;  %v10426_v0 = vor.u32 %v9445_v55, %v9439_v21  ;;  %v3945_v43 = vor.u32 %v3944_v32, %v9498_v13 }
 0x13b   : > { %v9658_v19 = vsel %vm8795_vm7, %v4511_v59, %v4512_v38  ;;  %v6742_v10 = vld [vmem:[%s8281_s13 + $0x9c] sm:$0xf]  ;;  %v9667_v48 = vld [vmem:[%s8281_s13 + $0xc8] sm:$0x1]  ;;  %v9677_v38 = vsel %vm8795_vm7, %v6819_v20, %v4523_v15  ;;  %v4525_v44 = vrot.slane %v4523_v15, 4  ;;  %v6821_v20 = vrot.slane %v6805_v54, 9 }
 0x13c   : > { %10422 = vst [vmem:[#allocation21_spill] sm:$0xff] %v9658_v19  ;;  %v9680_v59 = vld [vmem:[%s8281_s13 + $0xd0] sm:$0xf]  ;;  %v9683_v42 = vld [vmem:[%s8281_s13 + $0xd4] sm:$0x1]  ;;  %v9689_v3 = vsel %vm8795_vm7, %v6820_v18, %v4530_v31  ;;  %v4532_v19 = vrot.slane %v4530_v31, 4 }
 0x13d   : > { %v4537_v15 = vrot.slane %v9680_v59, 5  ;;  %v4540_v36 = vrot.slane %v9683_v42, 5  ;;  %v3956_v62 = vshll.u32 %v6742_v10, 16  ;;  %v3912_v18 = vrot.slane %v10426_v0, 4  ;;  %v6748_v0 = vld [vmem:[%s8281_s13 + $0xb4] sm:$0xf] }
 0x13e   : > { %7408 = vmatmul.mubr.msk.bf16.gmra.mrb[4].mxu0 %vm763_vm1, %v9434_v14  ;;  %v9673_v14 = vsel %vm8795_vm7, %v4518_v52, %v4519_v56  ;;  %v4533_v52 = vrot.slane %v9667_v48, 5  ;;  %v9694_v56 = vsel %vm8795_vm7, %v4525_v44, %v4526_v41  ;;  %v3986_v55 = vshll.u32 %v9606_v23, 16 }
 0x13f   : > { %7411 = vmatprep.mubr.msk.bf16.mxu0 %vm763_vm1, %v9436_v2  ;;  %10423 = vst [vmem:[#allocation22_spill] sm:$0xff] %v9673_v14  ;;  %v3953_v2 = vshrl.u32 %v6742_v10, 16  ;;  %v6745_v14 = vld [vmem:[%s8281_s13 + $0xa8] sm:$0xf]  ;;  %v9711_v54 = vsel %vm8795_vm7, %v6821_v20, %v4537_v15  ;;  %v4539_v44 = vrot.slane %v4537_v15, 4  ;;  %v3962_v20 = vshll.u32 %v9579_v22, 16 }
 0x140   : > { %v9705_v31 = vsel %vm8795_vm7, %v4532_v19, %v4533_v52  ;;  %v10427_v19 = vor.u32 %v9470_v34, %v9468_v35  ;;  %v3935_v52 = vor.u32 %v9484_v33, %v9482_v5  ;;  %v3966_v15 = vshrl.u32 %v9579_v22, 16  ;;  %v10446_v50 = vld [vmem:[#allocation16_spill] sm:$0xff] }
 0x141   : > { %10425 = vst [vmem:[#allocation23_spill] sm:$0xff] %v9705_v31  ;;  %v3977_v41 = vshrl.u32 %v6745_v14, 16  ;;  %v9729_v31 = vsel %vm8795_vm7, %v4539_v44, %v4540_v36  ;;  %v3980_v21 = vshll.u32 %v6745_v14, 16  ;;  %v3948_v5 = vshll.u32 %v9589_v49, 16 }
 0x142   : > { %v3922_v10 = vrot.slane %v10427_v19, 4  ;;  %v6838_v34 = vcombine.low %v9711_v54, %v9729_v31  ;;  %v3955_v33 = vrot.slane %v3953_v2, 4  ;;  %v3958_v22 = vrot.slane %v3956_v62, 5 }
 0x143   : > { %v10429_v23 = vsel %vm8320_vm4, %v9422_v40, %v9382_v1  ;;  %v3917_v49 = vsel %vm8320_vm4, %v3912_v18, %v9468_v35  ;;  %v3964_v62 = vrot.slane %v3962_v20, 5  ;;  %v3968_v14 = vrot.slane %v3966_v15, 4 }
 0x144   : > { %v3979_v1 = vrot.slane %v3977_v41, 4  ;;  %v3982_v40 = vrot.slane %v3980_v21, 5  ;;  %v3988_v2 = vrot.slane %v3986_v55, 5  ;;  %v3992_v44 = vrot.slane %v3990_v29, 4 }
 0x145   : > { %v3946_v19 = vrot.slane %v3945_v43, 4  ;;  %v3969_v35 = vor.u32 %v3968_v14, %v3964_v62  ;;  %v3996_v18 = vshll.u32 %v9623_v9, 16  ;;  %v4010_v20 = vshll.u32 %v9634_v25, 16 }
 0x146   : > { %7412 = vmatmul.mubr.msk.bf16.gmra.mrb[8].mxu0 %vm763_vm1, %v9450_v45  ;;  %v10428_v45 = vsel %vm8320_vm4, %v9428_v53, %v9424_v24  ;;  %v3927_v24 = vsel %vm8320_vm4, %v3922_v10, %v9480_v60  ;;  %v3936_v53 = vrot.slane %v3935_v52, 4  ;;  %v4004_v60 = vshll.u32 %v6748_v0, 16  ;;  %v6751_v10 = vld [vmem:[%s8281_s13 + $0xc0] sm:$0xf] }
 0x147   : > { %7415 = vmatprep.mubr.msk.bf16.mxu0 %vm763_vm1, %v9452_v12  ;;  %v6765_v36 = vcombine.low %v10429_v23, %v10428_v45  ;;  %v10430_v12 = vsel %vm8320_vm4, %v9430_v27, %v9402_v39  ;;  %v3950_v39 = vrot.slane %v3948_v5, 5  ;;  %v3959_v27 = vor.u32 %v3958_v22, %v3955_v33 }
 0x148   : > { %v6766_v32 = vcombine.low %v10430_v12, %v3903_v6  ;;  %v3972_v6 = vshll.u32 %v9603_v16, 16  ;;  %v6767_v45 = vcombine.low %v3917_v49, %v3927_v24  ;;  %v4001_v23 = vshrl.u32 %v6748_v0, 16  ;;  %v6754_v0 = vld [vmem:[%s8281_s13 + $0xcc] sm:$0xf] }
 0x149   : > { %v3983_v52 = vor.u32 %v3982_v40, %v3979_v1  ;;  %v3993_v41 = vor.u32 %v3992_v44, %v3988_v2  ;;  %v4014_v15 = vshrl.u32 %v9634_v25, 16  ;;  %v3941_v16 = vsel %vm8320_vm4, %v3936_v53, %v9498_v13 }
 0x14a   : > { %v3951_v9 = vsel %vm8320_vm4, %v3946_v19, %v3950_v39  ;;  %v3960_v21 = vrot.slane %v3959_v27, 4  ;;  %v3974_v55 = vrot.slane %v3972_v6, 5  ;;  %v4025_v29 = vshrl.u32 %v6751_v10, 16 }
 0x14b   : > { %v4028_v43 = vshll.u32 %v6751_v10, 16  ;;  %v4034_v5 = vshll.u32 %v9647_v30, 16  ;;  %v4038_v33 = vshrl.u32 %v9647_v30, 16  ;;  %v3970_v22 = vrot.slane %v3969_v35, 4 }
 0x14c   : > { %v3998_v25 = vrot.slane %v3996_v18, 5  ;;  %v4006_v12 = vrot.slane %v4004_v60, 5  ;;  %v3994_v49 = vrot.slane %v3993_v41, 4  ;;  %v4012_v24 = vrot.slane %v4010_v20, 5 }
 0x14d   : > { %v4016_v13 = vrot.slane %v4014_v15, 4  ;;  %v6768_v53 = vcombine.low %v3941_v16, %v3951_v9  ;;  %v4027_v14 = vrot.slane %v4025_v29, 4  ;;  %v4030_v1 = vrot.slane %v4028_v43, 5 }
 0x14e   : > { %7416 = vmatmul.mubr.msk.bf16.gmra.mrb[12].mxu0 %vm763_vm1, %v6765_v36  ;;  %v4003_v36 = vrot.slane %v4001_v23, 4  ;;  %v4036_v40 = vrot.slane %v4034_v5, 5  ;;  %v4040_v44 = vrot.slane %v4038_v33, 4  ;;  %v3965_v19 = vsel %vm8320_vm4, %v3960_v21, %v3964_v62 }
 0x14f   : > { %7419 = vmatprep.mubr.msk.bf16.mxu0 %vm763_vm1, %v6766_v32  ;;  %v3984_v32 = vrot.slane %v3983_v52, 4  ;;  %v3975_v30 = vsel %vm8320_vm4, %v3970_v22, %v3974_v55  ;;  %v3999_v6 = vsel %vm8320_vm4, %v3994_v49, %v3998_v25  ;;  %v4017_v35 = vor.u32 %v4016_v13, %v4012_v24  ;;  %v6790_v13 = vld [vmem:[%s8281_s13 + $0x18] sm:$0xe] }
 0x150   : > { %v4007_v39 = vor.u32 %v4006_v12, %v4003_v36  ;;  %v4020_v18 = vshll.u32 %v9637_v8, 16  ;;  %v4049_v23 = vshrl.u32 %v6754_v0, 16  ;;  %v4052_v60 = vshll.u32 %v6754_v0, 16 }
 0x151   : > { %v3989_v27 = vsel %vm8320_vm4, %v3984_v32, %v3988_v2  ;;  %v4058_v62 = vshll.u32 %v9680_v59, 16  ;;  %v4062_v10 = vshrl.u32 %v9680_v59, 16  ;;  %v4031_v52 = vor.u32 %v4030_v1, %v4027_v14 }
 0x152   : > { %v4041_v41 = vor.u32 %v4040_v44, %v4036_v40  ;;  %v6769_v20 = vcombine.low %v3965_v19, %v3975_v30  ;;  %v6770_v2 = vcombine.low %v3989_v27, %v3999_v6  ;;  %v4008_v15 = vrot.slane %v4007_v39, 4  ;;  %v6791_v6 = vld [vmem:[%s8281_s13 + $0x24] sm:$0xe]  ;;  %s6944_s13 = sshll.u32 %s8225_s28, 4  ;;  %s8163_s28 = smov [#allocation7]  }
 0x153   : > { %v4018_v16 = vrot.slane %v4017_v35, 4  ;;  %v4022_v9 = vrot.slane %v4020_v18, 5  ;;  %v4051_v21 = vrot.slane %v4049_v23, 4  ;;  %v4054_v55 = vrot.slane %v4052_v60, 5  ;;  %s10318_s18 = scalar_lea.hbm %s10367_s7, %s6944_s13  ;;  %s8100_s21 = sshll.u32 %s8163_s28, 4  ;;  %s8101_s21 = int_to_ptr.vmem [resolvable:$false] %s8100_s21 }
 0x154   : > { %v4060_v8 = vrot.slane %v4058_v62, 5  ;;  %v4064_v29 = vrot.slane %v4062_v10, 4  ;;  %v4032_v43 = vrot.slane %v4031_v52, 4  ;;  %v4042_v5 = vrot.slane %v4041_v41, 4  ;;  %v10435_v41 = vld [vmem:[#allocation10_spill] sm:$0xff]  ;;  %s8102_s22 = scalar_lea.vmem %s8101_s21, 32  ;;  %p8103_p0 = scmp.lt.s32.totalorder %s10320_s15, %s8101_s21 }
 0x155   : > { %v4013_v59 = vsel %vm8320_vm4, %v4008_v15, %v4012_v24  ;;  %v4055_v22 = vor.u32 %v4054_v55, %v4051_v21  ;;  %v4068_v36 = vshll.u32 %v9683_v42, 16  ;;  %v4432_v49 = vrot.slane %v9211_v4, 5  ;;  %v10447_v15 = vld [vmem:[#allocation18_spill] sm:$0xff]  ;;  %p8104_p1 = scmp.lt.s32.totalorder %s8102_s22, %s8096_s20 }
 0x156   : > { %7420 = vmatmul.mubr.msk.bf16.gmra.mrb[16].mxu0 %vm763_vm1, %v6767_v45  ;;  %v4044_v45 = vshll.u32 %v9667_v48, 16  ;;  %v4023_v48 = vsel %vm8320_vm4, %v4018_v16, %v4022_v9  ;;  %v4065_v25 = vor.u32 %v4064_v29, %v4060_v8  ;;  %v4037_v12 = vsel %vm8320_vm4, %v4032_v43, %v4036_v40  ;;  %v10449_v16 = vld [vmem:[#allocation19_spill] sm:$0xff]  ;;  %v10450_v9 = vld [vmem:[#allocation21_spill] sm:$0xff]  ;;  %v10453_v29 = vld [vmem:[#allocation22_spill] sm:$0xff] }
 0x157   : > { %7423 = vmatprep.mubr.msk.bf16.mxu0 %vm763_vm1, %v6768_v53  ;;  %v6771_v24 = vcombine.low %v4013_v59, %v4023_v48  ;;  %v4056_v14 = vrot.slane %v4055_v22, 4  ;;  %v4070_v44 = vrot.slane %v4068_v36, 5  ;;  %v6806_v0 = vrot.slane %v6790_v13, 9  ;;  %p8105_p2 = por %p8104_p1, %p8103_p0 }
 0x158   : > { %v4046_v33 = vrot.slane %v4044_v45, 5  ;;  %v4066_v1 = vrot.slane %v4065_v25, 4  ;;  %v4434_v19 = vrot.slane %v4432_v49, 4  ;;  %v4435_v30 = vrot.slane %v9238_v47, 5  ;;  %v10438_v45 = vld [vmem:[#allocation12_spill] sm:$0xff]  ;;  %v10456_v25 = vld [vmem:[#allocation23_spill] sm:$0xff] }
 0x159   : > { %v4061_v42 = vsel %vm8320_vm4, %v4056_v14, %v4060_v8  ;;  %v4439_v40 = vrot.slane %v9218_v17, 5  ;;  %v4433_v39 = vsel %vm8795_vm7, %v6806_v0, %v4432_v49  ;;  %v6807_v18 = vrot.slane %v6791_v6, 9  ;;  %v10452_v8 = vld [vmem:[#allocation20_spill] sm:$0xff]  ;;  %p8106_p3 = pnand %p8105_p2, %p8099_p13 }
 0x15a   : > { %v4047_v32 = vsel %vm8320_vm4, %v4042_v5, %v4046_v33  ;;  %v4071_v4 = vsel %vm8320_vm4, %v4066_v1, %v4070_v44  ;;  %v4436_v27 = vsel %vm8795_vm7, %v4434_v19, %v4435_v30  ;;  %v4442_v60 = vrot.slane %v9244_v58, 5 }
 0x15b   : > { %v6772_v53 = vcombine.low %v4037_v12, %v4047_v32  ;;  %v6773_v47 = vcombine.low %v4061_v42, %v4071_v4  ;;  %v6823_v35 = vcombine.low %v4433_v39, %v4436_v27  ;;  %v4441_v23 = vrot.slane %v4439_v40, 4 }
 0x15c   : > { %v4440_v37 = vsel %vm8795_vm7, %v6807_v18, %v4439_v40  ;;  %v10431_v10 = vcombine.low %v9490_v26, %v9502_v61  ;;  %v10432_v58 = vcombine.low %v9511_v63, %v9523_v7  ;;  %v10433_v52 = vcombine.low %v9518_v28, %v9532_v57  ;;  %v10437_v26 = vld [vmem:[#allocation13_spill] sm:$0xff]  ;;  %v10440_v7 = vld [vmem:[#allocation11_spill] sm:$0xff]  ;;  %v10443_v57 = vld [vmem:[#allocation14_spill] sm:$0xff] }
 0x15d   : > { %v4443_v17 = vsel %vm8795_vm7, %v4441_v23, %v4442_v60  ;;  %v10436_v61 = vcombine.low %v9543_v11, %v10435_v41  ;;  %v10439_v63 = vcombine.low %v10437_v26, %v10438_v45  ;;  %v10448_v11 = vcombine.low %v10446_v50, %v10447_v15  ;;  %v8031_v60 = vld [vmem:[%s10363_s3 + $0x10] sm:$0xff]  }
 0x15e   : > { %7424 = vmatmul.mubr.msk.bf16.gmra.mrb[20].mxu0 %vm763_vm1, %v6769_v20  ;;  %v6824_v62 = vcombine.low %v4440_v37, %v4443_v17  ;;  %v10441_v20 = vld [vmem:[#allocation15_spill] sm:$0xff]  ;;  %v10451_v21 = vcombine.low %v10449_v16, %v10450_v9  ;;  %v10454_v43 = vcombine.low %v10452_v8, %v10453_v29  ;;  %v10455_v48 = vcombine.low %v9677_v38, %v9694_v56  ;;  %v8032_v37 = vld [vmem:[%s10363_s3 + $0x18] sm:$0xff]   ;;  %v10001_v17 = vld [vmem:[%s10363_s3] sm:$0xff]  }
 0x15f   : > { %7427 = vmatprep.mubr.msk.bf16.mxu0 %vm763_vm1, %v6770_v2  ;;  %v10442_v28 = vcombine.low %v10440_v7, %v10441_v20  ;;  %v10444_v2 = vld [vmem:[#allocation17_spill] sm:$0xff]  ;;  %v10457_v36 = vcombine.low %v9689_v3, %v10456_v25  ;;  %v8160_v23 = vmov 0.0   ;;  %7469 = vmatprep.subr.bf16.mxu1 %v8031_v60 }
 0x160   : > { %v10445_v46 = vcombine.low %v10443_v57, %v10444_v2  ;;  %5035 = vst.msk [vmem:[#allocation4] sm:$0xff] %vm4923_vm8, %v8160_v23  ;;  %5039 = vst.msk [vmem:[#allocation4 + $0x90] sm:$0xff] %vm4923_vm8, %v8160_v23  ;;  %7470 = vmatpush3.bf16.msra.mxu1 %v8031_v60 }
 0x161   : > { %5037 = vst.msk [vmem:[#allocation4 + $0x8] sm:$0x3] %vm5036_vm9, %v8160_v23  ;;  %5040 = vst.msk [vmem:[#allocation4 + $0x98] sm:$0x3] %vm5036_vm9, %v8160_v23  ;;  %7471 = vmatprep.subr.bf16.mxu1 %v8032_v37 }
 0x162   : > { %5042 = vst.msk [vmem:[#allocation4] sm:$0x1] %vm5041_vm10, %v8160_v23  ;;  %5043 = vst.msk [vmem:[#allocation4 + $0x10] sm:$0x1] %vm5041_vm10, %v8160_v23 }
 0x163   : > { %5044 = vst.msk [vmem:[#allocation4 + $0x20] sm:$0x1] %vm5041_vm10, %v8160_v23  ;;  %5045 = vst.msk [vmem:[#allocation4 + $0x30] sm:$0x1] %vm5041_vm10, %v8160_v23 }
 0x164   : > { %5046 = vst.msk [vmem:[#allocation4 + $0x40] sm:$0x1] %vm5041_vm10, %v8160_v23  ;;  %5047 = vst.msk [vmem:[#allocation4 + $0x50] sm:$0x1] %vm5041_vm10, %v8160_v23  ;;  %7472 = vmatpush3.bf16.msra.mxu1 %v8032_v37 }
 0x165   : > { %5048 = vst.msk [vmem:[#allocation4 + $0x60] sm:$0x1] %vm5041_vm10, %v8160_v23  ;;  %5049 = vst.msk [vmem:[#allocation4 + $0x70] sm:$0x1] %vm5041_vm10, %v8160_v23  ;;  %7481 = vmatprep.subr.bf16.mxu1 %v10001_v17 }
 0x166   : > { %7428 = vmatmul.mubr.msk.bf16.gmra.mrb[24].mxu0 %vm763_vm1, %v6771_v24  ;;  %5050 = vst.msk [vmem:[#allocation4 + $0x80] sm:$0x1] %vm5041_vm10, %v8160_v23  ;;  %5051 = vst.msk [vmem:[#allocation4 + $0x90] sm:$0x1] %vm5041_vm10, %v8160_v23 }
 0x167   : > { %7431 = vmatprep.mubr.msk.bf16.mxu0 %vm763_vm1, %v6772_v53  ;;  %5052 = vst.msk [vmem:[#allocation4 + $0x9] sm:$0x1] %vm5041_vm10, %v8160_v23  ;;  %5053 = vst.msk [vmem:[#allocation4 + $0x19] sm:$0x1] %vm5041_vm10, %v8160_v23 }
 0x168   : > { %5054 = vst.msk [vmem:[#allocation4 + $0x29] sm:$0x1] %vm5041_vm10, %v8160_v23  ;;  %5055 = vst.msk [vmem:[#allocation4 + $0x39] sm:$0x1] %vm5041_vm10, %v8160_v23 }
 0x169   : > { %5056 = vst.msk [vmem:[#allocation4 + $0x49] sm:$0x1] %vm5041_vm10, %v8160_v23  ;;  %5057 = vst.msk [vmem:[#allocation4 + $0x59] sm:$0x1] %vm5041_vm10, %v8160_v23 }
 0x16a   : > { %5058 = vst.msk [vmem:[#allocation4 + $0x69] sm:$0x1] %vm5041_vm10, %v8160_v23  ;;  %5059 = vst.msk [vmem:[#allocation4 + $0x79] sm:$0x1] %vm5041_vm10, %v8160_v23 }
 0x16b   : > { %5060 = vst.msk [vmem:[#allocation4 + $0x89] sm:$0x1] %vm5041_vm10, %v8160_v23  ;;  %5061 = vst.msk [vmem:[#allocation4 + $0x99] sm:$0x1] %vm5041_vm10, %v8160_v23 }
 0x16e   : > { %7432 = vmatmul.mubr.msk.bf16.gmra.mrb[28].mxu0 %vm763_vm1, %v6773_v47 }
 0x16f   : > { %7437 = vmatprep.mubr.msk.bf16.mxu0 %vm763_vm1, %v6823_v35 }
 0x176   : > { %7438 = vmatmul.mubr.msk.bf16.vlgmr.msra.gmra.mrb[0].mxu0 %vm763_vm1, %v6824_v62 }
 0x177   : > { %7441 = vmatprep.mubr.msk.bf16.mxu0 %vm763_vm1, %v10431_v10  ;;  %v10007_v10 = vld [vmem:[%s10362_s2] ss:$0 sm:$0xff] }
 0x17e   : > { %7442 = vmatmul.mubr.msk.bf16.gmra.mrb[4].mxu0 %vm763_vm1, %v10432_v58 }
 0x17f   : > { %7445 = vmatprep.mubr.msk.bf16.mxu0 %vm763_vm1, %v10433_v52 }
 0x186   : > { %7446 = vmatmul.mubr.msk.bf16.gmra.mrb[8].mxu0 %vm763_vm1, %v10434_v51 }
 0x187   : > { %7449 = vmatprep.mubr.msk.bf16.mxu0 %vm763_vm1, %v10436_v61 }
 0x18e   : > { %7450 = vmatmul.mubr.msk.bf16.gmra.mrb[12].mxu0 %vm763_vm1, %v10439_v63 }
 0x18f   : > { %7453 = vmatprep.mubr.msk.bf16.mxu0 %vm763_vm1, %v10442_v28 }
 0x196   : > { %7454 = vmatmul.mubr.msk.bf16.gmra.mrb[16].mxu0 %vm763_vm1, %v10445_v46 }
 0x197   : > { %7457 = vmatprep.mubr.msk.bf16.mxu0 %vm763_vm1, %v10448_v11 }
 0x19d   : > { %v9866_v55 = vpop.f32.mrb[0].mxu1 }
 0x19e   : > { %7458 = vmatmul.mubr.msk.bf16.gmra.mrb[20].mxu0 %vm763_vm1, %v10451_v21  ;;  %v9872_v5 = vpop.f32.mrb[1].mxu1 }
 0x19f   : > { %7461 = vmatprep.mubr.msk.bf16.mxu0 %vm763_vm1, %v10454_v43  ;;  %v9874_v33 = vpop.f32.mrb[2].mxu1 }
 0x1a0   : > { %v9876_v59 = vpop.f32.mrb[3].mxu1 }
 0x1a5   : > { %v9882_v22 = vpop.f32.mrb[4].mxu1 }
 0x1a6   : > { %7462 = vmatmul.mubr.msk.bf16.gmra.mrb[24].mxu0 %vm763_vm1, %v10455_v48  ;;  %v9888_v12 = vpop.f32.mrb[5].mxu1 }
 0x1a7   : > { %7465 = vmatprep.mubr.msk.bf16.mxu0 %vm763_vm1, %v10457_v36  ;;  %v9890_v32 = vpop.f32.mrb[6].mxu1 }
 0x1a8   : > { %v9892_v49 = vpop.f32.mrb[7].mxu1 }
 0x1ad   : > { %v9898_v38 = vpop.f32.mrb[8].mxu1 }
 0x1ae   : > { %7466 = vmatmul.mubr.msk.bf16.gmra.mrb[28].mxu0 %vm763_vm1, %v6838_v34  ;;  %v9900_v56 = vpop.f32.mrb[9].mxu1 }
 0x1af   : > { %v9902_v13 = vpop.f32.mrb[10].mxu1 }
 0x1b0   : > { %v9904_v3 = vpop.f32.mrb[11].mxu1 }
 0x1b5   : > { %v9906_v24 = vpop.f32.mrb[12].mxu1 }
 0x1b6   : > { %v9908_v53 = vpop.f32.mrb[13].mxu1 }
 0x1b7   : > { %v9910_v14 = vpop.f32.mrb[14].mxu1 }
 0x1b8   : > { %v9912_v1 = vpop.f32.mrb[15].mxu1 }
 0x1bd   : > { %v9914_v44 = vpop.f32.mrb[16].mxu1 }
 0x1be   : > { %v9916_v31 = vpop.f32.mrb[17].mxu1 }
 0x1bf   : > { %v9918_v54 = vpop.f32.mrb[18].mxu1 }
 0x1c0   : > { %v9920_v34 = vpop.f32.mrb[19].mxu1 }
 0x1c5   : > { %v9922_v0 = vpop.f32.mrb[20].mxu1 }
 0x1c6   : > { %v9924_v19 = vpop.f32.mrb[21].mxu1 }
 0x1c7   : > { %v9926_v30 = vpop.f32.mrb[22].mxu1 }
 0x1c8   : > { %v9928_v42 = vpop.f32.mrb[23].mxu1 }
 0x1dd   : > { %v9930_v4 = vpop.f32.mrb[24].mxu1 }
 0x1de   : > { %v9932_v40 = vpop.f32.mrb[25].mxu1 }
 0x1df   : > { %v9934_v39 = vpop.f32.mrb[26].mxu1 }
 0x1e0   : > { %v9936_v27 = vpop.f32.mrb[27].mxu1 }
 0x1e5   : > { %v9938_v6 = vpop.f32.mrb[28].mxu1 }
 0x1e6   : > { %v9940_v47 = vpop.f32.mrb[29].mxu1 }
 0x1e7   : > { %v9942_v35 = vpop.f32.mrb[30].mxu1 }
 0x1e8   : > { %v9944_v18 = vpop.f32.mrb[31].mxu1 }
 0x249   : > { %v7439_v62 = vpop.f32.mrb[0].mxu0 }
 0x24a   : > { %v7610_v58 = vadd.f32 %v7439_v62, %v9866_v55  ;;  %v4677_v52 = vpop.f32.mrb[1].mxu0 }
 0x24b   : > { %v7611_v51 = vadd.f32 %v4677_v52, %v9872_v5  ;;  %v7440_v41 = vpop.f32.mrb[2].mxu0 }
 0x24c   : > { %v4845_v61 = vadd.f32 %v7610_v58, %v10007_v10  ;;  %v7612_v26 = vadd.f32 %v7440_v41, %v9874_v33  ;;  %v4680_v45 = vpop.f32.mrb[3].mxu0 }
 0x24d   : > { %v4843_v63 = vadd.f32 %v7611_v51, %v10007_v10  ;;  %v7613_v7 = vadd.f32 %v4680_v45, %v9876_v59 }
 0x24e   : > { %v4846_v20 = vadd.f32 %v7612_v26, %v10007_v10  ;;  %v4877_v57 = vmax.f32 %v4845_v61, 0.0 }
 0x24f   : > { %v4844_v28 = vadd.f32 %v7613_v7, %v10007_v10  ;;  %v4875_v46 = vmax.f32 %v4843_v63, 0.0 }
 0x250   : > { %v4878_v2 = vmax.f32 %v4846_v20, 0.0 }
 0x251   : > { %v4876_v50 = vmax.f32 %v4844_v28, 0.0  ;;  %v7443_v15 = vpop.f32.mrb[4].mxu0 }
 0x252   : > { %v4908_v11 = vpack.c.bf16 %v4878_v2, %v4877_v57  ;;  %v7614_v16 = vadd.f32 %v7443_v15, %v9882_v22  ;;  %v4693_v9 = vpop.f32.mrb[5].mxu0 }
 0x253   : > { %v4907_v21 = vpack.c.bf16 %v4876_v50, %v4875_v46  ;;  %v7615_v55 = vadd.f32 %v4693_v9, %v9888_v12  ;;  %v7444_v8 = vpop.f32.mrb[6].mxu0 }
 0x254   : > { %4925 = vst.msk [vmem:[#allocation2 + $0x8] sm:$0xff] %vm4923_vm8, %v4908_v11  ;;  %v4849_v29 = vadd.f32 %v7614_v16, %v10007_v10  ;;  %v7616_v43 = vadd.f32 %v7444_v8, %v9890_v32  ;;  %v4696_v5 = vpop.f32.mrb[7].mxu0 }
 0x255   : > { %4924 = vst.msk [vmem:[#allocation2] sm:$0xff] %vm4923_vm8, %v4907_v21  ;;  %v4847_v33 = vadd.f32 %v7615_v55, %v10007_v10  ;;  %v7617_v59 = vadd.f32 %v4696_v5, %v9892_v49 }
 0x256   : > { %v4850_v48 = vadd.f32 %v7616_v43, %v10007_v10  ;;  %v4881_v25 = vmax.f32 %v4849_v29, 0.0 }
 0x257   : > { %v4848_v22 = vadd.f32 %v7617_v59, %v10007_v10  ;;  %v4879_v12 = vmax.f32 %v4847_v33, 0.0 }
 0x258   : > { %v4882_v36 = vmax.f32 %v4850_v48, 0.0 }
 0x259   : > { %v4880_v60 = vmax.f32 %v4848_v22, 0.0  ;;  %v7447_v37 = vpop.f32.mrb[8].mxu0 }
 0x25a   : > { %v4910_v62 = vpack.c.bf16 %v4882_v36, %v4881_v25  ;;  %v7618_v58 = vadd.f32 %v7447_v37, %v9898_v38  ;;  %v4709_v32 = vpop.f32.mrb[9].mxu0 }
 0x25b   : > { %v4941_v52 = vld [vmem:[#allocation2 + $0x8] sm:$0xff]  ;;  %v4909_v51 = vpack.c.bf16 %v4880_v60, %v4879_v12  ;;  %v7619_v41 = vadd.f32 %v4709_v32, %v9900_v56  ;;  %v7448_v61 = vpop.f32.mrb[10].mxu0 }
 0x25c   : > { %v4940_v26 = vld [vmem:[#allocation2] sm:$0xff]  ;;  %4927 = vst.msk [vmem:[#allocation2 + $0x18] sm:$0xff] %vm4923_vm8, %v4910_v62  ;;  %v4853_v49 = vadd.f32 %v7618_v58, %v10007_v10  ;;  %v7620_v45 = vadd.f32 %v7448_v61, %v9902_v13  ;;  %v4712_v63 = vpop.f32.mrb[11].mxu0 }
 0x25d   : > { %v4956_v7 = vmax.bf16 %v4941_v52, %v4940_v26  ;;  %4926 = vst.msk [vmem:[#allocation2 + $0x10] sm:$0xff] %vm4923_vm8, %v4909_v51  ;;  %v4851_v20 = vadd.f32 %v7619_v41, %v10007_v10  ;;  %v7621_v38 = vadd.f32 %v4712_v63, %v9904_v3 }
 0x25e   : > { %v4854_v28 = vadd.f32 %v7620_v45, %v10007_v10  ;;  %v4885_v46 = vmax.f32 %v4853_v49, 0.0 }
 0x25f   : > { %v4964_v57 = vunpack.c.l.bf16 %v4956_v7  ;;  %v4965_v56 = vunpack.c.h.bf16 %v4956_v7  ;;  %v4852_v2 = vadd.f32 %v7621_v38, %v10007_v10  ;;  %v4883_v13 = vmax.f32 %v4851_v20, 0.0 }
 0x260   : > { %v4886_v50 = vmax.f32 %v4854_v28, 0.0 }
 0x261   : > { %4980 = vst.msk [vmem:[#allocation3] sm:$0xff] %vm4923_vm8, %v4964_v57  ;;  %4981 = vst.msk [vmem:[#allocation3 + $0x8] sm:$0xff] %vm4923_vm8, %v4965_v56  ;;  %v4884_v15 = vmax.f32 %v4852_v2, 0.0  ;;  %v7451_v11 = vpop.f32.mrb[12].mxu0 }
 0x262   : > { %v4912_v16 = vpack.c.bf16 %v4886_v50, %v4885_v46  ;;  %v7622_v9 = vadd.f32 %v7451_v11, %v9906_v24  ;;  %v4725_v21 = vpop.f32.mrb[13].mxu0 }
 0x263   : > { %v4943_v3 = vld [vmem:[#allocation2 + $0x18] sm:$0xff]  ;;  %v4911_v55 = vpack.c.bf16 %v4884_v15, %v4883_v13  ;;  %v7623_v8 = vadd.f32 %v4725_v21, %v9908_v53  ;;  %v7452_v29 = vpop.f32.mrb[14].mxu0  ;;  %v5087_v13 = vld [vmem:[#allocation4 + $0x1] sm:$0xff] }
 0x264   : > { %v4942_v43 = vld [vmem:[#allocation2 + $0x10] sm:$0xff]  ;;  %4929 = vst.msk [vmem:[#allocation2 + $0x28] sm:$0xff] %vm4923_vm8, %v4912_v16  ;;  %v4857_v5 = vadd.f32 %v7622_v9, %v10007_v10  ;;  %v7624_v33 = vadd.f32 %v7452_v29, %v9910_v14  ;;  %v4728_v59 = vpop.f32.mrb[15].mxu0 }
 0x265   : > { %v4957_v48 = vmax.bf16 %v4943_v3, %v4942_v43  ;;  %4928 = vst.msk [vmem:[#allocation2 + $0x20] sm:$0xff] %vm4923_vm8, %v4911_v55  ;;  %v4855_v22 = vadd.f32 %v7623_v8, %v10007_v10  ;;  %v7625_v24 = vadd.f32 %v4728_v59, %v9912_v1 }
 0x266   : > { %v4858_v25 = vadd.f32 %v7624_v33, %v10007_v10  ;;  %v4889_v60 = vmax.f32 %v4857_v5, 0.0 }
 0x267   : > { %v4966_v36 = vunpack.c.l.bf16 %v4957_v48  ;;  %v4967_v53 = vunpack.c.h.bf16 %v4957_v48  ;;  %v4856_v12 = vadd.f32 %v7625_v24, %v10007_v10  ;;  %v4887_v14 = vmax.f32 %v4855_v22, 0.0 }
 0x268   : > { %v4890_v37 = vmax.f32 %v4858_v25, 0.0  ;;  %v4996_v62 = vld [vmem:[#allocation3] ss:$2 sm:$0xff]  ;;  %v5012_v58 = vld [vmem:[#allocation3 + $0x1] ss:$2 sm:$0xff] }
 0x269   : > { %4982 = vst.msk [vmem:[#allocation3 + $0x10] sm:$0xff] %vm4923_vm8, %v4966_v36  ;;  %4983 = vst.msk [vmem:[#allocation3 + $0x18] sm:$0xff] %vm4923_vm8, %v4967_v53  ;;  %v4888_v32 = vmax.f32 %v4856_v12, 0.0  ;;  %v7455_v52 = vpop.f32.mrb[16].mxu0  ;;  %v5027_v51 = vmax.f32 %v4996_v62, %v5012_v58 }
 0x26a   : > { %v4914_v41 = vpack.c.bf16 %v4890_v37, %v4889_v60  ;;  %v7626_v1 = vadd.f32 %v7455_v52, %v9914_v44  ;;  %v4741_v61 = vpop.f32.mrb[17].mxu0 }
 0x26b   : > { %v4945_v26 = vld [vmem:[#allocation2 + $0x28] sm:$0xff]  ;;  %v4913_v49 = vpack.c.bf16 %v4888_v32, %v4887_v14  ;;  %v7627_v45 = vadd.f32 %v4741_v61, %v9916_v31  ;;  %v7456_v63 = vpop.f32.mrb[18].mxu0  ;;  %5063 = vst.msk [vmem:[#allocation4 + $0x11] sm:$0xff] %vm4923_vm8, %v5027_v51 }
 0x26c   : > { %v4944_v7 = vld [vmem:[#allocation2 + $0x20] sm:$0xff]  ;;  %4931 = vst.msk [vmem:[#allocation2 + $0x38] sm:$0xff] %vm4923_vm8, %v4914_v41  ;;  %v4861_v20 = vadd.f32 %v7626_v1, %v10007_v10  ;;  %v7628_v38 = vadd.f32 %v7456_v63, %v9918_v54  ;;  %v4744_v28 = vpop.f32.mrb[19].mxu0 }
 0x26d   : > { %v4958_v57 = vmax.bf16 %v4945_v26, %v4944_v7  ;;  %4930 = vst.msk [vmem:[#allocation2 + $0x30] sm:$0xff] %vm4923_vm8, %v4913_v49  ;;  %v4859_v44 = vadd.f32 %v7627_v45, %v10007_v10  ;;  %v7629_v56 = vadd.f32 %v4744_v28, %v9920_v34 }
 0x26e   : > { %v4862_v31 = vadd.f32 %v7628_v38, %v10007_v10  ;;  %v4893_v15 = vmax.f32 %v4861_v20, 0.0 }
 0x26f   : > { %v4968_v2 = vunpack.c.l.bf16 %v4958_v57  ;;  %v4969_v46 = vunpack.c.h.bf16 %v4958_v57  ;;  %v4860_v50 = vadd.f32 %v7629_v56, %v10007_v10  ;;  %v4891_v54 = vmax.f32 %v4859_v44, 0.0 }
 0x270   : > { %v4894_v11 = vmax.f32 %v4862_v31, 0.0  ;;  %v4998_v16 = vld [vmem:[#allocation3 + $0x10] ss:$2 sm:$0xff]  ;;  %v5014_v9 = vld [vmem:[#allocation3 + $0x11] ss:$2 sm:$0xff] }
 0x271   : > { %4984 = vst.msk [vmem:[#allocation3 + $0x20] sm:$0xff] %vm4923_vm8, %v4968_v2  ;;  %4985 = vst.msk [vmem:[#allocation3 + $0x28] sm:$0xff] %vm4923_vm8, %v4969_v46  ;;  %v4892_v21 = vmax.f32 %v4860_v50, 0.0  ;;  %v7459_v3 = vpop.f32.mrb[20].mxu0  ;;  %v5028_v55 = vmax.f32 %v4998_v16, %v5014_v9 }
 0x272   : > { %v4916_v34 = vpack.c.bf16 %v4894_v11, %v4893_v15  ;;  %v7630_v8 = vadd.f32 %v7459_v3, %v9922_v0  ;;  %v4757_v29 = vpop.f32.mrb[21].mxu0  ;;  %v10065_v43 = vld [vmem:[#allocation4 + $0x11] sm:$0xff] }
 0x273   : > { %v4947_v5 = vld [vmem:[#allocation2 + $0x38] sm:$0xff]  ;;  %v4915_v33 = vpack.c.bf16 %v4892_v21, %v4891_v54  ;;  %v7631_v59 = vadd.f32 %v4757_v29, %v9924_v19  ;;  %v7460_v48 = vpop.f32.mrb[22].mxu0  ;;  %v5095_v22 = vpack.c.bf16 %v10065_v43, %v5087_v13  ;;  %5064 = vst.msk [vmem:[#allocation4 + $0x21] sm:$0xff] %vm4923_vm8, %v5028_v55 }
 0x274   : > { %v4946_v24 = vld [vmem:[#allocation2 + $0x30] sm:$0xff]  ;;  %4933 = vst.msk [vmem:[#allocation2 + $0x48] sm:$0xff] %vm4923_vm8, %v4916_v34  ;;  %v4865_v25 = vadd.f32 %v7630_v8, %v10007_v10  ;;  %v7632_v36 = vadd.f32 %v7460_v48, %v9926_v30  ;;  %v4760_v0 = vpop.f32.mrb[23].mxu0 }
 0x275   : > { %v4959_v53 = vmax.bf16 %v4947_v5, %v4946_v24  ;;  %4932 = vst.msk [vmem:[#allocation2 + $0x40] sm:$0xff] %vm4923_vm8, %v4915_v33  ;;  %v4863_v12 = vadd.f32 %v7631_v59, %v10007_v10  ;;  %v7633_v19 = vadd.f32 %v4760_v0, %v9928_v42  ;;  %7473 = vmatprep.mubr.msk.bf16.mxu1 %vm4923_vm8, %v5095_v22  ;;  %v8034_v24 = vld [vmem:[%s10363_s3 + $0x8] sm:$0xff]  }
 0x276   : > { %v4866_v60 = vadd.f32 %v7632_v36, %v10007_v10  ;;  %v4897_v14 = vmax.f32 %v4865_v25, 0.0 }
 0x277   : > { %v4970_v37 = vunpack.c.l.bf16 %v4959_v53  ;;  %v4971_v62 = vunpack.c.h.bf16 %v4959_v53  ;;  %v4864_v58 = vadd.f32 %v7633_v19, %v10007_v10  ;;  %v4895_v51 = vmax.f32 %v4863_v12, 0.0 }
 0x278   : > { %v4898_v32 = vmax.f32 %v4866_v60, 0.0  ;;  %v5000_v52 = vld [vmem:[#allocation3 + $0x20] ss:$2 sm:$0xff]  ;;  %v5016_v30 = vld [vmem:[#allocation3 + $0x21] ss:$2 sm:$0xff] }
 0x279   : > { %4986 = vst.msk [vmem:[#allocation3 + $0x30] sm:$0xff] %vm4923_vm8, %v4970_v37  ;;  %4987 = vst.msk [vmem:[#allocation3 + $0x38] sm:$0xff] %vm4923_vm8, %v4971_v62  ;;  %v4896_v41 = vmax.f32 %v4864_v58, 0.0  ;;  %v7463_v1 = vpop.f32.mrb[24].mxu0  ;;  %v5029_v42 = vmax.f32 %v5000_v52, %v5016_v30 }
 0x27a   : > { %v4918_v61 = vpack.c.bf16 %v4898_v32, %v4897_v14  ;;  %v7634_v26 = vadd.f32 %v7463_v1, %v9930_v4  ;;  %v4773_v49 = vpop.f32.mrb[25].mxu0  ;;  %v10082_v45 = vld [vmem:[#allocation4 + $0x21] sm:$0xff] }
 0x27b   : > { %v4949_v63 = vld [vmem:[#allocation2 + $0x48] sm:$0xff]  ;;  %v4917_v7 = vpack.c.bf16 %v4896_v41, %v4895_v51  ;;  %v7635_v20 = vadd.f32 %v4773_v49, %v9932_v40  ;;  %v7464_v38 = vpop.f32.mrb[26].mxu0  ;;  %5065 = vst.msk [vmem:[#allocation4 + $0x31] sm:$0xff] %vm4923_vm8, %v5029_v42  ;;  %v5518_v28 = vpack.c.bf16 %v10082_v45, %v10065_v43  ;;  %v8043_v43 = vld [vmem:[%s10363_s3 + $0x60] sm:$0xff]  }
 0x27c   : > { %v4948_v57 = vld [vmem:[#allocation2 + $0x40] sm:$0xff]  ;;  %4935 = vst.msk [vmem:[#allocation2 + $0x58] sm:$0xff] %vm4923_vm8, %v4918_v61  ;;  %v4869_v44 = vadd.f32 %v7634_v26, %v10007_v10  ;;  %v7636_v4 = vadd.f32 %v7464_v38, %v9934_v39  ;;  %v4776_v56 = vpop.f32.mrb[27].mxu0 }
 0x27d   : > { %v4960_v31 = vmax.bf16 %v4949_v63, %v4948_v57  ;;  %4934 = vst.msk [vmem:[#allocation2 + $0x50] sm:$0xff] %vm4923_vm8, %v4917_v7  ;;  %v4867_v2 = vadd.f32 %v7635_v20, %v10007_v10  ;;  %v7637_v40 = vadd.f32 %v4776_v56, %v9936_v27 }
 0x27e   : > { %v4870_v46 = vadd.f32 %v7636_v4, %v10007_v10  ;;  %v4901_v11 = vmax.f32 %v4869_v44, 0.0 }
 0x27f   : > { %v4972_v50 = vunpack.c.l.bf16 %v4960_v31  ;;  %v4973_v13 = vunpack.c.h.bf16 %v4960_v31  ;;  %v4868_v15 = vadd.f32 %v7637_v40, %v10007_v10  ;;  %v4899_v39 = vmax.f32 %v4867_v2, 0.0 }
 0x280   : > { %v4902_v16 = vmax.f32 %v4870_v46, 0.0  ;;  %v5002_v9 = vld [vmem:[#allocation3 + $0x30] ss:$2 sm:$0xff]  ;;  %v5018_v54 = vld [vmem:[#allocation3 + $0x31] ss:$2 sm:$0xff] }
 0x281   : > { %4988 = vst.msk [vmem:[#allocation3 + $0x40] sm:$0xff] %vm4923_vm8, %v4972_v50  ;;  %4989 = vst.msk [vmem:[#allocation3 + $0x48] sm:$0xff] %vm4923_vm8, %v4973_v13  ;;  %v4900_v21 = vmax.f32 %v4868_v15, 0.0  ;;  %v7467_v3 = vpop.f32.mrb[28].mxu0  ;;  %v5030_v55 = vmax.f32 %v5002_v9, %v5018_v54  ;;  %v5072_v9 = vld [vmem:[#allocation4 + $0x10] sm:$0xff] }
 0x282   : > { %v4920_v34 = vpack.c.bf16 %v4902_v16, %v4901_v11  ;;  %v7638_v27 = vadd.f32 %v7467_v3, %v9938_v6  ;;  %v4789_v8 = vpop.f32.mrb[29].mxu0  ;;  %v10099_v29 = vld [vmem:[#allocation4 + $0x31] sm:$0xff]  ;;  %v5071_v16 = vld [vmem:[#allocation4] sm:$0xff] }
 0x283   : > { %v4951_v5 = vld [vmem:[#allocation2 + $0x58] sm:$0xff]  ;;  %v4919_v33 = vpack.c.bf16 %v4900_v21, %v4899_v39  ;;  %v7639_v59 = vadd.f32 %v4789_v8, %v9940_v47  ;;  %v7468_v48 = vpop.f32.mrb[30].mxu0  ;;  %v10104_v22 = vpack.c.bf16 %v10099_v29, %v10082_v45  ;;  %5066 = vst.msk [vmem:[#allocation4 + $0x41] sm:$0xff] %vm4923_vm8, %v5030_v55  ;;  %v5079_v55 = vpack.c.bf16 %v5072_v9, %v5071_v16  ;;  %v5073_v8 = vld [vmem:[#allocation4 + $0x20] sm:$0xff] }
 0x284   : > { %v4950_v25 = vld [vmem:[#allocation2 + $0x50] sm:$0xff]  ;;  %4937 = vst.msk [vmem:[#allocation2 + $0x68] sm:$0xff] %vm4923_vm8, %v4920_v34  ;;  %v4873_v6 = vadd.f32 %v7638_v27, %v10007_v10  ;;  %v7640_v36 = vadd.f32 %v7468_v48, %v9942_v35  ;;  %v4792_v0 = vpop.f32.mrb[31].mxu0  ;;  %v10124_v35 = vld [vmem:[%s10363_s3 + $0x20] sm:$0xff]   ;;  %v8161_v16 = vmov 0.0|0.0  }
 0x285   : > { %v4961_v47 = vmax.bf16 %v4951_v5, %v4950_v25  ;;  %4936 = vst.msk [vmem:[#allocation2 + $0x60] sm:$0xff] %vm4923_vm8, %v4919_v33  ;;  %v4871_v53 = vadd.f32 %v7639_v59, %v10007_v10  ;;  %v7641_v12 = vadd.f32 %v4792_v0, %v9944_v18  ;;  %7474 = vmatmul.mubr.msk.bf16.vlgmr.msra.gmra.mrb[32].mxu1 %vm4923_vm8, %v10104_v22  ;;  %v5074_v34 = vld [vmem:[#allocation4 + $0x30] sm:$0xff]  ;;  %v8036_v59 = vld [vmem:[%s10363_s3 + $0x28] sm:$0xff]  }
 0x286   : > { %v4874_v19 = vadd.f32 %v7640_v36, %v10007_v10  ;;  %7482 = vmatpush3.bf16.msra.mxu1 %v10001_v17  ;;  %v4905_v58 = vmax.f32 %v4873_v6, 0.0  ;;  %v10162_v5 = vpack.c.bf16 %v5074_v34, %v5073_v8  ;;  %v5282_v6 = vld [vmem:[#allocation4 + $0x2] sm:$0xff]  ;;  %v5283_v36 = vld [vmem:[#allocation4 + $0x12] sm:$0xff] }
 0x287   : > { %v4974_v60 = vunpack.c.l.bf16 %v4961_v47  ;;  %v4975_v37 = vunpack.c.h.bf16 %v4961_v47  ;;  %v4872_v62 = vadd.f32 %v7641_v12, %v10007_v10  ;;  %7483 = vmatprep.subr.bf16.mxu1 %v8034_v24  ;;  %v4903_v52 = vmax.f32 %v4871_v53, 0.0  ;;  %v5285_v12 = vld [vmem:[#allocation4 + $0x32] sm:$0xff] }
 0x288   : > { %v4906_v14 = vmax.f32 %v4874_v19, 0.0  ;;  %v5004_v18 = vld [vmem:[#allocation3 + $0x40] ss:$2 sm:$0xff]  ;;  %v5020_v32 = vld [vmem:[#allocation3 + $0x41] ss:$2 sm:$0xff]  ;;  %v5290_v53 = vpack.c.bf16 %v5283_v36, %v5282_v6 }
 0x289   : > { %4990 = vst.msk [vmem:[#allocation3 + $0x50] sm:$0xff] %vm4923_vm8, %v4974_v60  ;;  %4991 = vst.msk [vmem:[#allocation3 + $0x58] sm:$0xff] %vm4923_vm8, %v4975_v37  ;;  %v4904_v17 = vmax.f32 %v4872_v62, 0.0  ;;  %v5031_v30 = vmax.f32 %v5004_v18, %v5020_v32  ;;  %v5284_v60 = vld [vmem:[#allocation4 + $0x22] sm:$0xff] }
 0x28a   : > { %v4922_v51 = vpack.c.bf16 %v4906_v14, %v4905_v58  ;;  %v10128_v41 = vld [vmem:[#allocation4 + $0x41] sm:$0xff]  ;;  %7484 = vmatpush3.bf16.msra.mxu1 %v8034_v24  ;;  %v8037_v24 = vld [vmem:[%s10363_s3 + $0x30] sm:$0xff]   ;;  %v10182_v37 = vpack.c.bf16 %v5285_v12, %v5284_v60 }
 0x28b   : > { %v4953_v10 = vld [vmem:[#allocation2 + $0x68] sm:$0xff]  ;;  %v4921_v1 = vpack.c.bf16 %v4904_v17, %v4903_v52  ;;  %5067 = vst.msk [vmem:[#allocation4 + $0x51] sm:$0xff] %vm4923_vm8, %v5031_v30  ;;  %7493 = vmatprep.subr.bf16.mxu1 %v10124_v35  ;;  %v5519_v42 = vpack.c.bf16 %v10128_v41, %v10099_v29  ;;  %v5075_v33 = vld [vmem:[#allocation4 + $0x40] sm:$0xff]  ;;  %v5404_v17 = vpack.c.bf16 %v5073_v8, %v5072_v9 }
 0x28c   : > { %v4952_v61 = vld [vmem:[#allocation2 + $0x60] sm:$0xff]  ;;  %4939 = vst.msk [vmem:[#allocation2 + $0x78] sm:$0xff] %vm4923_vm8, %v4922_v51  ;;  %v5405_v30 = vpack.c.bf16 %v5075_v33, %v5074_v34  ;;  %v8040_v51 = vld [vmem:[%s10363_s3 + $0x48] sm:$0xff]   ;;  %v6169_v34 = vld [vmem:[%s10365_s5 + $0x30] sm:$0xff] }
 0x28d   : > { %v4962_v26 = vmax.bf16 %v4953_v10, %v4952_v61  ;;  %4938 = vst.msk [vmem:[#allocation2 + $0x70] sm:$0xff] %vm4923_vm8, %v4921_v1  ;;  %v5286_v62 = vld [vmem:[#allocation4 + $0x42] sm:$0xff]  ;;  %v8041_v1 = vld [vmem:[%s10363_s3 + $0x50] sm:$0xff]   ;;  %v6942_v8 = vld [vmem:[%s10364_s4] ss:$0 sm:$0xff] }
 0x28e   : > { %v8039_v14 = vld [vmem:[%s10363_s3 + $0x40] sm:$0xff]   ;;  %v5633_v29 = vpack.c.bf16 %v5286_v62, %v5285_v12 }
 0x28f   : > { %v4976_v49 = vunpack.c.l.bf16 %v4962_v26  ;;  %v4977_v63 = vunpack.c.h.bf16 %v4962_v26 }
 0x290   : > { %v5006_v7 = vld [vmem:[#allocation3 + $0x50] ss:$2 sm:$0xff]  ;;  %v5022_v20 = vld [vmem:[#allocation3 + $0x51] ss:$2 sm:$0xff] }
 0x291   : > { %4992 = vst.msk [vmem:[#allocation3 + $0x60] sm:$0xff] %vm4923_vm8, %v4976_v49  ;;  %4993 = vst.msk [vmem:[#allocation3 + $0x68] sm:$0xff] %vm4923_vm8, %v4977_v63  ;;  %v5032_v38 = vmax.f32 %v5006_v7, %v5022_v20  ;;  %v8042_v49 = vld [vmem:[%s10363_s3 + $0x58] sm:$0xff]   ;;  %v5632_v7 = vpack.c.bf16 %v5284_v60, %v5283_v36  ;;  %v8045_v20 = vld [vmem:[%s10363_s3 + $0x70] sm:$0xff]  }
 0x292   : > { %v10138_v57 = vld [vmem:[#allocation4 + $0x51] sm:$0xff] }
 0x293   : > { %v4955_v44 = vld [vmem:[#allocation2 + $0x78] sm:$0xff]  ;;  %v10142_v4 = vpack.c.bf16 %v10138_v57, %v10128_v41  ;;  %5068 = vst.msk [vmem:[#allocation4 + $0x61] sm:$0xff] %vm4923_vm8, %v5032_v38  ;;  %v5076_v27 = vld [vmem:[#allocation4 + $0x50] sm:$0xff]  ;;  %v8044_v41 = vld [vmem:[%s10363_s3 + $0x68] sm:$0xff]  }
 0x294   : > { %v4954_v56 = vld [vmem:[#allocation2 + $0x70] sm:$0xff]  ;;  %v10167_v48 = vpack.c.bf16 %v5076_v27, %v5075_v33 }
 0x295   : > { %v4963_v31 = vmax.bf16 %v4955_v44, %v4954_v56  ;;  %7477 = vmatprep.mubr.msk.bf16.mxu1 %vm4923_vm8, %v10142_v4  ;;  %v5287_v19 = vld [vmem:[#allocation4 + $0x52] sm:$0xff]  ;;  %v8047_v56 = vld [vmem:[%s10363_s3 + $0x80] sm:$0xff]  }
 0x296   : > { %v10187_v58 = vpack.c.bf16 %v5287_v19, %v5286_v62  ;;  %v8046_v44 = vld [vmem:[%s10363_s3 + $0x78] sm:$0xff]  }
 0x297   : > { %v4978_v2 = vunpack.c.l.bf16 %v4963_v31  ;;  %v4979_v40 = vunpack.c.h.bf16 %v4963_v31  ;;  %v5746_v31 = vld [vmem:[#allocation4 + $0x90] sm:$0xff] }
 0x298   : > { %v5008_v46 = vld [vmem:[#allocation3 + $0x60] ss:$2 sm:$0xff]  ;;  %v5024_v50 = vld [vmem:[#allocation3 + $0x61] ss:$2 sm:$0xff] }
 0x299   : > { %4994 = vst.msk [vmem:[#allocation3 + $0x70] sm:$0xff] %vm4923_vm8, %v4978_v2  ;;  %4995 = vst.msk [vmem:[#allocation3 + $0x78] sm:$0xff] %vm4923_vm8, %v4979_v40  ;;  %v5033_v13 = vmax.f32 %v5008_v46, %v5024_v50  ;;  %v8048_v40 = vld [vmem:[%s10363_s3 + $0x88] sm:$0xff]   ;;  %v5860_v46 = vld [vmem:[#allocation4 + $0x91] sm:$0xff] }
 0x29a   : > { %v10150_v39 = vld [vmem:[#allocation4 + $0x61] sm:$0xff] }
 0x29b   : > { %5069 = vst.msk [vmem:[#allocation4 + $0x71] sm:$0xff] %vm4923_vm8, %v5033_v13  ;;  %v5077_v0 = vld [vmem:[#allocation4 + $0x60] sm:$0xff]  ;;  %v5520_v63 = vpack.c.bf16 %v10150_v39, %v10138_v57 }
 0x29c   : > { %v5288_v32 = vld [vmem:[#allocation4 + $0x62] sm:$0xff]  ;;  %v5406_v10 = vpack.c.bf16 %v5077_v0, %v5076_v27 }
 0x29d   : > { %v6163_v13 = vld [vmem:[%s10365_s5] sm:$0xff] }
 0x2a0   : > { %v5010_v15 = vld [vmem:[#allocation3 + $0x70] ss:$2 sm:$0xff]  ;;  %v5026_v11 = vld [vmem:[#allocation3 + $0x71] ss:$2 sm:$0xff] }
 0x2a1   : > { %v5034_v54 = vmax.f32 %v5010_v15, %v5026_v11  ;;  %v6164_v15 = vld [vmem:[%s10365_s5 + $0x8] sm:$0xff]  ;;  %v6165_v11 = vld [vmem:[%s10365_s5 + $0x10] sm:$0xff] }
 0x2a2   : > { %v10152_v21 = vld [vmem:[#allocation4 + $0x71] sm:$0xff]  ;;  %v7597_v9 = vpack.c.bf16 %v6164_v15, %v6163_v13 }
 0x2a3   : > { %v10156_v3 = vpack.c.bf16 %v10152_v21, %v10150_v39  ;;  %5070 = vst.msk [vmem:[#allocation4 + $0x81] sm:$0xff] %vm4923_vm8, %v5034_v54  ;;  %v5078_v25 = vld [vmem:[#allocation4 + $0x70] sm:$0xff]  ;;  %v6166_v54 = vld [vmem:[%s10365_s5 + $0x18] sm:$0xff] }
 0x2a4   : > { %v10177_v47 = vpack.c.bf16 %v5078_v25, %v5077_v0  ;;  %v5289_v18 = vld [vmem:[#allocation4 + $0x72] sm:$0xff]  ;;  %v7600_v39 = vpack.c.bf16 %v6166_v54, %v6165_v11 }
 0x2a5   : > { %7478 = vmatmul.mubr.msk.bf16.gmra.mrb[36].mxu1 %vm4923_vm8, %v10156_v3  ;;  %v10196_v52 = vpack.c.bf16 %v5289_v18, %v5288_v32 }
 0x2a6   : > { %7485 = vmatprep.mubr.msk.bf16.mxu1 %vm4923_vm8, %v5079_v55 }
 0x2aa   : > { %v5403_v61 = vld [vmem:[#allocation4 + $0x80] sm:$0xff] }
 0x2ab   : > { %v5407_v26 = vpack.c.bf16 %v5403_v61, %v5078_v25  ;;  %v5517_v45 = vld [vmem:[#allocation4 + $0x81] sm:$0xff]  ;;  %v5750_v2 = vpack.c.bf16 %v5746_v31, %v5403_v61 }
 0x2ac   : > { %v5631_v38 = vld [vmem:[#allocation4 + $0x82] sm:$0xff]  ;;  %v5864_v50 = vpack.c.bf16 %v5860_v46, %v5517_v45 }
 0x2ad   : > { %7486 = vmatmul.mubr.msk.bf16.vlgmr.msra.gmra.mrb[32].mxu1 %vm4923_vm8, %v10162_v5  ;;  %v5635_v57 = vpack.c.bf16 %v5631_v38, %v5289_v18 }
 0x2ae   : > { %7494 = vmatpush3.bf16.msra.mxu1 %v10124_v35  ;;  %7489 = vmatprep.mubr.msk.bf16.mxu1 %vm4923_vm8, %v10167_v48  ;;  %v8038_v35 = vld [vmem:[%s10363_s3 + $0x38] sm:$0xff]  }
 0x2af   : > { %7495 = vmatprep.subr.bf16.mxu1 %v8036_v59 }
 0x2b2   : > { %7496 = vmatpush3.bf16.msra.mxu1 %v8036_v59 }
 0x2b3   : > { %7505 = vmatprep.subr.bf16.mxu1 %v8037_v24 }
 0x2b5   : > { %7490 = vmatmul.mubr.msk.bf16.gmra.mrb[36].mxu1 %vm4923_vm8, %v10177_v47 }
 0x2b6   : > { %7497 = vmatprep.mubr.msk.bf16.mxu1 %vm4923_vm8, %v5290_v53 }
 0x2bd   : > { %7498 = vmatmul.mubr.msk.bf16.vlgmr.msra.gmra.mrb[32].mxu1 %vm4923_vm8, %v10182_v37 }
 0x2be   : > { %7506 = vmatpush3.bf16.msra.mxu1 %v8037_v24  ;;  %7501 = vmatprep.mubr.msk.bf16.mxu1 %vm4923_vm8, %v10187_v58 }
 0x2bf   : > { %7507 = vmatprep.subr.bf16.mxu1 %v8038_v35 }
 0x2c2   : > { %7508 = vmatpush3.bf16.msra.mxu1 %v8038_v35 }
 0x2c3   : > { %7517 = vmatprep.subr.bf16.mxu1 %v8039_v14 }
 0x2c5   : > { %7502 = vmatmul.mubr.msk.bf16.gmra.mrb[36].mxu1 %vm4923_vm8, %v10196_v52 }
 0x2c6   : > { %7509 = vmatprep.mubr.msk.bf16.mxu1 %vm4923_vm8, %v5404_v17 }
 0x2cd   : > { %7510 = vmatmul.mubr.msk.bf16.vlgmr.msra.gmra.mrb[32].mxu1 %vm4923_vm8, %v5405_v30 }
 0x2ce   : > { %7518 = vmatpush3.bf16.msra.mxu1 %v8039_v14  ;;  %7513 = vmatprep.mubr.msk.bf16.mxu1 %vm4923_vm8, %v5406_v10 }
 0x2cf   : > { %7519 = vmatprep.subr.bf16.mxu1 %v8040_v51 }
 0x2d2   : > { %7520 = vmatpush3.bf16.msra.mxu1 %v8040_v51 }
 0x2d3   : > { %7529 = vmatprep.subr.bf16.mxu1 %v8041_v1 }
 0x2d5   : > { %7514 = vmatmul.mubr.msk.bf16.gmra.mrb[36].mxu1 %vm4923_vm8, %v5407_v26 }
 0x2d6   : > { %7521 = vmatprep.mubr.msk.bf16.mxu1 %vm4923_vm8, %v5518_v28  ;;  %v5521_v28 = vpack.c.bf16 %v5517_v45, %v10152_v21  ;;  %v6167_v21 = vld [vmem:[%s10365_s5 + $0x20] sm:$0xff] }
 0x2dd   : > { %7522 = vmatmul.mubr.msk.bf16.vlgmr.msra.gmra.mrb[32].mxu1 %vm4923_vm8, %v5519_v42  ;;  %v5634_v42 = vpack.c.bf16 %v5288_v32, %v5287_v19 }
 0x2de   : > { %7530 = vmatpush3.bf16.msra.mxu1 %v8041_v1  ;;  %7525 = vmatprep.mubr.msk.bf16.mxu1 %vm4923_vm8, %v5520_v63 }
 0x2df   : > { %7531 = vmatprep.subr.bf16.mxu1 %v8042_v49 }
 0x2e2   : > { %7532 = vmatpush3.bf16.msra.mxu1 %v8042_v49 }
 0x2e3   : > { %7541 = vmatprep.subr.bf16.mxu1 %v8043_v43 }
 0x2e5   : > { %7526 = vmatmul.mubr.msk.bf16.gmra.mrb[36].mxu1 %vm4923_vm8, %v5521_v28 }
 0x2e6   : > { %7533 = vmatprep.mubr.msk.bf16.mxu1 %vm4923_vm8, %v5632_v7 }
 0x2ed   : > { %7534 = vmatmul.mubr.msk.bf16.vlgmr.msra.gmra.mrb[32].mxu1 %vm4923_vm8, %v5633_v29 }
 0x2ee   : > { %7542 = vmatpush3.bf16.msra.mxu1 %v8043_v43  ;;  %7537 = vmatprep.mubr.msk.bf16.mxu1 %vm4923_vm8, %v5634_v42 }
 0x2ef   : > { %7543 = vmatprep.subr.bf16.mxu1 %v8044_v41 }
 0x2f2   : > { %7544 = vmatpush3.bf16.msra.mxu1 %v8044_v41 }
 0x2f3   : > { %7553 = vmatprep.subr.bf16.mxu1 %v8045_v20 }
 0x2f5   : > { %7538 = vmatmul.mubr.msk.bf16.gmra.mrb[36].mxu1 %vm4923_vm8, %v5635_v57 }
 0x2f6   : > { %7545 = vmatprep.mubr.msk.bf16.mxu1 %vm4923_vm8, %v10162_v5 }
 0x2fd   : > { %7546 = vmatmul.mubr.msk.bf16.vlgmr.msra.gmra.mrb[32].mxu1 %vm4923_vm8, %v10167_v48 }
 0x2fe   : > { %7554 = vmatpush3.bf16.msra.mxu1 %v8045_v20  ;;  %7549 = vmatprep.mubr.msk.bf16.mxu1 %vm4923_vm8, %v10177_v47 }
 0x2ff   : > { %7555 = vmatprep.subr.bf16.mxu1 %v8046_v44 }
 0x302   : > { %7556 = vmatpush3.bf16.msra.mxu1 %v8046_v44 }
 0x303   : > { %7565 = vmatprep.subr.bf16.mxu1 %v8047_v56 }
 0x305   : > { %7550 = vmatmul.mubr.msk.bf16.gmra.mrb[36].mxu1 %vm4923_vm8, %v5750_v2 }
 0x306   : > { %7557 = vmatprep.mubr.msk.bf16.mxu1 %vm4923_vm8, %v10104_v22  ;;  %v5974_v22 = vld [vmem:[#allocation4 + $0x92] sm:$0xff] }
 0x30d   : > { %7558 = vmatmul.mubr.msk.bf16.vlgmr.msra.gmra.mrb[32].mxu1 %vm4923_vm8, %v10142_v4  ;;  %v5978_v4 = vpack.c.bf16 %v5974_v22, %v5631_v38 }
 0x30e   : > { %7566 = vmatpush3.bf16.msra.mxu1 %v8047_v56  ;;  %7561 = vmatprep.mubr.msk.bf16.mxu1 %vm4923_vm8, %v10156_v3  ;;  %v6168_v3 = vld [vmem:[%s10365_s5 + $0x28] sm:$0xff] }
 0x30f   : > { %7567 = vmatprep.subr.bf16.mxu1 %v8048_v40  ;;  %v7603_v55 = vpack.c.bf16 %v6168_v3, %v6167_v21 }
 0x312   : > { %7568 = vmatpush3.bf16.msra.mxu1 %v8048_v40 }
 0x313   : > { %7596 = vmatprep.subr.bf16.mxu1 %v8161_v16 }
 0x315   : > { %7562 = vmatmul.mubr.msk.bf16.gmra.mrb[36].mxu1 %vm4923_vm8, %v5864_v50 }
 0x316   : > { %7569 = vmatprep.mubr.msk.bf16.mxu1 %vm4923_vm8, %v10182_v37 }
 0x31d   : > { %7570 = vmatmul.mubr.msk.bf16.vlgmr.msra.gmra.mrb[32].mxu1 %vm4923_vm8, %v10187_v58 }
 0x31e   : > { %7573 = vmatprep.mubr.msk.bf16.mxu1 %vm4923_vm8, %v10196_v52  ;;  %7598 = vmatpush3.bf16.msra.mxu1 %v7597_v9 }
 0x31f   : > { %7599 = vmatprep.subr.bf16.mxu1 %v8161_v16 }
 0x322   : > { %7601 = vmatpush3.bf16.msra.mxu1 %v7600_v39 }
 0x323   : > { %7602 = vmatprep.subr.bf16.mxu1 %v8161_v16 }
 0x325   : > { %7574 = vmatmul.mubr.msk.bf16.gmra.mrb[36].mxu1 %vm4923_vm8, %v5978_v4 }
 0x326   : > { %7593 = vmatprep.mubr.msk.f32.mxu1 %vm8162_vm11, %v8160_v23  ;;  %v6170_v23 = vld [vmem:[%s10365_s5 + $0x38] sm:$0xff]  ;;  %7604 = vmatpush3.bf16.msra.mxu1 %v7603_v55 }
 0x327   : > { %v7606_v27 = vpack.c.bf16 %v6170_v23, %v6169_v34  ;;  %7605 = vmatprep.subr.bf16.mxu1 %v8161_v16 }
 0x32a   : > { %7607 = vmatpush3.bf16.msra.mxu1 %v7606_v27  ;;  %v6171_v27 = vld [vmem:[%s10366_s6] sm:$0x1] }
 0x3f0   : > { %v7571_v5 = vpop.f32.mrb[32].mxu1 }
 0x3f1   : > { %v6090_v33 = vadd.f32 %v7571_v5, %v6942_v8  ;;  %v6042_v59 = vpop.f32.mrb[33].mxu1 }
 0x3f2   : > { %v6088_v48 = vadd.f32 %v6942_v8, %v6042_v59  ;;  %v7572_v24 = vpop.f32.mrb[34].mxu1 }
 0x3f3   : > { %v6098_v25 = vmax.f32 %v6090_v33, 0.0  ;;  %v6091_v6 = vadd.f32 %v7572_v24, %v6942_v8  ;;  %v6045_v36 = vpop.f32.mrb[35].mxu1 }
 0x3f4   : > { %v6096_v0 = vmax.f32 %v6088_v48, 0.0  ;;  %v6089_v47 = vadd.f32 %v6942_v8, %v6045_v36 }
 0x3f5   : > { %6107 = vst.msk [vmem:[#allocation5 + $0x10] sm:$0xff] %vm6104_vm12, %v6098_v25  ;;  %v6099_v53 = vmax.f32 %v6091_v6, 0.0 }
 0x3f6   : > { %6105 = vst.msk [vmem:[#allocation5] sm:$0xff] %vm6104_vm12, %v6096_v0  ;;  %v6097_v12 = vmax.f32 %v6089_v47, 0.0 }
 0x3f7   : > { %6108 = vst.msk [vmem:[#allocation5 + $0x18] sm:$0xff] %vm6104_vm12, %v6099_v53 }
 0x3f8   : > { %6106 = vst.msk [vmem:[#allocation5 + $0x8] sm:$0xff] %vm6104_vm12, %v6097_v12  ;;  %v7575_v19 = vpop.f32.mrb[36].mxu1 }
 0x3f9   : > { %v6094_v60 = vadd.f32 %v7575_v19, %v6942_v8  ;;  %v6058_v37 = vpop.f32.mrb[37].mxu1 }
 0x3fa   : > { %v6092_v62 = vadd.f32 %v6942_v8, %v6058_v37  ;;  %v7576_v35 = vpop.f32.mrb[38].mxu1 }
 0x3fb   : > { %v6102_v58 = vmax.f32 %v6094_v60, 0.0  ;;  %v6095_v14 = vadd.f32 %v7576_v35, %v6942_v8  ;;  %v6061_v18 = vpop.f32.mrb[39].mxu1 }
 0x3fc   : > { %v6100_v32 = vmax.f32 %v6092_v62, 0.0  ;;  %v6093_v52 = vadd.f32 %v6942_v8, %v6061_v18  ;;  %v6115_v30 = vld [vmem:[#allocation5 + $0x10] sm:$0xff] }
 0x3fd   : > { %6111 = vst.msk [vmem:[#allocation5 + $0x30] sm:$0xff] %vm6104_vm12, %v6102_v58  ;;  %v6103_v17 = vmax.f32 %v6095_v14, 0.0  ;;  %v6113_v1 = vld [vmem:[#allocation5] sm:$0xff] }
 0x3fe   : > { %v6116_v51 = vld [vmem:[#allocation5 + $0x18] sm:$0xff]  ;;  %6109 = vst.msk [vmem:[#allocation5 + $0x20] sm:$0xff] %vm6104_vm12, %v6100_v32  ;;  %v6101_v10 = vmax.f32 %v6093_v52, 0.0 }
 0x3ff   : > { %v6122_v61 = vmax.f32 %v6115_v30, %v6116_v51  ;;  %v6114_v26 = vld [vmem:[#allocation5 + $0x8] sm:$0xff]  ;;  %6112 = vst.msk [vmem:[#allocation5 + $0x38] sm:$0xff] %vm6104_vm12, %v6103_v17 }
 0x400   : > { %v6121_v49 = vmax.f32 %v6113_v1, %v6114_v26  ;;  %6110 = vst.msk [vmem:[#allocation5 + $0x28] sm:$0xff] %vm6104_vm12, %v6101_v10 }
 0x401   : > { %6126 = vst.msk [vmem:[#allocation6 + $0x8] sm:$0xff] %vm6104_vm12, %v6122_v61 }
 0x402   : > { %6125 = vst.msk [vmem:[#allocation6] sm:$0xff] %vm6104_vm12, %v6121_v49 }
 0x404   : > { %v6119_v63 = vld [vmem:[#allocation5 + $0x30] sm:$0xff] }
 0x405   : > { %v6117_v45 = vld [vmem:[#allocation5 + $0x20] sm:$0xff] }
 0x406   : > { %v6120_v43 = vld [vmem:[#allocation5 + $0x38] sm:$0xff] }
 0x407   : > { %v6124_v28 = vmax.f32 %v6119_v63, %v6120_v43  ;;  %v6118_v7 = vld [vmem:[#allocation5 + $0x28] sm:$0xff] }
 0x408   : > { %v6123_v29 = vmax.f32 %v6117_v45, %v6118_v7  ;;  %v6131_v41 = vld [vmem:[#allocation6 + $0x8] ss:$2 sm:$0xf]  ;;  %v6139_v42 = vld [vmem:[#allocation6 + $0x9] ss:$2 sm:$0xf] }
 0x409   : > { %6128 = vst.msk [vmem:[#allocation6 + $0x18] sm:$0xff] %vm6104_vm12, %v6124_v28  ;;  %v6129_v20 = vld [vmem:[#allocation6] ss:$2 sm:$0xf]  ;;  %v6145_v44 = vmax.f32 %v6131_v41, %v6139_v42 }
 0x40a   : > { %v6137_v38 = vld [vmem:[#allocation6 + $0x1] ss:$2 sm:$0xf]  ;;  %6127 = vst.msk [vmem:[#allocation6 + $0x10] sm:$0xff] %vm6104_vm12, %v6123_v29 }
 0x40b   : > { %v6144_v57 = vmax.f32 %v6129_v20, %v6137_v38  ;;  %v6150_v31 = vsel %vm6148_vm13, %v6145_v44, 0.0 }
 0x40d   : > { %v6149_v56 = vsel %vm6148_vm13, %v6144_v57, 0.0 }
 0x40e   : > { %v6151_v13 = vadd.f32 %v6150_v31, %v6149_v56 }
 0x410   : > { %v6135_v2 = vld [vmem:[#allocation6 + $0x18] ss:$2 sm:$0xf]  ;;  %v6143_v40 = vld [vmem:[#allocation6 + $0x19] ss:$2 sm:$0xf] }
 0x411   : > { %v6133_v46 = vld [vmem:[#allocation6 + $0x10] ss:$2 sm:$0xf]  ;;  %v6141_v50 = vld [vmem:[#allocation6 + $0x11] ss:$2 sm:$0xf]  ;;  %v6147_v4 = vmax.f32 %v6135_v2, %v6143_v40 }
 0x412   : > { %v6146_v22 = vmax.f32 %v6133_v46, %v6141_v50 }
 0x413   : > { %v6154_v16 = vsel %vm6148_vm13, %v6147_v4, 0.0 }
 0x414   : > { %v6152_v15 = vsel %vm6148_vm13, %v6146_v22, 0.0 }
 0x415   : > { %v6153_v11 = vadd.f32 %v6152_v15, %v6151_v13 }
 0x417   : > { %v6155_v9 = vadd.f32 %v6154_v16, %v6153_v11 }
 0x419   : > { %v6156_v54 = vsel %vm6148_vm13, %v6155_v9, 0.0 }
 0x41a   : > { %v6157_v39 = vrot.slane %v6156_v54, 4 }
 0x41c   : > { %v6158_v21 = vadd.f32 %v6157_v39, %v6156_v54 }
 0x41e   : > { %v6159_v3 = vrot.slane %v6158_v21, 2 }
 0x420   : > { %v6160_v55 = vadd.f32 %v6159_v3, %v6158_v21 }
 0x422   : > { %v6161_v34 = vrot.slane %v6160_v55, 1 }
 0x424   : > { %v6162_v23 = vadd.f32 %v6161_v34, %v6160_v55 }
 0x426   : > { %7594 = vmatmul.mubr.msk.f32.vlgmr.msra.gmra.mrb[40].mxu1 %vm6104_vm12, %v6162_v23 }
 0x4f9   : > { %v6241_v8 = vpop.f32.mrb[40].mxu1 }
 0x4fa   : > { %v6242_v5 = vadd.f32 %v6241_v8, %v6171_v27  ;;  %v7595_v33 = vpop.f32.mrb[41].mxu1 }
 0x4fc   : > { %6245 = vst [vmem:[%s270_s14] sm:$0x1] %v6242_v5 }
 0x4fd   : > { %8109 = shalt.err (!%p8106_p3)
}
 0x4fe   : > { %s8110_s23 = scalar_lea.hbm %s10318_s18, 16  ;;  %s8114_s9 = scalar_lea.hbm %s10367_s7, 32 }
 0x4ff   : > { %p8111_p4 = scmp.ne.s32.totalorder %s10318_s18, %s8110_s23  ;;  %p8115_p9 = scmp.lt.u32.totalorder %s10318_s18, %s10367_s7 }
 0x500   : > { %p8116_p10 = scmp.lt.u32.totalorder %s8114_s9, %s8110_s23  ;;  %p8118_p12 = scmp.lt.u32.totalorder %s8110_s23, %s10318_s18 }
 0x501   : > { %p8112_p7 = pnand %p8111_p4, %p8242_p5 }
 0x502   : > { %p8117_p11 = por %p8116_p10, %p8115_p9 }
 0x503   : > { %p8113_p8 = pneg %p8112_p7 }
 0x504   : > { %p8119_p13 = por %p8118_p12, %p8117_p11 }
 0x506   : > { %p8120_p0 = pnand %p8119_p13, %p8113_p8 }
 0x508   : > { %8123 = shalt.err (!%p8120_p0)
}
 0x509   : > { %7941 = dma.vmem_to_hbm [thread:$0]  (%p8242_p5), %s10320_s15, 16, %s10318_s18, %s6247_s19  }
 0x50a PF: > { %p7947_p1 = scmp.ge.s32.totalorder %s8158_s27, 2  ;;  %s6271_s16 = sand.u32 1, %s8146_s24  }
 0x50b   : > { %s6272_s17 = scalar_lea.sflag [#allocation8], %s6271_s16 }
 0x50c   : > { %p7944_p2 = pnand %p7947_p1, %p8246_p6 }
 0x50e   : > { %8141 = dma.done.wait (!%p7944_p2), %s6272_s17, 16  }
 0x50f   : > { %8143 = vsyncadd (!%p7944_p2), %s6272_s17, 4294967280  ;;  %p17_p3 = scmp.ge.s32.totalorder %s8229_s30, 4   ;;  %s10458_s24 = smov %s8150_s25 }
 0x510   : > { %s10459_s25 = smov %s8154_s26  ;;  %s10460_s26 = smov %s8240_s10 }
 0x511   : > { %s10461_s27 = smov %s8229_s30  ;;  %19 = sbr.rel (!%p17_p3) target bundleno = 3 (0x3), region = 126 }
 0x518   :  { %6276 = vsyncpa [#allocation8], 1 }
 0x519   :  { %6278 = vsyncpa [#allocation8 + $0x1], 1 }

</bundles_post_ra>
